<compile_context>
chip_gen: v5e
topology: v5e:2x2
jax: 0.10.0
libtpu: 0.0.40
codegen_flags: <defaults>
</compile_context>

<pallas_src>
import jax
import jax.numpy as jnp
from jax.experimental import pallas as pl
from jax.experimental.pallas import tpu as pltpu

THRESHOLD = 0.01
NV = 1220      # number of prior vertices (nv * 3 == 3660, fixed by mask buffer)
NPTS = 64      # number of observed points (small, chosen for the demo)
BS = 2

# Set to jnp.bfloat16 on v5e/v6e to halve HBM traffic of the two big
# (n_pts, nv) inputs (per perf review); f32 here to validate at 2e-3.
BIG_INPUT_DTYPE = jnp.float32

# index list from Loss4.__init__ (positions that get weight 10 in the mask)
_MASK_IDX = [600, 601, 602, 591, 592, 593, 981, 982, 983, 987, 988, 989, 1044, 1045,
             1046, 2343, 2344, 2345, 2289, 2290, 2291, 2286, 2287, 2288, 1938, 1939,
             1940, 1947, 1948, 1949, 45, 46, 47, 39, 40, 41, 30, 31, 32, 24, 25, 26,
             924, 925, 926, 228, 229, 230, 12, 13, 14, 1575, 1576, 1577, 2229, 2230,
             2231, 3303, 3304, 3305, 3288, 3289, 3290, 3276, 3277, 3278, 3579, 3580,
             3581, 3588, 3589, 3590, 3318, 3319, 3320, 3504, 3505, 3506, 3234, 3235,
             3236, 3222, 3223, 3224, 3207, 3208, 3209, 3483, 3484, 3485, 3495, 3496,
             3497, 570, 571, 572, 324, 325, 326, 282, 283, 284, 63, 64, 65, 1629,
             1630, 1631, 1671, 1672, 1673, 1917, 1918, 1919, 2139, 2140, 2141, 2118,
             2119, 2120, 84, 85, 86, 813, 814, 815, 834, 835, 836, 1218, 1219, 1220,
             285, 286, 287, 69, 70, 71, 1632, 1633, 1634, 2508, 2509, 2510, 2124,
             2125, 2126, 78, 79, 80, 819, 820, 821]


def _loss4_kernel(assign_ref, mat_gt_ref, nocs_ref, rhs_ref, out_ref):
    # assign / mat_gt may arrive as bf16 on bandwidth-bound chips; upcast once.
    a = assign_ref[0].astype(jnp.float32)      # (n_pts, nv_pad), pads = -1e9
    gt = mat_gt_ref[0].astype(jnp.float32)     # (n_pts, nv_pad), pads = 0
    nocs = nocs_ref[0]                         # (n_pts, 128), cols 3..127 = 0
    rhs = rhs_ref[0]                           # (nv_pad, 128): cols 0..2 = xyz*4.5,
                                               #   col 3 = 1 on valid rows, rest 0

    # numerically stable softmax pieces; padded lanes give exp(-1e9-m) == 0
    m = jnp.max(a, axis=-1, keepdims=True)     # only remaining big XLU reduce
    z = a - m
    e = jnp.exp(z)

    # MXU matmul 1: cols 0..2 = e @ (inst_shape*4.5), col 3 = sum(e) = softmax denom
    y = jnp.dot(e, rhs, preferred_element_type=jnp.float32)     # (n_pts, 128)
    s = y[:, 3:4]                                               # (n_pts, 1)
    inv_s = pl.reciprocal(s, approx=True)                       # EUP, ~free
    soft = e * inv_s                                            # (n_pts, nv_pad)

    # correspondence term (smooth-L1) on the full lane-dense (n_pts, 128) tile;
    # column 3 (the ones column, == s/s) is masked out, padded cols contribute 0.
    coords = y * inv_s
    diff = jnp.abs(coords - nocs)
    less = diff * diff * (0.5 / THRESHOLD)
    higher = diff - 0.5 * THRESHOLD
    corr = jnp.where(diff > THRESHOLD, higher, less)
    lane = jax.lax.broadcasted_iota(jnp.int32, corr.shape, 1)
    corr = jnp.where(lane == 3, 0.0, corr)
    corr_sum = jnp.sum(corr, keepdims=True)                     # (1, 1)

    # MXU matmul 2 (same RHS): col 3 = per-row sum |softmax - mat_gt|
    w = jnp.dot(jnp.abs(soft - gt), rhs, preferred_element_type=jnp.float32)
    mat_sum = jnp.sum(w[:, 3:4], keepdims=True)                 # (1, 1)

    # MXU matmul 3 (same RHS): col 3 = per-row sum e*z ; entropy = log(s) - ez/s
    u = jnp.dot(e * z, rhs, preferred_element_type=jnp.float32)
    ez = u[:, 3:4]
    ent_sum = jnp.sum(jnp.log(s) - ez * inv_s, keepdims=True)   # (1, 1)

    # single sublane-aligned (8, 128) output tile: row0=mat, row1=corr, row2=ent
    row = jax.lax.broadcasted_iota(jnp.int32, (8, 128), 0)
    block = (jnp.where(row == 0, mat_sum, 0.0)
             + jnp.where(row == 1, corr_sum, 0.0)
             + jnp.where(row == 2, ent_sum, 0.0))
    out_ref[...] = block[None].astype(jnp.float32)


def loss4_forward(assign_mat, deltas, prior, nocs, model, mat_gt, mat_wt,
                  corr_wt, cd_wt, entropy_wt, mask,
                  big_input_dtype=BIG_INPUT_DTYPE):
    bs, n_pts, nv = assign_mat.shape
    nv_pad = ((nv + 127) // 128) * 128
    pad = nv_pad - nv

    # --- tiny (nv,3)-only terms hoisted to plain JAX (XLA fuses these) -------
    inst_shape = prior + deltas                                  # (bs, nv, 3)
    delta_y = jnp.abs(inst_shape - model).reshape(bs, nv * 3)    # (bs, 3*nv)
    l1_sum = jnp.sum(mask[None, :].astype(jnp.float32) * delta_y)
    l1_loss = cd_wt * l1_sum / (bs * nv * 3)

    # --- pad nv to a multiple of 128 so every lane pass is full & unmasked ---
    assign_p = jnp.pad(assign_mat, ((0, 0), (0, 0), (0, pad)),
                       constant_values=-1e9).astype(big_input_dtype)
    mat_gt_p = jnp.pad(mat_gt, ((0, 0), (0, 0), (0, pad))).astype(big_input_dtype)

    # lane-dense MXU RHS: cols 0..2 = inst_shape*4.5, col 3 = 1 on valid rows
    rhs = jnp.zeros((bs, nv_pad, 128), jnp.float32)
    rhs = rhs.at[:, :nv, 0:3].set(inst_shape * 4.5)
    rhs = rhs.at[:, :nv, 3].set(1.0)

    # nocs zero-padded to 128 lanes so the smooth-L1 pads contribute exactly 0
    nocs128 = jnp.zeros((bs, n_pts, 128), jnp.float32).at[:, :, 0:3].set(nocs)

    # --- heavy (n_pts, nv_pad) work in the Pallas kernel ----------------------
    partials = pl.pallas_call(
        _loss4_kernel,
        out_shape=jax.ShapeDtypeStruct((bs, 8, 128), jnp.float32),
        grid_spec=pltpu.PrefetchScalarGridSpec(
            num_scalar_prefetch=0,
            grid=(bs,),
            in_specs=[
                pl.BlockSpec((1, n_pts, nv_pad), lambda b: (b, 0, 0)),  # logits
                pl.BlockSpec((1, n_pts, nv_pad), lambda b: (b, 0, 0)),  # mat_gt
                pl.BlockSpec((1, n_pts, 128), lambda b: (b, 0, 0)),     # nocs (padded)
                pl.BlockSpec((1, nv_pad, 128), lambda b: (b, 0, 0)),    # MXU RHS
            ],
            out_specs=pl.BlockSpec((1, 8, 128), lambda b: (b, 0, 0)),
        ),
        # On v7x: switch to pltpu.CORE_PARALLEL if profiling shows both batches
        # landing on one TensorCore.
        compiler_params=pltpu.CompilerParams(
            dimension_semantics=("parallel",)),
    )(assign_p, mat_gt_p, nocs128, rhs)

    sums = jnp.sum(partials[:, :3, 0], axis=0)        # (3,) raw sums over batch
    mat_sum, corr_sum, ent_sum = sums[0], sums[1], sums[2]

    denom = bs * n_pts
    mat_loss = mat_wt * mat_sum / denom
    corr_loss = corr_wt * corr_sum / denom
    entropy_loss = entropy_wt * ent_sum / denom
    total_loss = corr_loss + entropy_loss + l1_loss + mat_loss
    return total_loss, corr_loss, l1_loss, entropy_loss, mat_loss


def loss4_reference(assign_mat, deltas, prior, nocs, model, mat_gt, mat_wt,
                    corr_wt, cd_wt, entropy_wt, mask):
    """Pure-JAX reference mirroring the PyTorch forward (for validation)."""
    inst_shape = prior + deltas
    soft = jax.nn.softmax(assign_mat, axis=2)
    mat_loss = mat_wt * jnp.mean(jnp.sum(jnp.abs(soft - mat_gt), axis=2))
    coords = jnp.einsum('bpn,bnd->bpd', soft, inst_shape * 4.5)
    diff = jnp.abs(coords - nocs)
    less = diff ** 2 / (2.0 * THRESHOLD)
    higher = diff - THRESHOLD / 2.0
    corr = jnp.where(diff > THRESHOLD, higher, less)
    corr_loss = corr_wt * jnp.mean(jnp.sum(corr, axis=2))
    log_soft = jax.nn.log_softmax(assign_mat, axis=2)
    entropy_loss = entropy_wt * jnp.mean(-jnp.sum(soft * log_soft, axis=2))
    delta_y = jnp.abs(inst_shape.reshape(-1, 3660) - model.reshape(-1, 3660))
    l1 = mask[None, :] * delta_y
    l1_loss = cd_wt * jnp.sum(l1) / l1.size
    total = corr_loss + entropy_loss + l1_loss + mat_loss
    return total, corr_loss, l1_loss, entropy_loss, mat_loss


if __name__ == "__main__":
    # Loss weights (constructor args); deform_wt is unused in forward().
    corr_wt, cd_wt, entropy_wt, deform_wt = 1.0, 5.0, 1e-4, 0.01
    mat_wt = 1.0

    # Deterministic mask buffer (ones with 10.0 at the given indices).
    mask = jnp.ones((3660,), jnp.float32).at[jnp.array(_MASK_IDX)].set(10.0)

    key = jax.random.PRNGKey(0)
    k1, k2, k3, k4, k5, k6 = jax.random.split(key, 6)
    assign_mat = jax.random.normal(k1, (BS, NPTS, NV), jnp.float32)
    deltas = 0.05 * jax.random.normal(k2, (BS, NV, 3), jnp.float32)
    prior = 0.2 * jax.random.normal(k3, (BS, NV, 3), jnp.float32)
    nocs = 0.5 * jax.random.uniform(k4, (BS, NPTS, 3), jnp.float32) - 0.25
    model = 0.2 * jax.random.normal(k5, (BS, NV, 3), jnp.float32)
    mat_gt = jax.nn.softmax(jax.random.normal(k6, (BS, NPTS, NV), jnp.float32), -1)

    out = loss4_forward(assign_mat, deltas, prior, nocs, model, mat_gt,
                        mat_wt, corr_wt, cd_wt, entropy_wt, mask)
    out = jax.block_until_ready(out)

    ref = loss4_reference(assign_mat, deltas, prior, nocs, model, mat_gt,
                          mat_wt, corr_wt, cd_wt, entropy_wt, mask)
    for o, r in zip(out, ref):
        assert jnp.allclose(o, r, rtol=2e-3, atol=2e-3), (o, r)

    print("KERNEL_OK")
</pallas_src>

<mosaic_0001>
module attributes {stable_mosaic.version = 11 : i64} {
  func.func @_loss4_kernel(%arg0: i32, %arg1: memref<1x64x1280xf32, #tpu.memory_space<vmem>>, %arg2: memref<1x64x1280xf32, #tpu.memory_space<vmem>>, %arg3: memref<1x64x128xf32, #tpu.memory_space<vmem>>, %arg4: memref<1x1280x128xf32, #tpu.memory_space<vmem>>, %arg5: memref<1x8x128xf32, #tpu.memory_space<vmem>>) attributes {dimension_semantics = [#tpu.dimension_semantics<parallel>], iteration_bounds = array<i64: 2>, scalar_prefetch = 0 : i64, scratch_operands = 0 : i64, tpu.core_type = #tpu.core_type<tc>, window_params = [{transform_indices = @transform_0, window_bounds = array<i64: 1, 64, 1280>}, {transform_indices = @transform_1, window_bounds = array<i64: 1, 64, 1280>}, {transform_indices = @transform_2, window_bounds = array<i64: 1, 64, 128>}, {transform_indices = @transform_3, window_bounds = array<i64: 1, 1280, 128>}, {transform_indices = @transform_4, window_bounds = array<i64: 1, 8, 128>}]} {
    %c0 = arith.constant 0 : index
    %c0_0 = arith.constant 0 : index
    %c0_1 = arith.constant 0 : index
    %0 = vector.load %arg1[%c0, %c0_0, %c0_1] : memref<1x64x1280xf32, #tpu.memory_space<vmem>>, vector<1x64x1280xf32>
    %1 = vector.shape_cast %0 : vector<1x64x1280xf32> to vector<64x1280xf32>
    %c0_2 = arith.constant 0 : index
    %c0_3 = arith.constant 0 : index
    %c0_4 = arith.constant 0 : index
    %2 = vector.load %arg2[%c0_2, %c0_3, %c0_4] : memref<1x64x1280xf32, #tpu.memory_space<vmem>>, vector<1x64x1280xf32>
    %3 = vector.shape_cast %2 : vector<1x64x1280xf32> to vector<64x1280xf32>
    %c0_5 = arith.constant 0 : index
    %c0_6 = arith.constant 0 : index
    %c0_7 = arith.constant 0 : index
    %4 = vector.load %arg3[%c0_5, %c0_6, %c0_7] : memref<1x64x128xf32, #tpu.memory_space<vmem>>, vector<1x64x128xf32>
    %5 = vector.shape_cast %4 : vector<1x64x128xf32> to vector<64x128xf32>
    %c0_8 = arith.constant 0 : index
    %c0_9 = arith.constant 0 : index
    %c0_10 = arith.constant 0 : index
    %6 = vector.load %arg4[%c0_8, %c0_9, %c0_10] : memref<1x1280x128xf32, #tpu.memory_space<vmem>>, vector<1x1280x128xf32>
    %7 = vector.shape_cast %6 : vector<1x1280x128xf32> to vector<1280x128xf32>
    %cst = arith.constant dense<0xFF800000> : vector<64xf32>
    %8 = vector.multi_reduction <maximumf>, %1, %cst [1] : vector<64x1280xf32> to vector<64xf32>
    %9 = vector.shape_cast %8 : vector<64xf32> to vector<64x1xf32>
    %10 = vector.broadcast %9 : vector<64x1xf32> to vector<64x1280xf32>
    %11 = arith.subf %1, %10 : vector<64x1280xf32>
    %12 = math.exp %11 : vector<64x1280xf32>
    %cst_11 = arith.constant dense<0.000000e+00> : vector<64x128xf32>
    %13 = tpu.matmul %12, %7, %cst_11 {dimension_numbers = #tpu.dot_dimension_numbers<[1], [0], [0], [1], [0, 0, 1, 1], [], []>} : vector<64x1280xf32>, vector<1280x128xf32>, vector<64x128xf32> -> vector<64x128xf32>
    %14 = vector.extract_strided_slice %13 {offsets = [0, 3], sizes = [64, 1], strides = [1, 1]} : vector<64x128xf32> to vector<64x1xf32>
    %15 = tpu.reciprocal %14 {approx = true} : vector<64x1xf32> -> vector<64x1xf32>
    %16 = vector.broadcast %15 : vector<64x1xf32> to vector<64x1280xf32>
    %17 = arith.mulf %12, %16 : vector<64x1280xf32>
    %18 = vector.broadcast %15 : vector<64x1xf32> to vector<64x128xf32>
    %19 = arith.mulf %13, %18 : vector<64x128xf32>
    %20 = arith.subf %19, %5 : vector<64x128xf32>
    %21 = math.absf %20 : vector<64x128xf32>
    %22 = arith.mulf %21, %21 : vector<64x128xf32>
    %cst_12 = arith.constant 5.000000e+01 : f32
    %23 = vector.broadcast %cst_12 : f32 to vector<64x128xf32>
    %24 = arith.mulf %22, %23 : vector<64x128xf32>
    %cst_13 = arith.constant 5.000000e-03 : f32
    %25 = vector.broadcast %cst_13 : f32 to vector<64x128xf32>
    %26 = arith.subf %21, %25 : vector<64x128xf32>
    %cst_14 = arith.constant 0.00999999977 : f32
    %27 = vector.broadcast %cst_14 : f32 to vector<64x128xf32>
    %28 = arith.cmpf ogt, %21, %27 : vector<64x128xf32>
    %29 = arith.select %28, %26, %24 : vector<64x128xi1>, vector<64x128xf32>
    %30 = tpu.iota {dimensions = array<i32: 1>} : vector<64x128xi32>
    %c3_i32 = arith.constant 3 : i32
    %31 = vector.broadcast %c3_i32 : i32 to vector<64x128xi32>
    %32 = arith.cmpi eq, %30, %31 : vector<64x128xi32>
    %cst_15 = arith.constant 0.000000e+00 : f32
    %33 = vector.broadcast %cst_15 : f32 to vector<64x128xf32>
    %34 = arith.select %32, %33, %29 : vector<64x128xi1>, vector<64x128xf32>
    %35 = vector.shape_cast %34 : vector<64x128xf32> to vector<1x64x128xf32>
    %cst_16 = arith.constant dense<0.000000e+00> : vector<1xf32>
    %36 = vector.multi_reduction <add>, %35, %cst_16 [1, 2] : vector<1x64x128xf32> to vector<1xf32>
    %37 = vector.shape_cast %36 : vector<1xf32> to vector<1x1x1xf32>
    %38 = vector.extract %37[0, 0, 0] : f32 from vector<1x1x1xf32>
    %39 = vector.broadcast %38 : f32 to vector<1x1xf32>
    %40 = arith.subf %17, %3 : vector<64x1280xf32>
    %41 = math.absf %40 : vector<64x1280xf32>
    %cst_17 = arith.constant dense<0.000000e+00> : vector<64x128xf32>
    %42 = tpu.matmul %41, %7, %cst_17 {dimension_numbers = #tpu.dot_dimension_numbers<[1], [0], [0], [1], [0, 0, 1, 1], [], []>} : vector<64x1280xf32>, vector<1280x128xf32>, vector<64x128xf32> -> vector<64x128xf32>
    %43 = vector.extract_strided_slice %42 {offsets = [0, 3], sizes = [64, 1], strides = [1, 1]} : vector<64x128xf32> to vector<64x1xf32>
    %44 = vector.shape_cast %43 : vector<64x1xf32> to vector<1x64x1xf32>
    %cst_18 = arith.constant dense<0.000000e+00> : vector<1xf32>
    %45 = vector.multi_reduction <add>, %44, %cst_18 [1, 2] : vector<1x64x1xf32> to vector<1xf32>
    %46 = vector.shape_cast %45 : vector<1xf32> to vector<1x1x1xf32>
    %47 = vector.extract %46[0, 0, 0] : f32 from vector<1x1x1xf32>
    %48 = vector.broadcast %47 : f32 to vector<1x1xf32>
    %49 = arith.mulf %12, %11 : vector<64x1280xf32>
    %cst_19 = arith.constant dense<0.000000e+00> : vector<64x128xf32>
    %50 = tpu.matmul %49, %7, %cst_19 {dimension_numbers = #tpu.dot_dimension_numbers<[1], [0], [0], [1], [0, 0, 1, 1], [], []>} : vector<64x1280xf32>, vector<1280x128xf32>, vector<64x128xf32> -> vector<64x128xf32>
    %51 = vector.extract_strided_slice %50 {offsets = [0, 3], sizes = [64, 1], strides = [1, 1]} : vector<64x128xf32> to vector<64x1xf32>
    %52 = math.log %14 : vector<64x1xf32>
    %53 = arith.mulf %51, %15 : vector<64x1xf32>
    %54 = arith.subf %52, %53 : vector<64x1xf32>
    %55 = vector.shape_cast %54 : vector<64x1xf32> to vector<1x64x1xf32>
    %cst_20 = arith.constant dense<0.000000e+00> : vector<1xf32>
    %56 = vector.multi_reduction <add>, %55, %cst_20 [1, 2] : vector<1x64x1xf32> to vector<1xf32>
    %57 = vector.shape_cast %56 : vector<1xf32> to vector<1x1x1xf32>
    %58 = vector.extract %57[0, 0, 0] : f32 from vector<1x1x1xf32>
    %59 = vector.broadcast %58 : f32 to vector<1x1xf32>
    %60 = tpu.iota {dimensions = array<i32: 0>} : vector<8x128xi32>
    %c0_i32 = arith.constant 0 : i32
    %61 = vector.broadcast %c0_i32 : i32 to vector<8x128xi32>
    %62 = arith.cmpi eq, %60, %61 : vector<8x128xi32>
    %cst_21 = arith.constant 0.000000e+00 : f32
    %63 = vector.shape_cast %48 : vector<1x1xf32> to vector<1x1xf32>
    %64 = vector.broadcast %63 : vector<1x1xf32> to vector<8x128xf32>
    %65 = vector.broadcast %cst_21 : f32 to vector<8x128xf32>
    %66 = arith.select %62, %64, %65 : vector<8x128xi1>, vector<8x128xf32>
    %c1_i32 = arith.constant 1 : i32
    %67 = vector.broadcast %c1_i32 : i32 to vector<8x128xi32>
    %68 = arith.cmpi eq, %60, %67 : vector<8x128xi32>
    %cst_22 = arith.constant 0.000000e+00 : f32
    %69 = vector.shape_cast %39 : vector<1x1xf32> to vector<1x1xf32>
    %70 = vector.broadcast %69 : vector<1x1xf32> to vector<8x128xf32>
    %71 = vector.broadcast %cst_22 : f32 to vector<8x128xf32>
    %72 = arith.select %68, %70, %71 : vector<8x128xi1>, vector<8x128xf32>
    %73 = arith.addf %66, %72 : vector<8x128xf32>
    %c2_i32 = arith.constant 2 : i32
    %74 = vector.broadcast %c2_i32 : i32 to vector<8x128xi32>
    %75 = arith.cmpi eq, %60, %74 : vector<8x128xi32>
    %cst_23 = arith.constant 0.000000e+00 : f32
    %76 = vector.shape_cast %59 : vector<1x1xf32> to vector<1x1xf32>
    %77 = vector.broadcast %76 : vector<1x1xf32> to vector<8x128xf32>
    %78 = vector.broadcast %cst_23 : f32 to vector<8x128xf32>
    %79 = arith.select %75, %77, %78 : vector<8x128xi1>, vector<8x128xf32>
    %80 = arith.addf %73, %79 : vector<8x128xf32>
    %81 = vector.shape_cast %80 : vector<8x128xf32> to vector<1x8x128xf32>
    %c0_24 = arith.constant 0 : index
    %c0_25 = arith.constant 0 : index
    %c0_26 = arith.constant 0 : index
    %82 = vector.load %arg5[%c0_24, %c0_25, %c0_26] : memref<1x8x128xf32, #tpu.memory_space<vmem>>, vector<1x8x128xf32>
    tpu.vector_store %arg5[%c0_24, %c0_25, %c0_26], %81 {strides = array<i32>} : memref<1x8x128xf32, #tpu.memory_space<vmem>>, vector<1x8x128xf32>,
    return
  }
  func.func @transform_0(%arg0: i32) -> (i32, i32, i32) {
    %c0_i32 = arith.constant 0 : i32
    %c0_i32_0 = arith.constant 0 : i32
    %c0_i32_1 = arith.constant 0 : i32
    return %arg0, %c0_i32, %c0_i32_0 : i32, i32, i32
  }
  func.func @transform_1(%arg0: i32) -> (i32, i32, i32) {
    %c0_i32 = arith.constant 0 : i32
    %c0_i32_0 = arith.constant 0 : i32
    %c0_i32_1 = arith.constant 0 : i32
    return %arg0, %c0_i32, %c0_i32_0 : i32, i32, i32
  }
  func.func @transform_2(%arg0: i32) -> (i32, i32, i32) {
    %c0_i32 = arith.constant 0 : i32
    %c0_i32_0 = arith.constant 0 : i32
    %c0_i32_1 = arith.constant 0 : i32
    return %arg0, %c0_i32, %c0_i32_0 : i32, i32, i32
  }
  func.func @transform_3(%arg0: i32) -> (i32, i32, i32) {
    %c0_i32 = arith.constant 0 : i32
    %c0_i32_0 = arith.constant 0 : i32
    %c0_i32_1 = arith.constant 0 : i32
    return %arg0, %c0_i32, %c0_i32_0 : i32, i32, i32
  }
  func.func @transform_4(%arg0: i32) -> (i32, i32, i32) {
    %c0_i32 = arith.constant 0 : i32
    %c0_i32_0 = arith.constant 0 : i32
    %c0_i32_1 = arith.constant 0 : i32
    return %arg0, %c0_i32, %c0_i32_0 : i32, i32, i32
  }
}

</mosaic_0001>

<bundles_post_ra>
// kernel: tpu_custom_call.1
= control target key start
LH: loop header
LB: loop body
LE: loop exit
PB: predicated region body
PF: predicated region fallthrough
CT: control target
= control target key end

     0   :  { %s6561_s0 = inlined_call_operand.hbm [shape: f32[2,64,1280], index: 0, kind: input, shape index: {}]   ;;  %s6562_s1 = inlined_call_operand.hbm [shape: f32[2,64,1280], index: 1, kind: input, shape index: {}]   ;;  %s6563_s2 = inlined_call_operand.hbm [shape: f32[2,64,128], index: 2, kind: input, shape index: {}]   ;;  %s6564_s3 = inlined_call_operand.hbm [shape: f32[2,1280,128], index: 3, kind: input, shape index: {}]   ;;  %s6565_s4 = inlined_call_operand.hbm [shape: f32[2,8,128], index: 4, kind: output, shape index: {}]  }
   0x1   :  { %6876 = sst [smem:[#allocation215_spill]] %s6562_s1 }
   0x2   :  { %9 = vsyncpa [#allocation3], 0 }
   0x3   :  { %11 = vsyncpa [#allocation3 + $0x1], 0 }
   0x4   :  { %12 = vsyncpa [#allocation6], 0 }
   0x5   :  { %14 = vsyncpa [#allocation6 + $0x1], 0 }
   0x6   :  { %15 = vsyncpa [#allocation9], 0 }
   0x7   :  { %17 = vsyncpa [#allocation9 + $0x1], 0 }
   0x8   :  { %18 = vsyncpa [#allocation4], 0 }
   0x9   :  { %20 = vsyncpa [#allocation4 + $0x1], 0  ;;  %s3840_s15 = smov 0   ;;  %s3842_s16 = smov 0  }
   0xa   :  { %s3844_s17 = smov 0   ;;  %s3846_s18 = smov 0  }
   0xb LB: > { %6877 = sst [smem:[#allocation15_spill]] %s3795_s15  ;;  %s3861_s19 = sadd.s32 4294967295, %s3807_s18   ;;  %s3807_s18 = sphi %s3846_s18, %s7375_s18   ;;  %s3803_s17 = sphi %s3844_s17, %s7377_s17   ;;  %s3799_s16 = sphi %s3842_s16, %s7379_s16   ;;  %s3795_s15 = sphi %s3840_s15, %s7378_s15  }
   0xc   : > { %6878 = sst [smem:[#allocation16_spill]] %s3803_s17  ;;  %s2997_s20 = sadd.s32 4294967294, %s3807_s18  }
   0xd   : > { %s3865_s21 = sadd.s32 1, %s3807_s18   ;;  %s33_s22 = sadd.s32 1, %s3803_s17 }
   0xe   : > { %6879 = sst [smem:[#allocation17_spill]] %s3865_s21  ;;  %s30_s23 = ssub.s32 %s3807_s18, %s3865_s21 }
   0xf   : > { %p40_p0 = scmp.ne.s32.totalorder %s3803_s17, %s3799_s16  ;;  %p31_p1 = scmp.eq.s32.totalorder %s30_s23, 0 }
  0x10   : > { %p41_p2 = scmp.eq.s32.totalorder %s3807_s18, 0  ;;  %p46_p3 = scmp.ne.s32.totalorder %s3799_s16, %s3795_s15 }
  0x11   : > { %p47_p4 = scmp.eq.s32.totalorder %s3861_s19, 0  ;;  %p148_p7 = scmp.eq.s32.totalorder %s3861_s19, 1 }
  0x12   : > { %s3877_s24 = scalar_select %p31_p1, %s3803_s17, %s33_s22  }
  0x13   : > { %p42_p5 = por %p41_p2, %p40_p0  ;;  %p3879_p6 = por %p47_p4, %p46_p3 }
  0x14   : > { %6880 = sst [smem:[#allocation18_spill]] %s3877_s24  ;;  %p154_p8 = scmp.eq.s32.totalorder %s2997_s20, 1 }
  0x15   : > { %p2999_p9 = scmp.ge.s32.totalorder %s3807_s18, 2  ;;  %p3095_p10 = scmp.lt.s32.totalorder %s3807_s18, 2 }
  0x16   : > { %p3886_p11 = por %p148_p7, %p40_p0  ;;  %p3890_p12 = por %p154_p8, %p46_p3 }
  0x17   : > { %s3895_s28 = sand.u32 1, %s3803_s17   ;;  %s3055_s29 = smul.u32 640, %s3807_s18 }
  0x18   : > { %s6883_s27 = scalar_select %p3890_p12, 1, 0 }
  0x19   : > { %s3054_s30 = smul.u32 640, %s3895_s28  ;;  %p3899_p13 = pnand %p3095_p10, %p42_p5 }
  0x1a   : > { %6884 = sst [smem:[#allocation19_spill]] %s6883_s27  ;;  %s196_s6 = sand.u32 1, %s3807_s18  }
  0x1b   : > { %s6886_s1 = sld [smem:[#allocation215_spill]]  ;;  %s200_s10 = scalar_lea.vmem [#allocation5], %s3054_s30 }
  0x1c   : > { %s208_s11 = sshll.u32 %s200_s10, 4  ;;  %p3006_p0 = scmp.ge.s32.totalorder %s3807_s18, 1  ;;  %s209_s11 = int_to_ptr.vmem [resolvable:$true] %s208_s11 }
  0x1d   : > { %s3912_s13 = scalar_lea.sflag [#allocation6], %s196_s6  ;;  %p3617_p2 = pneg %p3899_p13 }
  0x21   : > { %s205_s9 = scalar_lea.hbm %s6886_s1, %s3055_s29  ;;  %s3620_s7 = scalar_lea.hbm %s6886_s1, 1280 }
  0x22   : > { %s206_s12 = sshll.u32 %s205_s9, 4  ;;  %s207_s12 = int_to_ptr.hbm [resolvable:$true] %s206_s12 }
  0x23   : > { %s3613_s14 = sshra.s32 %s207_s12, 4  ;;  %s3614_s14 = int_to_ptr.hbm [resolvable:$true] %s3613_s14 }
  0x24   : > { %s3615_s20 = scalar_lea.hbm %s3614_s14, 640  ;;  %p3621_p5 = scmp.lt.s32.totalorder %s3614_s14, %s6886_s1 }
  0x25   : > { %p3616_p1 = scmp.ne.s32.totalorder %s3614_s14, %s3615_s20  ;;  %p3622_p7 = scmp.lt.s32.totalorder %s3620_s7, %s3615_s20 }
  0x27   : > { %p3618_p3 = pnand %p3617_p2, %p3616_p1  ;;  %p3623_p8 = por %p3622_p7, %p3621_p5 }
  0x29   : > { %p3619_p4 = pneg %p3618_p3 }
  0x2b   : > { %p3624_p10 = pnand %p3623_p8, %p3619_p4 }
  0x2d   : > { %3627 = shalt.err (!%p3624_p10)
}
  0x2e   : > { %s3809_s6 = smov 1280   ;;  %s3810_s10 = smov 80  }
  0x2f   : > { %3084 = dma.hbm_to_vmem [thread:$0]  (!%p3899_p13), %s207_s12, 10240, %s209_s11, %s3912_s13, %s3809_s6, %s3809_s6, %s3810_s10  }
  0x30   : > { %p260_p1 = scmp.lt.s32.totalorder %s3807_s18, 3  ;;  %s183_s22 = scalar_lea.hbm %s6561_s0, %s3055_s29 }
  0x31   : > { %s184_s7 = sshll.u32 %s183_s22, 4  ;;  %s178_s8 = scalar_lea.vmem [#allocation2], %s3054_s30  ;;  %s185_s7 = int_to_ptr.hbm [resolvable:$true] %s184_s7 }
  0x32   : > { %p3936_p3 = pnand %p3006_p0, %p260_p1  ;;  %s186_s9 = sshll.u32 %s178_s8, 4  ;;  %s187_s9 = int_to_ptr.vmem [resolvable:$true] %s186_s9 }
  0x33   : > { %s3002_s1 = sshll.u32 %s3895_s28, 6  ;;  %s175_s24 = scalar_lea.sflag [#allocation3], %s3895_s28 }
  0x34   : > { %s3643_s11 = sshra.s32 %s185_s7, 4  ;;  %s3650_s20 = scalar_lea.hbm %s6561_s0, 1280  ;;  %s3644_s11 = int_to_ptr.hbm [resolvable:$true] %s3643_s11 }
  0x35   : > { %s3645_s12 = scalar_lea.hbm %s3644_s11, 640  ;;  %p3651_p0 = scmp.lt.s32.totalorder %s3644_s11, %s6561_s0 }
  0x36   : > { %p3646_p4 = scmp.ne.s32.totalorder %s3644_s11, %s3645_s12  ;;  %p3652_p8 = scmp.lt.s32.totalorder %s3650_s20, %s3645_s12 }
  0x38   : > { %p3648_p5 = pnand %p3646_p4, %p3617_p2  ;;  %p3653_p10 = por %p3652_p8, %p3651_p0 }
  0x3a   : > { %p3649_p7 = pneg %p3648_p5 }
  0x3c   : > { %p3654_p1 = pnand %p3653_p10, %p3649_p7 }
  0x3e   : > { %3657 = shalt.err (!%p3654_p1)
}
  0x3f   : > { %3081 = dma.hbm_to_vmem [thread:$0]  (!%p3899_p13), %s185_s7, 10240, %s187_s9, %s175_s24, %s3809_s6, %s3809_s6, %s3810_s10  }
  0x40   : > { %s3021_s30 = sshll.u32 %s3807_s18, 6  ;;  %s222_s29 = scalar_lea.vmem [#allocation7], %s3002_s1 }
  0x41   : > { %s227_s27 = scalar_lea.hbm %s6563_s2, %s3021_s30  ;;  %s230_s14 = sshll.u32 %s222_s29, 4  ;;  %s231_s14 = int_to_ptr.vmem [resolvable:$true] %s230_s14 }
  0x42   : > { %s228_s15 = sshll.u32 %s227_s27, 4  ;;  %s3680_s6 = scalar_lea.hbm %s6563_s2, 128  ;;  %s229_s15 = int_to_ptr.hbm [resolvable:$true] %s228_s15 }
  0x43   : > { %s3673_s17 = sshra.s32 %s229_s15, 4  ;;  %s3674_s17 = int_to_ptr.hbm [resolvable:$true] %s3673_s17 }
  0x44   : > { %s3675_s11 = scalar_lea.hbm %s3674_s17, 64  ;;  %p3681_p0 = scmp.lt.s32.totalorder %s3674_s17, %s6563_s2 }
  0x45   : > { %p3676_p4 = scmp.ne.s32.totalorder %s3674_s17, %s3675_s11  ;;  %p3682_p8 = scmp.lt.s32.totalorder %s3680_s6, %s3675_s11 }
  0x47   : > { %p3678_p5 = pnand %p3676_p4, %p3617_p2  ;;  %p3683_p10 = por %p3682_p8, %p3681_p0 }
  0x49   : > { %p3679_p7 = pneg %p3678_p5 }
  0x4b   : > { %p3684_p1 = pnand %p3683_p10, %p3679_p7 }
  0x4d   : > { %3687 = shalt.err (!%p3684_p1)
}
  0x4e   : > { %s3811_s1 = smov 128   ;;  %s3812_s27 = smov 8  }
  0x4f   : > { %3087 = dma.hbm_to_vmem [thread:$0]  (!%p3899_p13), %s229_s15, 1024, %s231_s14, %s3912_s13, %s3811_s1, %s3811_s1, %s3812_s27  }
  0x50   : > { %s3058_s7 = smul.u32 1280, %s3895_s28  ;;  %s241_s11 = scalar_lea.sflag [#allocation9], %s3895_s28 }
  0x51   : > { %s3059_s9 = smul.u32 1280, %s3807_s18  ;;  %s3710_s14 = scalar_lea.hbm %s6564_s3, 2560 }
  0x52   : > { %s244_s8 = scalar_lea.vmem [#allocation8], %s3058_s7 }
  0x53   : > { %s249_s30 = scalar_lea.hbm %s6564_s3, %s3059_s9  ;;  %s252_s29 = sshll.u32 %s244_s8, 4  ;;  %s253_s29 = int_to_ptr.vmem [resolvable:$true] %s252_s29 }
  0x54   : > { %s250_s17 = sshll.u32 %s249_s30, 4  ;;  %s251_s17 = int_to_ptr.hbm [resolvable:$true] %s250_s17 }
  0x55   : > { %s3703_s12 = sshra.s32 %s251_s17, 4  ;;  %s3704_s12 = int_to_ptr.hbm [resolvable:$true] %s3703_s12 }
  0x56   : > { %s3705_s24 = scalar_lea.hbm %s3704_s12, 1280  ;;  %p3711_p0 = scmp.lt.s32.totalorder %s3704_s12, %s6564_s3 }
  0x57   : > { %p3706_p4 = scmp.ne.s32.totalorder %s3704_s12, %s3705_s24  ;;  %p3712_p8 = scmp.lt.s32.totalorder %s3710_s14, %s3705_s24 }
  0x59   : > { %p3708_p5 = pnand %p3706_p4, %p3617_p2  ;;  %p3713_p10 = por %p3712_p8, %p3711_p0 }
  0x5b   : > { %p3709_p7 = pneg %p3708_p5 }
  0x5d   : > { %p3714_p1 = pnand %p3713_p10, %p3709_p7 }
  0x5f   : > { %3717 = shalt.err (!%p3714_p1)
}
  0x60   : > { %3090 = dma.hbm_to_vmem [thread:$0]  (!%p3899_p13), %s251_s17, 20480, %s253_s29, %s241_s11, %s3811_s1, %s3811_s1, %s3812_s27  }
  0x61   : > { %264 = sbr.rel (%p3936_p3) target bundleno = 1418 (0x58a), region = 36 }
  0x66   : > { %s3991_s28 = sand.u32 1, %s3799_s16  }
  0x67   : > { %s3060_s21 = smul.u32 640, %s3991_s28  ;;  %s267_s7 = scalar_lea.sflag [#allocation3], %s3991_s28 }
  0x69   : > { %s3995_s9 = scalar_lea.vmem [#allocation2], %s3060_s21 }
  0x6a   : > { %3778 = dma.done.wait (%p3879_p6), %s267_s7, 10240  }
  0x6b   : > { %3780 = vsyncadd (%p3879_p6), %s267_s7, 4294957056  ;;  %s276_s5 = sand.u32 1, %s3861_s19   ;;  %s4002_s1 = scalar_lea.vmem [#allocation5], %s3060_s21 }
  0x6c   : > { %s277_s23 = scalar_lea.sflag [#allocation6], %s276_s5 }
  0x6d   : > { %3782 = dma.done.wait (%p3879_p6), %s277_s23, 11264  }
  0x6e   : > { %3784 = vsyncadd (%p3879_p6), %s277_s23, 4294956032  ;;  %s3007_s27 = sshll.u32 %s3991_s28, 6  ;;  %s3061_s20 = smul.u32 1280, %s3991_s28 }
  0x6f   : > { %s4010_s22 = scalar_lea.vmem [#allocation7], %s3007_s27  ;;  %s297_s30 = scalar_lea.sflag [#allocation9], %s3991_s28 }
  0x70   : > { %s4013_s8 = scalar_lea.vmem [#allocation8], %s3061_s20 }
  0x71   : > { %3786 = dma.done.wait (%p3879_p6), %s297_s30, 20480  }
  0x72   : > { %3788 = vsyncadd (%p3879_p6), %s297_s30, 4294946816  ;;  %v4020_v0 = vld [vmem:[%s3995_s9 + $0x140] sm:$0xff]  ;;  %v4023_v1 = vld [vmem:[%s3995_s9 + $0x148] sm:$0xff]  ;;  %s3814_s25 = smov 125   ;;  %vm2228_vm9 = vcmask 7168   ;;  %s3008_s11 = sshll.u32 %s3991_s28, 3 }
  0x73   : > { %v383_v2 = vld [vmem:[%s3995_s9 + $0x150] sm:$0xff]  ;;  %v713_v3 = vmax.f32 %v4020_v0, %v4023_v1  ;;  %v384_v4 = vld [vmem:[%s3995_s9 + $0x158] sm:$0xff]  ;;  %v4030_v6 = vld [vmem:[%s3995_s9] sm:$0xff]  ;;  %s3018_s12 = sshll.u32 %s3861_s19, 3  ;;  %s340_s14 = scalar_lea.vmem [#allocation10], %s3008_s11 }
  0x74   : > { %v4033_v7 = vld [vmem:[%s3995_s9 + $0x8] sm:$0xff]  ;;  %v385_v8 = vld [vmem:[%s3995_s9 + $0x160] sm:$0xff]  ;;  %v4037_v9 = vld [vmem:[%s3995_s9 + $0x10] sm:$0xff]  ;;  %s2856_s13 = scalar_lea.hbm %s6565_s4, %s3018_s12  ;;  %s2858_s6 = sshll.u32 %s340_s14, 4  ;;  %s2859_s6 = int_to_ptr.vmem [resolvable:$true] %s2858_s6 }
  0x75   : > { %v714_v5 = vmax.f32 %v713_v3, %v383_v2  ;;  %v669_v10 = vmax.f32 %v4030_v6, %v4033_v7  ;;  %v4042_v12 = vld [vmem:[%s3995_s9 + $0x18] sm:$0xff]  ;;  %v386_v13 = vld [vmem:[%s3995_s9 + $0x168] sm:$0xff]  ;;  %v4047_v15 = vld [vmem:[%s3995_s9 + $0x50] sm:$0xff]  ;;  %s2860_s21 = sshll.u32 %s2856_s13, 4  ;;  %s2846_s19 = scalar_lea.sflag [#allocation4], %s3991_s28  ;;  %s2861_s21 = int_to_ptr.hbm [resolvable:$true] %s2860_s21 }
  0x76   : > { %v4050_v17 = vld [vmem:[%s3995_s9 + $0x20] sm:$0xff]  ;;  %v4053_v18 = vld [vmem:[%s3995_s9 + $0x58] sm:$0xff]  ;;  %v387_v20 = vld [vmem:[%s3995_s9 + $0x170] sm:$0xff]  ;;  %s3747_s7 = sshra.s32 %s2861_s21, 4  ;;  %s3748_s7 = int_to_ptr.hbm [resolvable:$true] %s3747_s7 }
  0x77   : > { %v715_v11 = vmax.f32 %v714_v5, %v384_v4  ;;  %v670_v14 = vmax.f32 %v669_v10, %v4037_v9  ;;  %v4056_v19 = vld [vmem:[%s3995_s9 + $0x60] sm:$0xff]  ;;  %v680_v22 = vmax.f32 %v4047_v15, %v4053_v18  ;;  %v388_v23 = vld [vmem:[%s3995_s9 + $0x178] sm:$0xff]  ;;  %v4064_v25 = vld [vmem:[%s3995_s9 + $0x28] sm:$0xff]  ;;  %p3754_p3 = scmp.lt.s32.totalorder %s3748_s7, %s6565_s4 }
  0x78   : > { %v4067_v26 = vld [vmem:[%s3995_s9 + $0x68] sm:$0xff]  ;;  %v4072_v29 = vld [vmem:[%s3995_s9 + $0x190] sm:$0xff]  ;;  %v4075_v30 = vld [vmem:[%s3995_s9 + $0x198] sm:$0xff] }
  0x79   : > { %v716_v16 = vmax.f32 %v715_v11, %v385_v8  ;;  %v671_v21 = vmax.f32 %v670_v14, %v4042_v12  ;;  %v681_v28 = vmax.f32 %v680_v22, %v4056_v19  ;;  %v393_v31 = vld [vmem:[%s3995_s9 + $0x1a0] sm:$0xff]  ;;  %v347_v34 = vld [vmem:[%s3995_s9 + $0x30] sm:$0xff]  ;;  %v724_v36 = vmax.f32 %v4072_v29, %v4075_v30  ;;  %v390_v37 = vld [vmem:[%s3995_s9 + $0x188] sm:$0xff] }
  0x7a   : > { %v389_v32 = vld [vmem:[%s3995_s9 + $0x180] sm:$0xff]  ;;  %v4081_v35 = vld [vmem:[%s3995_s9 + $0x70] sm:$0xff]  ;;  %v348_v38 = vld [vmem:[%s3995_s9 + $0x38] sm:$0xff] }
  0x7b   : > { %v717_v24 = vmax.f32 %v716_v16, %v386_v13  ;;  %v672_v27 = vmax.f32 %v671_v21, %v4050_v17  ;;  %v682_v40 = vmax.f32 %v681_v28, %v4067_v26  ;;  %v394_v41 = vld [vmem:[%s3995_s9 + $0x1a8] sm:$0xff]  ;;  %v4091_v43 = vld [vmem:[%s3995_s9 + $0x78] sm:$0xff]  ;;  %v725_v44 = vmax.f32 %v724_v36, %v393_v31  ;;  %v4094_v45 = vld [vmem:[%s3995_s9 + $0x1e0] sm:$0xff] }
  0x7c   : > { %v4097_v46 = vld [vmem:[%s3995_s9 + $0x1e8] sm:$0xff]  ;;  %v349_v47 = vld [vmem:[%s3995_s9 + $0x40] sm:$0xff]  ;;  %v395_v50 = vld [vmem:[%s3995_s9 + $0x1b0] sm:$0xff] }
  0x7d   : > { %v718_v33 = vmax.f32 %v717_v24, %v387_v20  ;;  %v673_v39 = vmax.f32 %v672_v27, %v4064_v25  ;;  %v683_v49 = vmax.f32 %v682_v40, %v4081_v35  ;;  %v403_v51 = vld [vmem:[%s3995_s9 + $0x1f0] sm:$0xff]  ;;  %v735_v52 = vmax.f32 %v4094_v45, %v4097_v46  ;;  %v350_v54 = vld [vmem:[%s3995_s9 + $0x48] sm:$0xff]  ;;  %v357_v55 = vld [vmem:[%s3995_s9 + $0x80] sm:$0xff] }
  0x7e   : > { %v726_v56 = vmax.f32 %v725_v44, %v394_v41  ;;  %v404_v57 = vld [vmem:[%s3995_s9 + $0x1f8] sm:$0xff]  ;;  %v358_v59 = vld [vmem:[%s3995_s9 + $0x88] sm:$0xff]  ;;  %v4112_v63 = vld [vmem:[%s3995_s9 + $0x230] sm:$0xff] }
  0x7f   : > { %v719_v42 = vmax.f32 %v718_v33, %v388_v23  ;;  %v674_v48 = vmax.f32 %v673_v39, %v347_v34  ;;  %v684_v60 = vmax.f32 %v683_v49, %v4091_v43  ;;  %v396_v61 = vld [vmem:[%s3995_s9 + $0x1b8] sm:$0xff]  ;;  %v736_v62 = vmax.f32 %v735_v52, %v403_v51  ;;  %v405_v4 = vld [vmem:[%s3995_s9 + $0x200] sm:$0xff]  ;;  %v359_v11 = vld [vmem:[%s3995_s9 + $0x90] sm:$0xff] }
  0x80   : > { %v727_v3 = vmax.f32 %v726_v56, %v395_v50  ;;  %v4116_v5 = vld [vmem:[%s3995_s9 + $0x238] sm:$0xff]  ;;  %v413_v8 = vld [vmem:[%s3995_s9 + $0x240] sm:$0xff]  ;;  %v398_v22 = vld [vmem:[%s3995_s9 + $0x1c8] sm:$0xff] }
  0x81   : > { %v720_v53 = vmax.f32 %v719_v42, %v389_v32  ;;  %v675_v58 = vmax.f32 %v674_v48, %v348_v38  ;;  %v685_v13 = vmax.f32 %v684_v60, %v357_v55  ;;  %v397_v14 = vld [vmem:[%s3995_s9 + $0x1c0] sm:$0xff]  ;;  %v737_v16 = vmax.f32 %v736_v62, %v404_v57  ;;  %v360_v21 = vld [vmem:[%s3995_s9 + $0x98] sm:$0xff]  ;;  %v406_v24 = vld [vmem:[%s3995_s9 + $0x208] sm:$0xff] }
  0x82   : > { %v746_v20 = vmax.f32 %v4112_v63, %v4116_v5  ;;  %v728_v23 = vmax.f32 %v727_v3, %v396_v61  ;;  %v414_v27 = vld [vmem:[%s3995_s9 + $0x248] sm:$0xff]  ;;  %v4128_v34 = vld [vmem:[%s3995_s9 + $0xa0] sm:$0xff]  ;;  %v399_v38 = vld [vmem:[%s3995_s9 + $0x1d0] sm:$0xff] }
  0x83   : > { %v721_v2 = vmax.f32 %v720_v53, %v390_v37  ;;  %v676_v10 = vmax.f32 %v675_v58, %v349_v47  ;;  %v686_v31 = vmax.f32 %v685_v13, %v358_v59  ;;  %v738_v32 = vmax.f32 %v737_v16, %v405_v4  ;;  %v4131_v36 = vld [vmem:[%s3995_s9 + $0xa8] sm:$0xff]  ;;  %v4134_v37 = vld [vmem:[%s3995_s9 + $0xb0] sm:$0xff]  ;;  %v400_v47 = vld [vmem:[%s3995_s9 + $0x1d8] sm:$0xff] }
  0x84   : > { %v747_v33 = vmax.f32 %v746_v20, %v413_v8  ;;  %v729_v39 = vmax.f32 %v728_v23, %v397_v14  ;;  %v407_v40 = vld [vmem:[%s3995_s9 + $0x210] sm:$0xff]  ;;  %v691_v42 = vmax.f32 %v4128_v34, %v4131_v36  ;;  %v408_v48 = vld [vmem:[%s3995_s9 + $0x218] sm:$0xff]  ;;  %v409_v58 = vld [vmem:[%s3995_s9 + $0x220] sm:$0xff] }
  0x85   : > { %722 = vmax.xlane.f32.xlu0 %v721_v2  ;;  %v677_v28 = vmax.f32 %v676_v10, %v350_v54  ;;  %v415_v41 = vld [vmem:[%s3995_s9 + $0x250] sm:$0xff]  ;;  %v687_v44 = vmax.f32 %v686_v31, %v359_v11  ;;  %v739_v49 = vmax.f32 %v738_v32, %v406_v24  ;;  %v4144_v51 = vld [vmem:[%s3995_s9 + $0xb8] sm:$0xff]  ;;  %v4156_v61 = vld [vmem:[%s3995_s9 + $0xc0] sm:$0xff] }
  0x86   : > { %v748_v50 = vmax.f32 %v747_v33, %v414_v27  ;;  %v730_v52 = vmax.f32 %v729_v39, %v398_v22  ;;  %v416_v53 = vld [vmem:[%s3995_s9 + $0x258] sm:$0xff]  ;;  %v692_v54 = vmax.f32 %v691_v42, %v4134_v37  ;;  %v4149_v55 = vld [vmem:[%s3995_s9 + $0xf0] sm:$0xff]  ;;  %v4159_v62 = vld [vmem:[%s3995_s9 + $0x100] sm:$0xff] }
  0x87   : > { %678 = vmax.xlane.f32.xlu1 %v677_v28  ;;  %v4152_v56 = vld [vmem:[%s3995_s9 + $0xf8] sm:$0xff]  ;;  %v688_v57 = vmax.f32 %v687_v44, %v360_v21  ;;  %v740_v59 = vmax.f32 %v739_v49, %v407_v40  ;;  %v410_v4 = vld [vmem:[%s3995_s9 + $0x228] sm:$0xff]  ;;  %v417_v8 = vld [vmem:[%s3995_s9 + $0x260] sm:$0xff] }
  0x88   : > { %v749_v60 = vmax.f32 %v748_v50, %v415_v41  ;;  %v702_v2 = vmax.f32 %v4149_v55, %v4152_v56  ;;  %v731_v3 = vmax.f32 %v730_v52, %v399_v38  ;;  %v418_v10 = vld [vmem:[%s3995_s9 + $0x268] sm:$0xff]  ;;  %v693_v11 = vmax.f32 %v692_v54, %v4144_v51  ;;  %v4174_v21 = vld [vmem:[%s3995_s9 + $0x110] sm:$0xff]  ;;  %v524_v23 = vld [vmem:[%s4013_s8 + $0x78] sm:$0xff] }
  0x89   : > { %v4168_v13 = vld [vmem:[%s3995_s9 + $0x108] sm:$0xff]  ;;  %689 = vmax.xlane.f32.xlu2 %v688_v57  ;;  %v741_v14 = vmax.f32 %v740_v59, %v408_v48  ;;  %997 = vmatpush.msra.mxu0 %v524_v23  ;;  %v540_v28 = vld [vmem:[%s4013_s8 + $0xf8] sm:$0xff]  ;;  %v523_v31 = vld [vmem:[%s4013_s8 + $0x70] sm:$0xff] }
  0x8a   : > { %v750_v16 = vmax.f32 %v749_v60, %v416_v53  ;;  %v4171_v20 = vld [vmem:[%s3995_s9 + $0xc8] sm:$0xff]  ;;  %v703_v22 = vmax.f32 %v702_v2, %v4159_v62  ;;  %v732_v24 = vmax.f32 %v731_v3, %v400_v47  ;;  %v694_v27 = vmax.f32 %v693_v11, %v4156_v61  ;;  %3022 = vmatpush.msra.mxu2 %v524_v23  ;;  %v539_v32 = vld [vmem:[%s4013_s8 + $0xf0] sm:$0xff]  ;;  %v4188_v47 = vld [vmem:[%s3995_s9 + $0x118] sm:$0xff] }
  0x8b   : > { %v742_v33 = vmax.f32 %v741_v14, %v409_v58  ;;  %v367_v39 = vld [vmem:[%s3995_s9 + $0xd0] sm:$0xff]  ;;  %1038 = vmatpush.msra.mxu1 %v540_v28  ;;  %3038 = vmatpush.msra.mxu3 %v540_v28  ;;  %v522_v41 = vld [vmem:[%s4013_s8 + $0x68] sm:$0xff]  ;;  %v368_v50 = vld [vmem:[%s3995_s9 + $0xd8] sm:$0xff] }
  0x8c   : > { %v751_v38 = vmax.f32 %v750_v16, %v417_v8  ;;  %v704_v40 = vmax.f32 %v703_v22, %v4168_v13  ;;  %v419_v42 = vld [vmem:[%s3995_s9 + $0x270] sm:$0xff]  ;;  %v695_v44 = vmax.f32 %v694_v27, %v4171_v20  ;;  %998 = vmatpush.msra.mxu0 %v523_v31  ;;  %3023 = vmatpush.msra.mxu2 %v523_v31  ;;  %v538_v53 = vld [vmem:[%s4013_s8 + $0xe8] sm:$0xff]  ;;  %v420_v54 = vld [vmem:[%s3995_s9 + $0x278] sm:$0xff] }
  0x8d   : > { %733 = vmax.xlane.f32.xlu0 %v732_v24  ;;  %v743_v48 = vmax.f32 %v742_v33, %v410_v4  ;;  %1039 = vmatpush.msra.mxu1 %v539_v32  ;;  %v377_v58 = vld [vmem:[%s3995_s9 + $0x120] sm:$0xff]  ;;  %v520_v11 = vld [vmem:[%s4013_s8 + $0x58] sm:$0xff]  ;;  %v370_v16 = vld [vmem:[%s3995_s9 + $0xe8] sm:$0xff] }
  0x8e   : > { %v752_v49 = vmax.f32 %v751_v38, %v418_v10  ;;  %v705_v52 = vmax.f32 %v704_v40, %v4174_v21  ;;  %v696_v57 = vmax.f32 %v695_v44, %v367_v39  ;;  %3039 = vmatpush.msra.mxu3 %v539_v32  ;;  %999 = vmatpush.msra.mxu0 %v522_v41  ;;  %v521_v59 = vld [vmem:[%s4013_s8 + $0x60] sm:$0xff]  ;;  %v378_v10 = vld [vmem:[%s3995_s9 + $0x128] sm:$0xff]  ;;  %v536_v23 = vld [vmem:[%s4013_s8 + $0xd8] sm:$0xff] }
  0x8f   : > { %744 = vmax.xlane.f32.xlu1 %v743_v48  ;;  %v369_v2 = vld [vmem:[%s3995_s9 + $0xe0] sm:$0xff]  ;;  %3024 = vmatpush.msra.mxu2 %v522_v41  ;;  %v379_v27 = vld [vmem:[%s3995_s9 + $0x130] sm:$0xff]  ;;  %v380_v33 = vld [vmem:[%s3995_s9 + $0x138] sm:$0xff] }
  0x90   : > { %v753_v60 = vmax.f32 %v752_v49, %v419_v42  ;;  %v706_v3 = vmax.f32 %v705_v52, %v4188_v47  ;;  %v537_v4 = vld [vmem:[%s4013_s8 + $0xe0] sm:$0xff]  ;;  %v697_v8 = vmax.f32 %v696_v57, %v368_v50  ;;  %1040 = vmatpush.msra.mxu1 %v538_v53  ;;  %3040 = vmatpush.msra.mxu3 %v538_v53  ;;  %v519_v28 = vld [vmem:[%s4013_s8 + $0x50] sm:$0xff]  ;;  %v518_v40 = vld [vmem:[%s4013_s8 + $0x48] sm:$0xff] }
  0x91   : > { %1000 = vmatpush.msra.mxu0 %v521_v59  ;;  %3025 = vmatpush.msra.mxu2 %v521_v59  ;;  %v535_v38 = vld [vmem:[%s4013_s8 + $0xd0] sm:$0xff]  ;;  %v534_v41 = vld [vmem:[%s4013_s8 + $0xc8] sm:$0xff]  ;;  %v517_v44 = vld [vmem:[%s4013_s8 + $0x40] sm:$0xff] }
  0x92   : > { %v754_v14 = vmax.f32 %v753_v60, %v420_v54  ;;  %v707_v22 = vmax.f32 %v706_v3, %v377_v58  ;;  %v698_v24 = vmax.f32 %v697_v8, %v369_v2  ;;  %1041 = vmatpush.msra.mxu1 %v537_v4  ;;  %3041 = vmatpush.msra.mxu3 %v537_v4  ;;  %v533_v48 = vld [vmem:[%s4013_s8 + $0xc0] sm:$0xff]  ;;  %v516_v49 = vld [vmem:[%s4013_s8 + $0x38] sm:$0xff]  ;;  %v515_v52 = vld [vmem:[%s4013_s8 + $0x30] sm:$0xff] }
  0x93   : > { %1001 = vmatpush.msra.mxu0 %v520_v11  ;;  %3026 = vmatpush.msra.mxu2 %v520_v11  ;;  %v532_v50 = vld [vmem:[%s4013_s8 + $0xb8] sm:$0xff]  ;;  %v531_v53 = vld [vmem:[%s4013_s8 + $0xb0] sm:$0xff]  ;;  %v514_v54 = vld [vmem:[%s4013_s8 + $0x28] sm:$0xff] }
  0x94   : > { %755 = vmax.xlane.f32.xlu2 %v754_v14  ;;  %v708_v31 = vmax.f32 %v707_v22, %v378_v10  ;;  %v699_v32 = vmax.f32 %v698_v24, %v370_v16  ;;  %1042 = vmatpush.msra.mxu1 %v536_v23  ;;  %v530_v57 = vld [vmem:[%s4013_s8 + $0xa8] sm:$0xff]  ;;  %v513_v58 = vld [vmem:[%s4013_s8 + $0x20] sm:$0xff]  ;;  %v512_v60 = vld [vmem:[%s4013_s8 + $0x18] sm:$0xff] }
  0x95   : > { %3042 = vmatpush.msra.mxu3 %v536_v23  ;;  %1002 = vmatpush.msra.mxu0 %v519_v28  ;;  %v529_v59 = vld [vmem:[%s4013_s8 + $0xa0] sm:$0xff]  ;;  %v528_v2 = vld [vmem:[%s4013_s8 + $0x98] sm:$0xff]  ;;  %v511_v3 = vld [vmem:[%s4013_s8 + $0x10] sm:$0xff] }
  0x96   : > { %v709_v39 = vmax.f32 %v708_v31, %v379_v27  ;;  %700 = vmax.xlane.f32.xlu0 %v699_v32  ;;  %3027 = vmatpush.msra.mxu2 %v519_v28  ;;  %v527_v4 = vld [vmem:[%s4013_s8 + $0x90] sm:$0xff]  ;;  %v510_v8 = vld [vmem:[%s4013_s8 + $0x8] sm:$0xff]  ;;  %v509_v11 = vld [vmem:[%s4013_s8] sm:$0xff] }
  0x97   : > { %1043 = vmatpush.msra.mxu1 %v535_v38  ;;  %3043 = vmatpush.msra.mxu3 %v535_v38  ;;  %v526_v10 = vld [vmem:[%s4013_s8 + $0x88] sm:$0xff]  ;;  %v525_v14 = vld [vmem:[%s4013_s8 + $0x80] sm:$0xff]  ;;  %v4228_v16 = vld [vmem:[%s4013_s8 + $0x178] sm:$0xff] }
  0x98   : > { %v710_v42 = vmax.f32 %v709_v39, %v380_v33  ;;  %1003 = vmatpush.msra.mxu0 %v518_v40  ;;  %3028 = vmatpush.msra.mxu2 %v518_v40  ;;  %v4231_v22 = vld [vmem:[%s4013_s8 + $0x1f8] sm:$0xff]  ;;  %v4238_v27 = vld [vmem:[%s4013_s8 + $0x170] sm:$0xff]  ;;  %v4246_v33 = vld [vmem:[%s4013_s8 + $0x168] sm:$0xff] }
  0x99   : > { %1044 = vmatpush.msra.mxu1 %v534_v41  ;;  %3044 = vmatpush.msra.mxu3 %v534_v41  ;;  %v588_v23 = vld [vmem:[%s4013_s8 + $0x278] sm:$0xff]  ;;  %v4241_v28 = vld [vmem:[%s4013_s8 + $0x1f0] sm:$0xff]  ;;  %v4251_v38 = vld [vmem:[%s4013_s8 + $0x1e8] sm:$0xff] }
  0x9a   : > { %711 = vmax.xlane.f32.xlu1 %v710_v42  ;;  %1004 = vmatpush.msra.mxu0 %v517_v44  ;;  %v604_v24 = vld [vmem:[%s4013_s8 + $0x2f8] sm:$0xff]  ;;  %v587_v31 = vld [vmem:[%s4013_s8 + $0x270] sm:$0xff]  ;;  %v586_v39 = vld [vmem:[%s4013_s8 + $0x268] sm:$0xff] }
  0x9b   : > { %3029 = vmatpush.msra.mxu2 %v517_v44  ;;  %1045 = vmatpush.msra.mxu1 %v533_v48  ;;  %v603_v32 = vld [vmem:[%s4013_s8 + $0x2f0] sm:$0xff]  ;;  %v602_v40 = vld [vmem:[%s4013_s8 + $0x2e8] sm:$0xff]  ;;  %v4256_v41 = vld [vmem:[%s4013_s8 + $0x160] sm:$0xff] }
  0x9c   : > { %3045 = vmatpush.msra.mxu3 %v533_v48  ;;  %1005 = vmatpush.msra.mxu0 %v516_v49  ;;  %v4259_v42 = vld [vmem:[%s4013_s8 + $0x1e0] sm:$0xff] }
  0x9d   : > { %3030 = vmatpush.msra.mxu2 %v516_v49  ;;  %1046 = vmatpush.msra.mxu1 %v532_v50  ;;  %v585_v44 = vld [vmem:[%s4013_s8 + $0x260] sm:$0xff]  ;;  %v4268_v49 = vld [vmem:[%s4013_s8 + $0x158] sm:$0xff] }
  0x9e   : > { %3046 = vmatpush.msra.mxu3 %v532_v50  ;;  %1006 = vmatpush.msra.mxu0 %v515_v52  ;;  %v601_v48 = vld [vmem:[%s4013_s8 + $0x2e0] sm:$0xff]  ;;  %v4271_v50 = vld [vmem:[%s4013_s8 + $0x1d8] sm:$0xff] }
  0x9f   : > { %3031 = vmatpush.msra.mxu2 %v515_v52  ;;  %1047 = vmatpush.msra.mxu1 %v531_v53  ;;  %v584_v52 = vld [vmem:[%s4013_s8 + $0x258] sm:$0xff] }
  0xa0   : > { %3047 = vmatpush.msra.mxu3 %v531_v53  ;;  %1007 = vmatpush.msra.mxu0 %v514_v54  ;;  %v600_v53 = vld [vmem:[%s4013_s8 + $0x2d8] sm:$0xff] }
  0xa1   : > { %3032 = vmatpush.msra.mxu2 %v514_v54  ;;  %1048 = vmatpush.msra.mxu1 %v530_v57  ;;  %v4278_v54 = vld [vmem:[%s4013_s8 + $0x150] sm:$0xff] }
  0xa2   : > { %3048 = vmatpush.msra.mxu3 %v530_v57  ;;  %1008 = vmatpush.msra.mxu0 %v513_v58  ;;  %v4281_v57 = vld [vmem:[%s4013_s8 + $0x1d0] sm:$0xff] }
  0xa3   : > { %3033 = vmatpush.msra.mxu2 %v513_v58  ;;  %1049 = vmatpush.msra.mxu1 %v529_v59  ;;  %v583_v58 = vld [vmem:[%s4013_s8 + $0x250] sm:$0xff] }
  0xa4   : > { %3049 = vmatpush.msra.mxu3 %v529_v59  ;;  %1009 = vmatpush.msra.mxu0 %v512_v60  ;;  %v599_v59 = vld [vmem:[%s4013_s8 + $0x2d0] sm:$0xff] }
  0xa5   : > { %3034 = vmatpush.msra.mxu2 %v512_v60  ;;  %1050 = vmatpush.msra.mxu1 %v528_v2  ;;  %v4286_v60 = vld [vmem:[%s4013_s8 + $0x148] sm:$0xff] }
  0xa6   : > { %3050 = vmatpush.msra.mxu3 %v528_v2  ;;  %1010 = vmatpush.msra.mxu0 %v511_v3  ;;  %v4291_v2 = vld [vmem:[%s4013_s8 + $0x1c8] sm:$0xff] }
  0xa7   : > { %3035 = vmatpush.msra.mxu2 %v511_v3  ;;  %1051 = vmatpush.msra.mxu1 %v527_v4  ;;  %v582_v3 = vld [vmem:[%s4013_s8 + $0x248] sm:$0xff] }
  0xa8   : > { %3051 = vmatpush.msra.mxu3 %v527_v4  ;;  %1011 = vmatpush.msra.mxu0 %v510_v8  ;;  %v598_v4 = vld [vmem:[%s4013_s8 + $0x2c8] sm:$0xff] }
  0xa9   : > { %3036 = vmatpush.msra.mxu2 %v510_v8  ;;  %1052 = vmatpush.msra.mxu1 %v526_v10  ;;  %v4296_v8 = vld [vmem:[%s4013_s8 + $0x140] sm:$0xff] }
  0xaa   : > { %3052 = vmatpush.msra.mxu3 %v526_v10  ;;  %1012 = vmatpush.msra.mxu0 %v509_v11  ;;  %v4299_v10 = vld [vmem:[%s4013_s8 + $0x1c0] sm:$0xff] }
  0xab   : > { %3037 = vmatpush.msra.mxu2 %v509_v11  ;;  %1053 = vmatpush.msra.mxu1 %v525_v14  ;;  %v581_v11 = vld [vmem:[%s4013_s8 + $0x240] sm:$0xff] }
  0xac   : > { %3053 = vmatpush.msra.mxu3 %v525_v14  ;;  %1161 = vmatpush.msrb.mxu0 %v588_v23  ;;  %v597_v14 = vld [vmem:[%s4013_s8 + $0x2c0] sm:$0xff] }
  0xad   : > { %1079 = vmatpush.msrb.mxu2 %v4228_v16  ;;  %1202 = vmatpush.msrb.mxu1 %v604_v24 }
  0xae   : > { %1120 = vmatpush.msrb.mxu3 %v4231_v22  ;;  %1162 = vmatpush.msrb.mxu0 %v587_v31 }
  0xaf   : > { %1080 = vmatpush.msrb.mxu2 %v4238_v27  ;;  %1203 = vmatpush.msrb.mxu1 %v603_v32  ;;  %v4318_v32 = vld [vmem:[%s4013_s8 + $0x138] sm:$0xff] }
  0xb0   : > { %1121 = vmatpush.msrb.mxu3 %v4241_v28  ;;  %1163 = vmatpush.msrb.mxu0 %v586_v39  ;;  %v4321_v39 = vld [vmem:[%s4013_s8 + $0x1b8] sm:$0xff] }
  0xb1   : > { %1081 = vmatpush.msrb.mxu2 %v4246_v33  ;;  %1204 = vmatpush.msrb.mxu1 %v602_v40  ;;  %v580_v40 = vld [vmem:[%s4013_s8 + $0x238] sm:$0xff] }
  0xb2   : > { %1122 = vmatpush.msrb.mxu3 %v4251_v38  ;;  %1164 = vmatpush.msrb.mxu0 %v585_v44  ;;  %v4328_v44 = vld [vmem:[%s4013_s8 + $0x130] sm:$0xff] }
  0xb3   : > { %1082 = vmatpush.msrb.mxu2 %v4256_v41  ;;  %1205 = vmatpush.msrb.mxu1 %v601_v48 }
  0xb4   : > { %1123 = vmatpush.msrb.mxu3 %v4259_v42  ;;  %1165 = vmatpush.msrb.mxu0 %v584_v52 }
  0xb5   : > { %1083 = vmatpush.msrb.mxu2 %v4268_v49  ;;  %1206 = vmatpush.msrb.mxu1 %v600_v53 }
  0xb6   : > { %1124 = vmatpush.msrb.mxu3 %v4271_v50  ;;  %1166 = vmatpush.msrb.mxu0 %v583_v58  ;;  %v579_v58 = vld [vmem:[%s4013_s8 + $0x230] sm:$0xff] }
  0xb7   : > { %1084 = vmatpush.msrb.mxu2 %v4278_v54  ;;  %1207 = vmatpush.msrb.mxu1 %v599_v59  ;;  %v595_v59 = vld [vmem:[%s4013_s8 + $0x2b0] sm:$0xff] }
  0xb8   : > { %1125 = vmatpush.msrb.mxu3 %v4281_v57  ;;  %1167 = vmatpush.msrb.mxu0 %v582_v3  ;;  %v4341_v3 = vld [vmem:[%s4013_s8 + $0x128] sm:$0xff] }
  0xb9   : > { %1085 = vmatpush.msrb.mxu2 %v4286_v60  ;;  %1208 = vmatpush.msrb.mxu1 %v598_v4  ;;  %v4344_v4 = vld [vmem:[%s4013_s8 + $0x1a8] sm:$0xff] }
  0xba   : > { %1126 = vmatpush.msrb.mxu3 %v4291_v2  ;;  %1168 = vmatpush.msrb.mxu0 %v581_v11  ;;  %6891 = vst [vmem:[#allocation23_spill] sm:$0xff] %v4344_v4  ;;  %v578_v11 = vld [vmem:[%s4013_s8 + $0x228] sm:$0xff] }
  0xbb   : > { %1086 = vmatpush.msrb.mxu2 %v4296_v8  ;;  %1209 = vmatpush.msrb.mxu1 %v597_v14 }
  0xbc   : > { %1127 = vmatpush.msrb.mxu3 %v4299_v10  ;;  %1169 = vmatpush.msrb.mxu0 %v580_v40 }
  0xbd   : > { %1087 = vmatpush.msrb.mxu2 %v4318_v32 }
  0xbe   : > { %1128 = vmatpush.msrb.mxu3 %v4321_v39  ;;  %1170 = vmatpush.msrb.mxu0 %v579_v58  ;;  %v593_v58 = vld [vmem:[%s4013_s8 + $0x2a0] sm:$0xff] }
  0xbf   : > { %1088 = vmatpush.msrb.mxu2 %v4328_v44 }
  0xc0   : > { %1171 = vmatpush.msrb.mxu0 %v578_v11  ;;  %v4385_v11 = vld [vmem:[%s4013_s8 + $0x198] sm:$0xff] }
  0xc1   : > { %1089 = vmatpush.msrb.mxu2 %v4341_v3  ;;  %6899 = vst [vmem:[#allocation31_spill] sm:$0xff] %v4385_v11 }
  0xf8   : > { %v4305_v23 = vpop.xlane.xlu0 %722 }
  0xf9   : > { %v4311_v24 = vsub.f32 %v4020_v0, %v4305_v23  ;;  %v4315_v31 = vsub.f32 %v4023_v1, %v4305_v23  ;;  %v596_v0 = vld [vmem:[%s4013_s8 + $0x2b8] sm:$0xff]  ;;  %v4331_v1 = vld [vmem:[%s4013_s8 + $0x1b0] sm:$0xff] }
  0xfa   : > { %6890 = vst [vmem:[#allocation22_spill] sm:$0xff] %v4331_v1  ;;  %v4333_v48 = vpop.xlane.xlu1 %678  ;;  %1210 = vmatpush.msrb.mxu1 %v596_v0  ;;  %1129 = vmatpush.msrb.mxu3 %v4331_v1  ;;  %v594_v0 = vld [vmem:[%s4013_s8 + $0x2a8] sm:$0xff] }
  0xfb   : > { %6888 = vst [vmem:[#allocation20_spill] sm:$0xff] %v4311_v24  ;;  %v917_v52 = vmul.f32 1.442695, %v4311_v24  ;;  %v919_v53 = vmul.f32 1.442695, %v4315_v31  ;;  %v4349_v14 = vsub.f32 %v4030_v6, %v4333_v48  ;;  %v4353_v40 = vsub.f32 %v4033_v7, %v4333_v48  ;;  %v4362_v24 = vld [vmem:[%s4013_s8 + $0x1a0] sm:$0xff] }
  0xfc   : > { %6889 = vst [vmem:[#allocation21_spill] sm:$0xff] %v4315_v31  ;;  %v4358_v31 = vld [vmem:[%s4013_s8 + $0x120] sm:$0xff]  ;;  %1211 = vmatpush.msrb.mxu1 %v595_v59  ;;  %1130 = vmatpush.msrb.mxu3 %v4344_v4 }
  0xfd   : > { %6892 = vst [vmem:[#allocation24_spill] sm:$0xff] %v4349_v14  ;;  %3138 = vpow2.f32 %v917_v52  ;;  %v577_v6 = vld [vmem:[%s4013_s8 + $0x220] sm:$0xff]  ;;  %v4365_v52 = vpop.xlane.xlu2 %689  ;;  %v837_v7 = vmul.f32 1.442695, %v4349_v14  ;;  %v839_v1 = vmul.f32 1.442695, %v4353_v40  ;;  %1090 = vmatpush.msrb.mxu2 %v4358_v31 }
  0xfe   : > { %6893 = vst [vmem:[#allocation25_spill] sm:$0xff] %v4353_v40  ;;  %3140 = vpow2.f32 %v919_v53  ;;  %v4373_v53 = vsub.f32 %v4047_v15, %v4365_v52  ;;  %v4377_v59 = vsub.f32 %v4053_v18, %v4365_v52  ;;  %1212 = vmatpush.msrb.mxu1 %v594_v0  ;;  %1131 = vmatpush.msrb.mxu3 %v4362_v24  ;;  %v4382_v40 = vld [vmem:[%s4013_s8 + $0x118] sm:$0xff] }
  0xff   : > { %6894 = vst [vmem:[#allocation26_spill] sm:$0xff] %v4358_v31  ;;  %3142 = vpow2.f32 %v837_v7  ;;  %1172 = vmatpush.msrb.mxu0 %v577_v6  ;;  %v576_v15 = vld [vmem:[%s4013_s8 + $0x218] sm:$0xff]  ;;  %1091 = vmatpush.msrb.mxu2 %v4382_v40  ;;  %v4395_v7 = vld [vmem:[%s4013_s8 + $0x110] sm:$0xff] }
 0x100   : > { %6895 = vst [vmem:[#allocation27_spill] sm:$0xff] %v4362_v24  ;;  %v4388_v14 = vpop.xlane.xlu0 %733  ;;  %3144 = vpow2.f32 %v839_v1  ;;  %v857_v18 = vmul.f32 1.442695, %v4373_v53  ;;  %v859_v0 = vmul.f32 1.442695, %v4377_v59  ;;  %1213 = vmatpush.msrb.mxu1 %v593_v58  ;;  %v592_v6 = vld [vmem:[%s4013_s8 + $0x298] sm:$0xff]  ;;  %1132 = vmatpush.msrb.mxu3 %v4385_v11 }
 0x101   : > { %6896 = vst [vmem:[#allocation28_spill] sm:$0xff] %v4373_v53  ;;  %v4401_v31 = vsub.f32 %v4072_v29, %v4388_v14  ;;  %v4405_v1 = vsub.f32 %v4075_v30, %v4388_v14  ;;  %1173 = vmatpush.msrb.mxu0 %v576_v15  ;;  %v4409_v58 = vld [vmem:[%s4013_s8 + $0x190] sm:$0xff]  ;;  %v4417_v29 = vld [vmem:[%s4013_s8 + $0x108] sm:$0xff]  ;;  %1092 = vmatpush.msrb.mxu2 %v4395_v7 }
 0x102   : > { %6897 = vst [vmem:[#allocation29_spill] sm:$0xff] %v4377_v59  ;;  %v575_v59 = vld [vmem:[%s4013_s8 + $0x210] sm:$0xff]  ;;  %1214 = vmatpush.msrb.mxu1 %v592_v6  ;;  %v4419_v4 = vpop.xlane.xlu1 %744  ;;  %3146 = vpow2.f32 %v857_v18  ;;  %v4426_v11 = vld [vmem:[%s4013_s8 + $0x188] sm:$0xff]  ;;  %1133 = vmatpush.msrb.mxu3 %v4409_v58 }
 0x103   : > { %6898 = vst [vmem:[#allocation30_spill] sm:$0xff] %v4382_v40  ;;  %v4397_v24 = vpop.eup %3138  ;;  %v591_v40 = vld [vmem:[%s4013_s8 + $0x290] sm:$0xff]  ;;  %v937_v30 = vmul.f32 1.442695, %v4401_v31  ;;  %v939_v15 = vmul.f32 1.442695, %v4405_v1  ;;  %3148 = vpow2.f32 %v859_v0  ;;  %1174 = vmatpush.msrb.mxu0 %v575_v59  ;;  %v4434_v18 = vsub.f32 %v4094_v45, %v4419_v4  ;;  %1093 = vmatpush.msrb.mxu2 %v4417_v29 }
 0x104   : > { %6900 = vst [vmem:[#allocation32_spill] sm:$0xff] %v4397_v24  ;;  %v4412_v53 = vpop.eup %3140  ;;  %1025 = vmatmul.f32.vlgmr.msra.gmra.mxu2 %v4397_v24  ;;  %v574_v6 = vld [vmem:[%s4013_s8 + $0x208] sm:$0xff]  ;;  %1215 = vmatpush.msrb.mxu1 %v591_v40  ;;  %v4439_v0 = vld [vmem:[%s4013_s8 + $0x100] sm:$0xff]  ;;  %v4446_v59 = vsub.f32 %v4097_v46, %v4419_v4 }
 0x105   : > { %6901 = vst [vmem:[#allocation33_spill] sm:$0xff] %v4401_v31  ;;  %1066 = vmatmul.f32.vlgmr.msra.gmra.mxu3 %v4412_v53  ;;  %v4430_v24 = vpop.eup %3142  ;;  %3150 = vpow2.f32 %v937_v30  ;;  %v4450_v45 = vld [vmem:[%s4013_s8 + $0x180] sm:$0xff]  ;;  %1175 = vmatpush.msrb.mxu0 %v574_v6 }
 0x106   : > { %6902 = vst [vmem:[#allocation34_spill] sm:$0xff] %v4405_v1  ;;  %v590_v1 = vld [vmem:[%s4013_s8 + $0x288] sm:$0xff]  ;;  %v4441_v31 = vpop.eup %3144  ;;  %1013 = vmatmul.f32.vlgmr.msra.gmra.mxu0 %v4430_v24  ;;  %3152 = vpow2.f32 %v939_v15  ;;  %1134 = vmatpush.msrb.mxu3 %v4426_v11  ;;  %v573_v40 = vld [vmem:[%s4013_s8 + $0x200] sm:$0xff]  ;;  %v4462_v15 = vld [vmem:[%s4013_s8 + $0x3f8] sm:$0xff] }
 0x107   : > { %6903 = vst [vmem:[#allocation35_spill] sm:$0xff] %v4409_v58  ;;  %1054 = vmatmul.f32.vlgmr.msra.gmra.mxu1 %v4441_v31  ;;  %v589_v30 = vld [vmem:[%s4013_s8 + $0x280] sm:$0xff]  ;;  %1094 = vmatpush.msrb.mxu2 %v4439_v0 }
 0x108   : > { %6904 = vst [vmem:[#allocation36_spill] sm:$0xff] %v4412_v53  ;;  %v4456_v53 = vld [vmem:[%s4013_s8 + $0x378] sm:$0xff]  ;;  %1216 = vmatpush.msrb.mxu1 %v590_v1  ;;  %v4464_v46 = vpop.eup %3146  ;;  %1135 = vmatpush.msrb.mxu3 %v4450_v45  ;;  %v4475_v1 = vld [vmem:[%s4013_s8 + $0x370] sm:$0xff] }
 0x109   : > { %6905 = vst [vmem:[#allocation37_spill] sm:$0xff] %v4417_v29  ;;  %v4458_v29 = vpop.xlane.xlu2 %755  ;;  %1176 = vmatpush.msrb.mxu0 %v573_v40  ;;  %v4468_v6 = vpop.eup %3148  ;;  %1243 = vmatpush.msra.mxu2 %v4456_v53 }
 0x10a   : > { %6906 = vst [vmem:[#allocation38_spill] sm:$0xff] %v4426_v11  ;;  %v959_v11 = vmul.f32 1.442695, %v4446_v59  ;;  %1217 = vmatpush.msrb.mxu1 %v589_v30  ;;  %1284 = vmatpush.msra.mxu3 %v4462_v15  ;;  %v4493_v30 = vld [vmem:[%s4013_s8 + $0x3f0] sm:$0xff] }
 0x10b   : > { %6907 = vst [vmem:[#allocation39_spill] sm:$0xff] %v4430_v24  ;;  %v957_v24 = vmul.f32 1.442695, %v4434_v18  ;;  %1244 = vmatpush.msra.mxu2 %v4475_v1 }
 0x10c   : > { %6908 = vst [vmem:[#allocation40_spill] sm:$0xff] %v4434_v18  ;;  %v4489_v18 = vsub.f32 %v4112_v63, %v4458_v29  ;;  %1285 = vmatpush.msra.mxu3 %v4493_v30 }
 0x10d   : > { %6909 = vst [vmem:[#allocation41_spill] sm:$0xff] %v4439_v0  ;;  %v4477_v0 = vpop.eup %3150  ;;  %3154 = vpow2.f32 %v957_v24 }
 0x10e   : > { %6910 = vst [vmem:[#allocation42_spill] sm:$0xff] %v4441_v31  ;;  %v4470_v31 = vpop.xlane.xlu0 %700  ;;  %1028 = vmatmul.f32.gmra.mxu2 %v4477_v0  ;;  %1016 = vmatmul.f32.gmra.mxu0 %v4464_v46  ;;  %3156 = vpow2.f32 %v959_v11  ;;  %v977_v24 = vmul.f32 1.442695, %v4489_v18  ;;  %v4524_v11 = vld [vmem:[%s4013_s8 + $0x3e8] sm:$0xff] }
 0x10f   : > { %6911 = vst [vmem:[#allocation43_spill] sm:$0xff] %v4446_v59  ;;  %v4481_v58 = vsub.f32 %v4128_v34, %v4470_v31  ;;  %v4485_v40 = vsub.f32 %v4131_v36, %v4470_v31  ;;  %v4495_v59 = vpop.eup %3152  ;;  %v4500_v34 = vsub.f32 %v4116_v5, %v4458_v29  ;;  %v4503_v36 = vpop.xlane.xlu1 %711  ;;  %1057 = vmatmul.f32.gmra.mxu1 %v4468_v6 }
 0x110   : > { %6912 = vst [vmem:[#allocation44_spill] sm:$0xff] %v4462_v15  ;;  %1069 = vmatmul.f32.gmra.mxu3 %v4495_v59  ;;  %v4511_v5 = vsub.f32 %v4149_v55, %v4503_v36 }
 0x111   : > { %6913 = vst [vmem:[#allocation45_spill] sm:$0xff] %v4464_v46  ;;  %v877_v63 = vmul.f32 1.442695, %v4481_v58  ;;  %v879_v15 = vmul.f32 1.442695, %v4485_v40  ;;  %1286 = vmatpush.msra.mxu3 %v4524_v11 }
 0x112   : > { %6914 = vst [vmem:[#allocation46_spill] sm:$0xff] %v4468_v6  ;;  %v979_v55 = vmul.f32 1.442695, %v4500_v34  ;;  %v897_v6 = vmul.f32 1.442695, %v4511_v5 }
 0x113   : > { %6915 = vst [vmem:[#allocation47_spill] sm:$0xff] %v4477_v0  ;;  %3158 = vpow2.f32 %v877_v63  ;;  %v668_v0 = vld [vmem:[%s4013_s8 + $0x4f8] sm:$0xff]  ;;  %v4536_v63 = vld [vmem:[%s4013_s8 + $0x3e0] sm:$0xff] }
 0x114   : > { %6916 = vst [vmem:[#allocation48_spill] sm:$0xff] %v4481_v58  ;;  %v652_v58 = vld [vmem:[%s4013_s8 + $0x478] sm:$0xff]  ;;  %3160 = vpow2.f32 %v879_v15  ;;  %1366 = vmatpush.msra.mxu1 %v668_v0  ;;  %1287 = vmatpush.msra.mxu3 %v4536_v63  ;;  %v4542_v15 = vpop.eup %3154  ;;  %v4552_v0 = vsub.f32 %v4037_v9, %v4333_v48  ;;  %v667_v9 = vld [vmem:[%s4013_s8 + $0x4f0] sm:$0xff] }
 0x115   : > { %6917 = vst [vmem:[#allocation49_spill] sm:$0xff] %v4485_v40  ;;  %v4521_v40 = vld [vmem:[%s4013_s8 + $0x368] sm:$0xff]  ;;  %1325 = vmatpush.msra.mxu0 %v652_v58  ;;  %3162 = vpow2.f32 %v977_v24 }
 0x116   : > { %6918 = vst [vmem:[#allocation50_spill] sm:$0xff] %v4489_v18  ;;  %1245 = vmatpush.msra.mxu2 %v4521_v40  ;;  %v651_v18 = vld [vmem:[%s4013_s8 + $0x470] sm:$0xff]  ;;  %3164 = vpow2.f32 %v979_v55  ;;  %v4567_v55 = vld [vmem:[%s4013_s8 + $0x358] sm:$0xff]  ;;  %1367 = vmatpush.msra.mxu1 %v667_v9 }
 0x117   : > { %6919 = vst [vmem:[#allocation51_spill] sm:$0xff] %v4495_v59  ;;  %v4515_v59 = vsub.f32 %v4152_v56, %v4503_v36  ;;  %v4531_v56 = vld [vmem:[%s4013_s8 + $0x360] sm:$0xff]  ;;  %1326 = vmatpush.msra.mxu0 %v651_v18  ;;  %1031 = vmatmul.f32.gmra.mxu2 %v4542_v15  ;;  %3166 = vpow2.f32 %v897_v6  ;;  %v4559_v18 = vsub.f32 %v4042_v12, %v4333_v48  ;;  %v650_v12 = vld [vmem:[%s4013_s8 + $0x468] sm:$0xff] }
 0x118   : > { %6920 = vst [vmem:[#allocation52_spill] sm:$0xff] %v4500_v34  ;;  %1246 = vmatpush.msra.mxu2 %v4531_v56  ;;  %v4544_v34 = vpop.eup %3156  ;;  %v4564_v6 = vsub.f32 %v4050_v17, %v4333_v48  ;;  %v841_v17 = vmul.f32 1.442695, %v4552_v0 }
 0x119   : > { %6921 = vst [vmem:[#allocation53_spill] sm:$0xff] %v4511_v5  ;;  %v899_v46 = vmul.f32 1.442695, %v4515_v59  ;;  %v4547_v58 = vpop.eup %3158  ;;  %1072 = vmatmul.f32.gmra.mxu3 %v4544_v34  ;;  %v4580_v5 = vld [vmem:[%s4013_s8 + $0x350] sm:$0xff]  ;;  %1327 = vmatpush.msra.mxu0 %v650_v12 }
 0x11a   : > { %6922 = vst [vmem:[#allocation54_spill] sm:$0xff] %v4515_v59  ;;  %v4554_v24 = vpop.eup %3160  ;;  %1019 = vmatmul.f32.gmra.mxu0 %v4547_v58  ;;  %v4571_v59 = vld [vmem:[%s4013_s8 + $0x3d8] sm:$0xff]  ;;  %1247 = vmatpush.msra.mxu2 %v4567_v55 }
 0x11b   : > { %6923 = vst [vmem:[#allocation55_spill] sm:$0xff] %v4536_v63  ;;  %3168 = vpow2.f32 %v899_v46  ;;  %1060 = vmatmul.f32.gmra.mxu1 %v4554_v24  ;;  %v4575_v46 = vsub.f32 %v4064_v25, %v4333_v48  ;;  %1288 = vmatpush.msra.mxu3 %v4571_v59  ;;  %v843_v25 = vmul.f32 1.442695, %v4559_v18 }
 0x11c   : > { %6924 = vst [vmem:[#allocation56_spill] sm:$0xff] %v4542_v15  ;;  %v4583_v15 = vpop.eup %3162  ;;  %1248 = vmatpush.msra.mxu2 %v4580_v5  ;;  %3170 = vpow2.f32 %v841_v17  ;;  %v4616_v17 = vsub.f32 %v4081_v35, %v4365_v52 }
 0x11d   : > { %6925 = vst [vmem:[#allocation57_spill] sm:$0xff] %v4544_v34  ;;  %v666_v34 = vld [vmem:[%s4013_s8 + $0x4e8] sm:$0xff]  ;;  %v4591_v63 = vpop.eup %3164  ;;  %3172 = vpow2.f32 %v843_v25  ;;  %v4627_v25 = vsub.f32 %v4091_v43, %v4365_v52 }
 0x11e   : > { %6926 = vst [vmem:[#allocation58_spill] sm:$0xff] %v4547_v58  ;;  %v649_v58 = vld [vmem:[%s4013_s8 + $0x460] sm:$0xff]  ;;  %1368 = vmatpush.msra.mxu1 %v666_v34  ;;  %v4595_v9 = vpop.eup %3166  ;;  %v4606_v34 = vsub.f32 %v4056_v19, %v4365_v52 }
 0x11f   : > { %6927 = vst [vmem:[#allocation59_spill] sm:$0xff] %v4552_v0  ;;  %1328 = vmatpush.msra.mxu0 %v649_v58  ;;  %1034 = vmatmul.f32.gmra.mxu2 %v4583_v15  ;;  %v847_v0 = vmul.f32 1.442695, %v4575_v46  ;;  %v4611_v58 = vsub.f32 %v4067_v26, %v4365_v52  ;;  %v665_v19 = vld [vmem:[%s4013_s8 + $0x4e0] sm:$0xff]  ;;  %v648_v26 = vld [vmem:[%s4013_s8 + $0x458] sm:$0xff] }
 0x120   : > { %6928 = vst [vmem:[#allocation60_spill] sm:$0xff] %v4554_v24  ;;  %v4588_v24 = vld [vmem:[%s4013_s8 + $0x3d0] sm:$0xff]  ;;  %1369 = vmatpush.msra.mxu1 %v665_v19  ;;  %v861_v35 = vmul.f32 1.442695, %v4606_v34  ;;  %v865_v19 = vmul.f32 1.442695, %v4616_v17 }
 0x121   : > { %6929 = vst [vmem:[#allocation61_spill] sm:$0xff] %v4559_v18  ;;  %1289 = vmatpush.msra.mxu3 %v4588_v24  ;;  %v4599_v12 = vpop.eup %3168  ;;  %v664_v18 = vld [vmem:[%s4013_s8 + $0x4d8] sm:$0xff]  ;;  %1329 = vmatpush.msra.mxu0 %v648_v26  ;;  %v867_v26 = vmul.f32 1.442695, %v4627_v25 }
 0x122   : > { %6930 = vst [vmem:[#allocation62_spill] sm:$0xff] %v4564_v6  ;;  %1075 = vmatmul.f32.gmra.mxu3 %v4591_v63  ;;  %1022 = vmatmul.f32.gmra.mxu0 %v4595_v9  ;;  %v4643_v43 = vpop.eup %3170 }
 0x123   : > { %6931 = vst [vmem:[#allocation63_spill] sm:$0xff] %v4567_v55  ;;  %v845_v55 = vmul.f32 1.442695, %v4564_v6  ;;  %1063 = vmatmul.f32.gmra.mxu1 %v4599_v12  ;;  %v4623_v6 = vld [vmem:[%s4013_s8 + $0x3c8] sm:$0xff] }
 0x124   : > { %6932 = vst [vmem:[#allocation64_spill] sm:$0xff] %v4575_v46  ;;  %v4619_v46 = vld [vmem:[%s4013_s8 + $0x348] sm:$0xff]  ;;  %1290 = vmatpush.msra.mxu3 %v4623_v6  ;;  %1370 = vmatpush.msra.mxu1 %v664_v18  ;;  %v4656_v18 = vsub.f32 %v4134_v37, %v4470_v31  ;;  %v4668_v37 = vsub.f32 %v4156_v61, %v4470_v31 }
 0x125   : > { %6933 = vst [vmem:[#allocation65_spill] sm:$0xff] %v4583_v15  ;;  %3174 = vpow2.f32 %v845_v55  ;;  %1249 = vmatpush.msra.mxu2 %v4619_v46  ;;  %v4632_v55 = vld [vmem:[%s4013_s8 + $0x340] sm:$0xff]  ;;  %v647_v15 = vld [vmem:[%s4013_s8 + $0x450] sm:$0xff] }
 0x126   : > { %6934 = vst [vmem:[#allocation66_spill] sm:$0xff] %v4591_v63  ;;  %3176 = vpow2.f32 %v847_v0  ;;  %v4638_v63 = vld [vmem:[%s4013_s8 + $0x3c0] sm:$0xff]  ;;  %v863_v0 = vmul.f32 1.442695, %v4611_v58  ;;  %1330 = vmatpush.msra.mxu0 %v647_v15  ;;  %v881_v61 = vmul.f32 1.442695, %v4656_v18 }
 0x127   : > { %6935 = vst [vmem:[#allocation67_spill] sm:$0xff] %v4595_v9  ;;  %1250 = vmatpush.msra.mxu2 %v4632_v55  ;;  %1291 = vmatpush.msra.mxu3 %v4638_v63  ;;  %3178 = vpow2.f32 %v861_v35  ;;  %v4671_v35 = vld [vmem:[%s4013_s8 + $0x338] sm:$0xff]  ;;  %v645_v9 = vld [vmem:[%s4013_s8 + $0x440] sm:$0xff] }
 0x128   : > { %6936 = vst [vmem:[#allocation68_spill] sm:$0xff] %v4599_v12  ;;  %1095 = vmatmul.f32.vlgmr.msrb.gmra.mxu2 %v4643_v43  ;;  %3180 = vpow2.f32 %v863_v0  ;;  %v4675_v12 = vld [vmem:[%s4013_s8 + $0x3b8] sm:$0xff]  ;;  %v4679_v0 = vsub.f32 %v4171_v20, %v4470_v31 }
 0x129   : > { %6937 = vst [vmem:[#allocation69_spill] sm:$0xff] %v4606_v34  ;;  %v4647_v34 = vpop.eup %3172  ;;  %3182 = vpow2.f32 %v865_v19  ;;  %1251 = vmatpush.msra.mxu2 %v4671_v35  ;;  %v4684_v19 = vld [vmem:[%s4013_s8 + $0x330] sm:$0xff]  ;;  %1292 = vmatpush.msra.mxu3 %v4675_v12 }
 0x12a   : > { %6938 = vst [vmem:[#allocation70_spill] sm:$0xff] %v4611_v58  ;;  %1136 = vmatmul.f32.vlgmr.msrb.gmra.mxu3 %v4647_v34  ;;  %3184 = vpow2.f32 %v867_v26 }
 0x12b   : > { %6939 = vst [vmem:[#allocation71_spill] sm:$0xff] %v4616_v17  ;;  %v4651_v58 = vpop.eup %3174  ;;  %v663_v17 = vld [vmem:[%s4013_s8 + $0x4d0] sm:$0xff]  ;;  %1252 = vmatpush.msra.mxu2 %v4684_v19  ;;  %3186 = vpow2.f32 %v881_v61  ;;  %v4723_v61 = vld [vmem:[%s4013_s8 + $0x328] sm:$0xff] }
 0x12c   : > { %6940 = vst [vmem:[#allocation72_spill] sm:$0xff] %v4627_v25  ;;  %v4658_v15 = vpop.eup %3176  ;;  %1177 = vmatmul.f32.vlgmr.msrb.gmra.mxu0 %v4651_v58  ;;  %v4663_v25 = vsub.f32 %v4144_v51, %v4470_v31  ;;  %1371 = vmatpush.msra.mxu1 %v663_v17  ;;  %v646_v51 = vld [vmem:[%s4013_s8 + $0x448] sm:$0xff]  ;;  %v885_v17 = vmul.f32 1.442695, %v4668_v37 }
 0x12d   : > { %6941 = vst [vmem:[#allocation73_spill] sm:$0xff] %v4643_v43  ;;  %1218 = vmatmul.f32.vlgmr.msrb.gmra.mxu1 %v4658_v15  ;;  %1331 = vmatpush.msra.mxu0 %v646_v51  ;;  %v4695_v20 = vpop.eup %3178  ;;  %v887_v51 = vmul.f32 1.442695, %v4679_v0 }
 0x12e   : > { %6942 = vst [vmem:[#allocation74_spill] sm:$0xff] %v4647_v34  ;;  %v883_v26 = vmul.f32 1.442695, %v4663_v25  ;;  %1253 = vmatpush.msra.mxu2 %v4723_v61  ;;  %v3333_v34 = vld [vmem:[%s3995_s9 + $0x168] sm:$0xff] }
 0x12f   : > { %6943 = vst [vmem:[#allocation75_spill] sm:$0xff] %v4651_v58  ;;  %v4690_v58 = vld [vmem:[%s4013_s8 + $0x3b0] sm:$0xff]  ;;  %1332 = vmatpush.msra.mxu0 %v645_v9 }
 0x130   : > { %6944 = vst [vmem:[#allocation76_spill] sm:$0xff] %v4656_v18  ;;  %1293 = vmatpush.msra.mxu3 %v4690_v58  ;;  %v4699_v18 = vpop.eup %3180  ;;  %1098 = vmatmul.f32.gmra.mxu2 %v4695_v20  ;;  %3188 = vpow2.f32 %v883_v26  ;;  %v4731_v26 = vsub.f32 %v4188_v47, %v4503_v36 }
 0x131   : > { %6945 = vst [vmem:[#allocation77_spill] sm:$0xff] %v4658_v15  ;;  %v662_v15 = vld [vmem:[%s4013_s8 + $0x4c8] sm:$0xff]  ;;  %3190 = vpow2.f32 %v885_v17  ;;  %v4736_v17 = vld [vmem:[%s4013_s8 + $0x320] sm:$0xff] }
 0x132   : > { %6946 = vst [vmem:[#allocation78_spill] sm:$0xff] %v4663_v25  ;;  %1372 = vmatpush.msra.mxu1 %v662_v15  ;;  %v4703_v25 = vpop.eup %3182  ;;  %1139 = vmatmul.f32.gmra.mxu3 %v4699_v18  ;;  %v4708_v15 = vsub.f32 %v4159_v62, %v4503_v36  ;;  %v4720_v62 = vsub.f32 %v4174_v21, %v4503_v36  ;;  %3192 = vpow2.f32 %v887_v51  ;;  %v643_v51 = vld [vmem:[%s4013_s8 + $0x430] sm:$0xff] }
 0x133   : > { %6947 = vst [vmem:[#allocation79_spill] sm:$0xff] %v4668_v37  ;;  %v4710_v9 = vpop.eup %3184  ;;  %v661_v37 = vld [vmem:[%s4013_s8 + $0x4c0] sm:$0xff]  ;;  %1254 = vmatpush.msra.mxu2 %v4736_v17 }
 0x134   : > { %6948 = vst [vmem:[#allocation80_spill] sm:$0xff] %v4679_v0  ;;  %1180 = vmatmul.f32.gmra.mxu0 %v4703_v25  ;;  %v4715_v0 = vsub.f32 %v4168_v13, %v4503_v36  ;;  %1373 = vmatpush.msra.mxu1 %v661_v37  ;;  %v644_v13 = vld [vmem:[%s4013_s8 + $0x438] sm:$0xff]  ;;  %v901_v21 = vmul.f32 1.442695, %v4708_v15  ;;  %v4747_v47 = vpop.eup %3186  ;;  %v905_v37 = vmul.f32 1.442695, %v4720_v62 }
 0x135   : > { %6949 = vst [vmem:[#allocation81_spill] sm:$0xff] %v4695_v20  ;;  %1221 = vmatmul.f32.gmra.mxu1 %v4710_v9  ;;  %1333 = vmatpush.msra.mxu0 %v644_v13  ;;  %v907_v13 = vmul.f32 1.442695, %v4731_v26 }
 0x136   : > { %6950 = vst [vmem:[#allocation82_spill] sm:$0xff] %v4699_v18  ;;  %v4727_v18 = vld [vmem:[%s4013_s8 + $0x3a8] sm:$0xff]  ;;  %v903_v20 = vmul.f32 1.442695, %v4715_v0  ;;  %3194 = vpow2.f32 %v901_v21  ;;  %v3332_v21 = vld [vmem:[%s3995_s9 + $0x160] sm:$0xff] }
 0x137   : > { %6951 = vst [vmem:[#allocation83_spill] sm:$0xff] %v4703_v25  ;;  %1294 = vmatpush.msra.mxu3 %v4727_v18  ;;  %v4742_v25 = vld [vmem:[%s4013_s8 + $0x3a0] sm:$0xff]  ;;  %1334 = vmatpush.msra.mxu0 %v643_v51 }
 0x138   : > { %6952 = vst [vmem:[#allocation84_spill] sm:$0xff] %v4708_v15  ;;  %v4751_v15 = vpop.eup %3188  ;;  %1101 = vmatmul.f32.gmra.mxu2 %v4747_v47  ;;  %3196 = vpow2.f32 %v903_v20  ;;  %v4779_v20 = vld [vmem:[%s4013_s8 + $0x398] sm:$0xff] }
 0x139   : > { %6953 = vst [vmem:[#allocation85_spill] sm:$0xff] %v4710_v9  ;;  %v660_v9 = vld [vmem:[%s4013_s8 + $0x4b8] sm:$0xff]  ;;  %1295 = vmatpush.msra.mxu3 %v4742_v25  ;;  %3198 = vpow2.f32 %v905_v37  ;;  %v642_v37 = vld [vmem:[%s4013_s8 + $0x428] sm:$0xff] }
 0x13a   : > { %6954 = vst [vmem:[#allocation86_spill] sm:$0xff] %v4715_v0  ;;  %1374 = vmatpush.msra.mxu1 %v660_v9  ;;  %v4755_v0 = vpop.eup %3190  ;;  %1142 = vmatmul.f32.gmra.mxu3 %v4751_v15  ;;  %v3330_v9 = vld [vmem:[%s3995_s9 + $0x150] sm:$0xff]  ;;  %3200 = vpow2.f32 %v907_v13  ;;  %v657_v13 = vld [vmem:[%s4013_s8 + $0x4a0] sm:$0xff] }
 0x13b   : > { %6955 = vst [vmem:[#allocation87_spill] sm:$0xff] %v4720_v62  ;;  %v4760_v62 = vsub.f32 %v3330_v9, %v4305_v23  ;;  %v4762_v51 = vpop.eup %3192  ;;  %v4772_v9 = vsub.f32 %v3332_v21, %v4305_v23  ;;  %v658_v21 = vld [vmem:[%s4013_s8 + $0x4a8] sm:$0xff]  ;;  %1296 = vmatpush.msra.mxu3 %v4779_v20  ;;  %1335 = vmatpush.msra.mxu0 %v642_v37 }
 0x13c   : > { %6956 = vst [vmem:[#allocation88_spill] sm:$0xff] %v4731_v26  ;;  %1183 = vmatmul.f32.gmra.mxu0 %v4755_v0  ;;  %v3331_v26 = vld [vmem:[%s3995_s9 + $0x158] sm:$0xff] }
 0x13d   : > { %6957 = vst [vmem:[#allocation89_spill] sm:$0xff] %v4736_v17  ;;  %1224 = vmatmul.f32.gmra.mxu1 %v4762_v51  ;;  %v921_v43 = vmul.f32 1.442695, %v4760_v62  ;;  %v641_v17 = vld [vmem:[%s4013_s8 + $0x420] sm:$0xff] }
 0x13e   : > { %6958 = vst [vmem:[#allocation90_spill] sm:$0xff] %v4742_v25  ;;  %v4794_v25 = vld [vmem:[%s4013_s8 + $0x390] sm:$0xff]  ;;  %1336 = vmatpush.msra.mxu0 %v641_v17 }
 0x13f   : > { %6959 = vst [vmem:[#allocation91_spill] sm:$0xff] %v4747_v47  ;;  %v4767_v47 = vsub.f32 %v3331_v26, %v4305_v23  ;;  %v4783_v26 = vsub.f32 %v3333_v34, %v4305_v23  ;;  %1297 = vmatpush.msra.mxu3 %v4794_v25  ;;  %3202 = vpow2.f32 %v921_v43  ;;  %v3336_v43 = vld [vmem:[%s3995_s9 + $0x1b0] sm:$0xff] }
 0x140   : > { %6960 = vst [vmem:[#allocation92_spill] sm:$0xff] %v4751_v15  ;;  %v4775_v15 = vld [vmem:[%s4013_s8 + $0x318] sm:$0xff] }
 0x141   : > { %6961 = vst [vmem:[#allocation93_spill] sm:$0xff] %v4755_v0  ;;  %v659_v0 = vld [vmem:[%s4013_s8 + $0x4b0] sm:$0xff]  ;;  %1255 = vmatpush.msra.mxu2 %v4775_v15  ;;  %v923_v34 = vmul.f32 1.442695, %v4767_v47  ;;  %v927_v37 = vmul.f32 1.442695, %v4783_v26 }
 0x142   : > { %6962 = vst [vmem:[#allocation94_spill] sm:$0xff] %v4760_v62  ;;  %1375 = vmatpush.msra.mxu1 %v659_v0  ;;  %v4800_v0 = vpop.eup %3194 }
 0x143   : > { %6963 = vst [vmem:[#allocation95_spill] sm:$0xff] %v4762_v51  ;;  %v4788_v51 = vld [vmem:[%s4013_s8 + $0x310] sm:$0xff]  ;;  %v4804_v62 = vpop.eup %3196  ;;  %1104 = vmatmul.f32.gmra.mxu2 %v4800_v0  ;;  %3204 = vpow2.f32 %v923_v34  ;;  %v3337_v34 = vld [vmem:[%s3995_s9 + $0x1b8] sm:$0xff] }
 0x144   : > { %6964 = vst [vmem:[#allocation96_spill] sm:$0xff] %v4767_v47  ;;  %1256 = vmatpush.msra.mxu2 %v4788_v51  ;;  %1376 = vmatpush.msra.mxu1 %v658_v21  ;;  %v4808_v47 = vpop.eup %3198  ;;  %v3334_v21 = vld [vmem:[%s3995_s9 + $0x1a0] sm:$0xff] }
 0x145   : > { %6965 = vst [vmem:[#allocation97_spill] sm:$0xff] %v4772_v9  ;;  %1145 = vmatmul.f32.gmra.mxu3 %v4804_v62  ;;  %v4813_v17 = vsub.f32 %v3334_v21, %v4388_v14  ;;  %1186 = vmatmul.f32.gmra.mxu0 %v4808_v47  ;;  %v4825_v21 = vsub.f32 %v3336_v43, %v4388_v14  ;;  %v655_v43 = vld [vmem:[%s4013_s8 + $0x490] sm:$0xff] }
 0x146   : > { %6966 = vst [vmem:[#allocation98_spill] sm:$0xff] %v4775_v15  ;;  %v925_v15 = vmul.f32 1.442695, %v4772_v9  ;;  %1377 = vmatpush.msra.mxu1 %v657_v13  ;;  %v4815_v9 = vpop.eup %3200  ;;  %v3335_v13 = vld [vmem:[%s3995_s9 + $0x1a8] sm:$0xff] }
 0x147   : > { %6967 = vst [vmem:[#allocation99_spill] sm:$0xff] %v4779_v20  ;;  %1227 = vmatmul.f32.gmra.mxu1 %v4815_v9 }
 0x148   : > { %6968 = vst [vmem:[#allocation100_spill] sm:$0xff] %v4783_v26  ;;  %v4820_v26 = vsub.f32 %v3335_v13, %v4388_v14  ;;  %3206 = vpow2.f32 %v925_v15  ;;  %v4834_v13 = vsub.f32 %v3337_v34, %v4388_v14  ;;  %v4838_v15 = vld [vmem:[%s4013_s8 + $0x388] sm:$0xff]  ;;  %v4852_v34 = vld [vmem:[%s4013_s8 + $0x380] sm:$0xff] }
 0x149   : > { %6969 = vst [vmem:[#allocation101_spill] sm:$0xff] %v4788_v51  ;;  %3208 = vpow2.f32 %v927_v37  ;;  %1298 = vmatpush.msra.mxu3 %v4838_v15  ;;  %v4845_v37 = vld [vmem:[%s4013_s8 + $0x300] sm:$0xff]  ;;  %v638_v51 = vld [vmem:[%s4013_s8 + $0x408] sm:$0xff] }
 0x14a   : > { %6970 = vst [vmem:[#allocation102_spill] sm:$0xff] %v4794_v25  ;;  %v941_v25 = vmul.f32 1.442695, %v4813_v17  ;;  %v943_v20 = vmul.f32 1.442695, %v4820_v26 }
 0x14b   : > { %6971 = vst [vmem:[#allocation103_spill] sm:$0xff] %v4800_v0  ;;  %v656_v0 = vld [vmem:[%s4013_s8 + $0x498] sm:$0xff]  ;;  %1299 = vmatpush.msra.mxu3 %v4852_v34 }
 0x14c   : > { %6972 = vst [vmem:[#allocation104_spill] sm:$0xff] %v4804_v62  ;;  %v4828_v62 = vld [vmem:[%s4013_s8 + $0x308] sm:$0xff]  ;;  %1378 = vmatpush.msra.mxu1 %v656_v0  ;;  %v945_v0 = vmul.f32 1.442695, %v4825_v21  ;;  %3210 = vpow2.f32 %v941_v25  ;;  %v3341_v25 = vld [vmem:[%s3995_s9 + $0x200] sm:$0xff] }
 0x14d   : > { %6973 = vst [vmem:[#allocation105_spill] sm:$0xff] %v4808_v47  ;;  %v640_v47 = vld [vmem:[%s4013_s8 + $0x418] sm:$0xff]  ;;  %1257 = vmatpush.msra.mxu2 %v4828_v62  ;;  %3212 = vpow2.f32 %v943_v20 }
 0x14e   : > { %6974 = vst [vmem:[#allocation106_spill] sm:$0xff] %v4813_v17  ;;  %1337 = vmatpush.msra.mxu0 %v640_v47  ;;  %v654_v47 = vld [vmem:[%s4013_s8 + $0x488] sm:$0xff]  ;;  %1379 = vmatpush.msra.mxu1 %v655_v43  ;;  %3214 = vpow2.f32 %v945_v0 }
 0x14f   : > { %6975 = vst [vmem:[#allocation107_spill] sm:$0xff] %v4815_v9  ;;  %v639_v9 = vld [vmem:[%s4013_s8 + $0x410] sm:$0xff]  ;;  %1258 = vmatpush.msra.mxu2 %v4845_v37 }
 0x150   : > { %6976 = vst [vmem:[#allocation108_spill] sm:$0xff] %v4820_v26  ;;  %1338 = vmatpush.msra.mxu0 %v639_v9  ;;  %v947_v9 = vmul.f32 1.442695, %v4834_v13  ;;  %v637_v26 = vld [vmem:[%s4013_s8 + $0x400] sm:$0xff]  ;;  %1380 = vmatpush.msra.mxu1 %v654_v47  ;;  %v3342_v47 = vld [vmem:[%s3995_s9 + $0x208] sm:$0xff] }
 0x151   : > { %6977 = vst [vmem:[#allocation109_spill] sm:$0xff] %v4825_v21  ;;  %v3338_v21 = vld [vmem:[%s3995_s9 + $0x1f0] sm:$0xff]  ;;  %v4886_v20 = vsub.f32 %v3342_v47, %v4419_v4 }
 0x152   : > { %6978 = vst [vmem:[#allocation110_spill] sm:$0xff] %v4828_v62  ;;  %v4854_v62 = vpop.eup %3202  ;;  %1339 = vmatpush.msra.mxu0 %v638_v51  ;;  %v4868_v43 = vsub.f32 %v3338_v21, %v4419_v4  ;;  %v3339_v51 = vld [vmem:[%s3995_s9 + $0x1f8] sm:$0xff]  ;;  %v4882_v21 = vsub.f32 %v3341_v25, %v4419_v4  ;;  %3216 = vpow2.f32 %v947_v9  ;;  %v3345_v25 = vld [vmem:[%s4013_s8 + $0xf0] sm:$0xff]  ;;  %v3346_v9 = vld [vmem:[%s4013_s8 + $0x68] sm:$0xff] }
 0x153   : > { %6979 = vst [vmem:[#allocation111_spill] sm:$0xff] %v4834_v13  ;;  %v4858_v17 = vpop.eup %3204  ;;  %1107 = vmatmul.f32.gmra.mxu2 %v4854_v62  ;;  %v4876_v13 = vsub.f32 %v3339_v51, %v4419_v4  ;;  %v3343_v51 = vld [vmem:[%s4013_s8 + $0xf8] sm:$0xff] }
 0x154   : > { %6980 = vst [vmem:[#allocation112_spill] sm:$0xff] %v4838_v15  ;;  %1148 = vmatmul.f32.gmra.mxu3 %v4858_v17  ;;  %1340 = vmatpush.msra.mxu0 %v637_v26 }
 0x155   : > { %6981 = vst [vmem:[#allocation113_spill] sm:$0xff] %v4845_v37  ;;  %v4863_v37 = vpop.eup %3206  ;;  %1827 = vmatpush.msrb.mxu3 %v3343_v51  ;;  %v963_v0 = vmul.f32 1.442695, %v4876_v13  ;;  %v3348_v51 = vld [vmem:[%s3995_s9 + $0x240] sm:$0xff] }
 0x156   : > { %6982 = vst [vmem:[#allocation114_spill] sm:$0xff] %v4852_v34  ;;  %v653_v34 = vld [vmem:[%s4013_s8 + $0x480] sm:$0xff]  ;;  %v4871_v15 = vpop.eup %3208  ;;  %1189 = vmatmul.f32.gmra.mxu0 %v4863_v37 }
 0x157   : > { %6983 = vst [vmem:[#allocation115_spill] sm:$0xff] %v4854_v62  ;;  %1230 = vmatmul.f32.gmra.mxu1 %v4871_v15  ;;  %1868 = vmatpush.msrb.mxu0 %v4228_v16  ;;  %v4895_v26 = vpop.eup %3210  ;;  %v967_v16 = vmul.f32 1.442695, %v4886_v20 }
 0x158   : > { %6984 = vst [vmem:[#allocation116_spill] sm:$0xff] %v4858_v17  ;;  %v3340_v17 = vld [vmem:[%s4013_s8 + $0x78] sm:$0xff]  ;;  %1381 = vmatpush.msra.mxu1 %v653_v34  ;;  %1828 = vmatpush.msrb.mxu3 %v3345_v25  ;;  %v965_v34 = vmul.f32 1.442695, %v4882_v21  ;;  %v4900_v47 = vpop.eup %3212  ;;  %v4910_v25 = vsub.f32 %v3348_v51, %v4458_v29 }
 0x159   : > { %6985 = vst [vmem:[#allocation117_spill] sm:$0xff] %v4863_v37  ;;  %1786 = vmatpush.msrb.mxu2 %v3340_v17  ;;  %v961_v17 = vmul.f32 1.442695, %v4868_v43  ;;  %1869 = vmatpush.msrb.mxu0 %v4238_v27  ;;  %v3352_v51 = vld [vmem:[%s3995_s9 + $0x258] sm:$0xff] }
 0x15a   : > { %6986 = vst [vmem:[#allocation118_spill] sm:$0xff] %v4868_v43  ;;  %1909 = vmatpush.msrb.mxu1 %v4231_v22  ;;  %v4905_v22 = vpop.eup %3214  ;;  %v7050_v37 = vld [vmem:[#allocation37_spill] sm:$0xff] }
 0x15b   : > { %6987 = vst [vmem:[#allocation119_spill] sm:$0xff] %v4871_v15  ;;  %v3344_v15 = vld [vmem:[%s4013_s8 + $0x70] sm:$0xff]  ;;  %1110 = vmatmul.f32.gmra.mxu2 %v4895_v26  ;;  %3218 = vpow2.f32 %v961_v17  ;;  %v4913_v27 = vpop.eup %3216  ;;  %1870 = vmatpush.msrb.mxu0 %v4246_v33  ;;  %v3355_v33 = vld [vmem:[%s4013_s8 + $0xd8] sm:$0xff] }
 0x15c   : > { %6988 = vst [vmem:[#allocation120_spill] sm:$0xff] %v4876_v13  ;;  %1787 = vmatpush.msrb.mxu2 %v3344_v15  ;;  %v3347_v15 = vld [vmem:[%s4013_s8 + $0xe8] sm:$0xff]  ;;  %1151 = vmatmul.f32.gmra.mxu3 %v4900_v47  ;;  %3220 = vpow2.f32 %v963_v0  ;;  %v3351_v17 = vld [vmem:[%s3995_s9 + $0x250] sm:$0xff]  ;;  %v4929_v0 = vsub.f32 %v3352_v51, %v4458_v29  ;;  %v7023_v13 = vld [vmem:[#allocation22_spill] sm:$0xff] }
 0x15d   : > { %6989 = vst [vmem:[#allocation121_spill] sm:$0xff] %v4882_v21  ;;  %1829 = vmatpush.msrb.mxu3 %v3347_v15  ;;  %1910 = vmatpush.msrb.mxu1 %v4241_v28  ;;  %3222 = vpow2.f32 %v965_v34  ;;  %v4924_v28 = vsub.f32 %v3351_v17, %v4458_v29  ;;  %v3354_v34 = vld [vmem:[%s4013_s8 + $0x58] sm:$0xff]  ;;  %v3356_v51 = vld [vmem:[%s4013_s8 + $0x50] sm:$0xff] }
 0x15e   : > { %6990 = vst [vmem:[#allocation122_spill] sm:$0xff] %v4886_v20  ;;  %1788 = vmatpush.msrb.mxu2 %v3346_v9  ;;  %1192 = vmatmul.f32.gmra.mxu0 %v4905_v22  ;;  %v3349_v9 = vld [vmem:[%s3995_s9 + $0x248] sm:$0xff]  ;;  %v3350_v20 = vld [vmem:[%s4013_s8 + $0x60] sm:$0xff]  ;;  %3224 = vpow2.f32 %v967_v16  ;;  %v5045_v21 = vld [vmem:[%s4013_s8 + $0xb0] sm:$0xff] }
 0x15f   : > { %6991 = vst [vmem:[#allocation123_spill] sm:$0xff] %v4895_v26  ;;  %v4918_v15 = vsub.f32 %v3349_v9, %v4458_v29  ;;  %1233 = vmatmul.f32.gmra.mxu1 %v4913_v27  ;;  %v3353_v9 = vld [vmem:[%s4013_s8 + $0xe0] sm:$0xff]  ;;  %1871 = vmatpush.msrb.mxu0 %v4256_v41 }
 0x160   : > { %6992 = vst [vmem:[#allocation124_spill] sm:$0xff] %v4900_v47  ;;  %1789 = vmatpush.msrb.mxu2 %v3350_v20  ;;  %1911 = vmatpush.msrb.mxu1 %v4251_v38  ;;  %v981_v20 = vmul.f32 1.442695, %v4910_v25  ;;  %v985_v38 = vmul.f32 1.442695, %v4924_v28 }
 0x161   : > { %6993 = vst [vmem:[#allocation125_spill] sm:$0xff] %v4905_v22  ;;  %1830 = vmatpush.msrb.mxu3 %v3353_v9  ;;  %v983_v17 = vmul.f32 1.442695, %v4918_v15  ;;  %v4939_v16 = vpop.eup %3218  ;;  %1872 = vmatpush.msrb.mxu0 %v4268_v49  ;;  %v987_v9 = vmul.f32 1.442695, %v4929_v0 }
 0x162   : > { %6994 = vst [vmem:[#allocation126_spill] sm:$0xff] %v4910_v25  ;;  %1790 = vmatpush.msrb.mxu2 %v3354_v34  ;;  %1912 = vmatpush.msrb.mxu1 %v4259_v42  ;;  %v4944_v41 = vpop.eup %3220  ;;  %v3357_v34 = vld [vmem:[%s3995_s9 + $0x30] sm:$0xff]  ;;  %3226 = vpow2.f32 %v981_v20  ;;  %v5027_v25 = vld [vmem:[%s4013_s8 + $0xb8] sm:$0xff] }
 0x163   : > { %6995 = vst [vmem:[#allocation127_spill] sm:$0xff] %v4913_v27  ;;  %1831 = vmatpush.msrb.mxu3 %v3355_v33  ;;  %1113 = vmatmul.f32.gmra.mxu2 %v4939_v16  ;;  %v4949_v42 = vpop.eup %3222  ;;  %v4953_v33 = vsub.f32 %v3357_v34, %v4333_v48  ;;  %3228 = vpow2.f32 %v983_v17  ;;  %v3360_v34 = vld [vmem:[%s3995_s9 + $0x40] sm:$0xff]  ;;  %v7042_v27 = vld [vmem:[#allocation31_spill] sm:$0xff] }
 0x164   : > { %6996 = vst [vmem:[#allocation128_spill] sm:$0xff] %v4918_v15  ;;  %1791 = vmatpush.msrb.mxu2 %v3356_v51  ;;  %1913 = vmatpush.msrb.mxu1 %v4271_v50  ;;  %v4957_v49 = vpop.eup %3224  ;;  %v3358_v51 = vld [vmem:[%s3995_s9 + $0x38] sm:$0xff]  ;;  %v4965_v50 = vld [vmem:[%s4013_s8 + $0xd0] sm:$0xff]  ;;  %v4970_v20 = vsub.f32 %v3360_v34, %v4333_v48  ;;  %3230 = vpow2.f32 %v985_v38  ;;  %v4989_v38 = vld [vmem:[%s4013_s8 + $0x40] sm:$0xff] }
 0x165   : > { %6997 = vst [vmem:[#allocation129_spill] sm:$0xff] %v4924_v28  ;;  %1154 = vmatmul.f32.gmra.mxu3 %v4944_v41  ;;  %1873 = vmatpush.msrb.mxu0 %v4278_v54  ;;  %v4974_v54 = vld [vmem:[%s4013_s8 + $0x48] sm:$0xff]  ;;  %3232 = vpow2.f32 %v987_v9  ;;  %v849_v34 = vmul.f32 1.442695, %v4953_v33 }
 0x166   : > { %6998 = vst [vmem:[#allocation130_spill] sm:$0xff] %v4929_v0  ;;  %v4961_v0 = vsub.f32 %v3358_v51, %v4333_v48  ;;  %1195 = vmatmul.f32.gmra.mxu0 %v4949_v42  ;;  %1832 = vmatpush.msrb.mxu3 %v4965_v50  ;;  %v3362_v51 = vld [vmem:[%s3995_s9 + $0x48] sm:$0xff]  ;;  %v853_v9 = vmul.f32 1.442695, %v4970_v20 }
 0x167   : > { %6999 = vst [vmem:[#allocation131_spill] sm:$0xff] %v4939_v16  ;;  %1236 = vmatmul.f32.gmra.mxu1 %v4957_v49  ;;  %1792 = vmatpush.msrb.mxu2 %v4974_v54  ;;  %v4979_v17 = vsub.f32 %v3362_v51, %v4333_v48  ;;  %v4983_v28 = vld [vmem:[%s4013_s8 + $0xc8] sm:$0xff]  ;;  %v4995_v48 = vld [vmem:[%s4013_s8 + $0xc0] sm:$0xff]  ;;  %3234 = vpow2.f32 %v849_v34  ;;  %v3370_v34 = vld [vmem:[%s3995_s9 + $0x90] sm:$0xff] }
 0x168   : > { %7000 = vst [vmem:[#allocation132_spill] sm:$0xff] %v4944_v41  ;;  %1914 = vmatpush.msrb.mxu1 %v4281_v57  ;;  %1833 = vmatpush.msrb.mxu3 %v4983_v28  ;;  %v851_v15 = vmul.f32 1.442695, %v4961_v0  ;;  %v4998_v57 = vpop.eup %3226 }
 0x169   : > { %7001 = vst [vmem:[#allocation133_spill] sm:$0xff] %v4949_v42  ;;  %1874 = vmatpush.msrb.mxu0 %v4286_v60  ;;  %1793 = vmatpush.msrb.mxu2 %v4989_v38  ;;  %v5003_v60 = vld [vmem:[%s4013_s8 + $0x38] sm:$0xff]  ;;  %v5006_v51 = vpop.eup %3228 }
 0x16a   : > { %7002 = vst [vmem:[#allocation134_spill] sm:$0xff] %v4953_v33  ;;  %1915 = vmatpush.msrb.mxu1 %v4291_v2  ;;  %1834 = vmatpush.msrb.mxu3 %v4995_v48  ;;  %v855_v2 = vmul.f32 1.442695, %v4979_v17  ;;  %3236 = vpow2.f32 %v851_v15  ;;  %v3372_v15 = vld [vmem:[%s3995_s9 + $0x98] sm:$0xff] }
 0x16b   : > { %7003 = vst [vmem:[#allocation135_spill] sm:$0xff] %v4957_v49  ;;  %1875 = vmatpush.msrb.mxu0 %v4296_v8  ;;  %1794 = vmatpush.msrb.mxu2 %v5003_v60  ;;  %v3367_v8 = vld [vmem:[%s3995_s9 + $0x80] sm:$0xff]  ;;  %3238 = vpow2.f32 %v853_v9  ;;  %v5107_v42 = vld [vmem:[%s4013_s8 + $0x98] sm:$0xff] }
 0x16c   : > { %7004 = vst [vmem:[#allocation136_spill] sm:$0xff] %v4961_v0  ;;  %1116 = vmatmul.f32.gmra.mxu2 %v4998_v57  ;;  %1916 = vmatpush.msrb.mxu1 %v4299_v10  ;;  %v5011_v0 = vpop.eup %3230  ;;  %v3368_v10 = vld [vmem:[%s3995_s9 + $0x88] sm:$0xff]  ;;  %3240 = vpow2.f32 %v855_v2  ;;  %v5089_v49 = vld [vmem:[%s4013_s8 + $0xa0] sm:$0xff] }
 0x16d   : > { %7005 = vst [vmem:[#allocation137_spill] sm:$0xff] %v4970_v20  ;;  %1157 = vmatmul.f32.gmra.mxu3 %v5006_v51  ;;  %v5016_v20 = vsub.f32 %v3367_v8, %v4365_v52  ;;  %1876 = vmatpush.msrb.mxu0 %v4318_v32  ;;  %v5019_v33 = vpop.eup %3232  ;;  %v5033_v32 = vsub.f32 %v3370_v34, %v4365_v52  ;;  %v5036_v8 = vld [vmem:[%s4013_s8 + $0x30] sm:$0xff]  ;;  %v5051_v34 = vld [vmem:[%s4013_s8 + $0x28] sm:$0xff] }
 0x16e   : > { %7006 = vst [vmem:[#allocation138_spill] sm:$0xff] %v4979_v17  ;;  %1198 = vmatmul.f32.gmra.mxu0 %v5011_v0  ;;  %v5024_v17 = vsub.f32 %v3368_v10, %v4365_v52  ;;  %1835 = vmatpush.msrb.mxu3 %v5027_v25  ;;  %v5041_v10 = vsub.f32 %v3372_v15, %v4365_v52  ;;  %v5057_v52 = vld [vmem:[%s4013_s8 + $0xa8] sm:$0xff] }
 0x16f   : > { %7007 = vst [vmem:[#allocation139_spill] sm:$0xff] %v4983_v28  ;;  %1239 = vmatmul.f32.gmra.mxu1 %v5019_v33  ;;  %1795 = vmatpush.msrb.mxu2 %v5036_v8  ;;  %v869_v9 = vmul.f32 1.442695, %v5016_v20  ;;  %v873_v15 = vmul.f32 1.442695, %v5033_v32 }
 0x170   : > { %7008 = vst [vmem:[#allocation140_spill] sm:$0xff] %v4989_v38  ;;  %1917 = vmatpush.msrb.mxu1 %v4321_v39  ;;  %1836 = vmatpush.msrb.mxu3 %v5045_v21  ;;  %v871_v2 = vmul.f32 1.442695, %v5024_v17  ;;  %v5060_v39 = vpop.eup %3234 }
 0x171   : > { %7009 = vst [vmem:[#allocation141_spill] sm:$0xff] %v4995_v48  ;;  %1877 = vmatpush.msrb.mxu0 %v4328_v44  ;;  %1796 = vmatpush.msrb.mxu2 %v5051_v34  ;;  %v5065_v44 = vld [vmem:[%s4013_s8 + $0x20] sm:$0xff]  ;;  %3242 = vpow2.f32 %v869_v9 }
 0x172   : > { %7010 = vst [vmem:[#allocation142_spill] sm:$0xff] %v4998_v57  ;;  %1918 = vmatpush.msrb.mxu1 %v7023_v13  ;;  %1837 = vmatpush.msrb.mxu3 %v5057_v52  ;;  %v875_v13 = vmul.f32 1.442695, %v5041_v10  ;;  %3244 = vpow2.f32 %v871_v2  ;;  %v3380_v9 = vld [vmem:[%s3995_s9 + $0xe0] sm:$0xff]  ;;  %v3382_v2 = vld [vmem:[%s3995_s9 + $0xe8] sm:$0xff] }
 0x173   : > { %7011 = vst [vmem:[#allocation143_spill] sm:$0xff] %v5003_v60  ;;  %1878 = vmatpush.msrb.mxu0 %v4341_v3  ;;  %1797 = vmatpush.msrb.mxu2 %v5065_v44  ;;  %v3377_v3 = vld [vmem:[%s3995_s9 + $0xd0] sm:$0xff]  ;;  %3246 = vpow2.f32 %v873_v15 }
 0x174   : > { %7012 = vst [vmem:[#allocation144_spill] sm:$0xff] %v5006_v51  ;;  %1259 = vmatmul.f32.vlgmr.msra.gmra.mxu2 %v5060_v39  ;;  %1838 = vmatpush.msrb.mxu3 %v5089_v49  ;;  %3248 = vpow2.f32 %v875_v13 }
 0x175   : > { %7013 = vst [vmem:[#allocation145_spill] sm:$0xff] %v5011_v0 }
 0x176   : > { %7014 = vst [vmem:[#allocation146_spill] sm:$0xff] %v5016_v20  ;;  %v7028_v20 = vld [vmem:[#allocation23_spill] sm:$0xff]  ;;  %1839 = vmatpush.msrb.mxu3 %v5107_v42 }
 0x177   : > { %7015 = vst [vmem:[#allocation147_spill] sm:$0xff] %v5019_v33  ;;  %1919 = vmatpush.msrb.mxu1 %v7028_v20  ;;  %v7031_v33 = vld [vmem:[#allocation26_spill] sm:$0xff]  ;;  %v3378_v20 = vld [vmem:[%s3995_s9 + $0xd8] sm:$0xff] }
 0x178   : > { %7016 = vst [vmem:[#allocation148_spill] sm:$0xff] %v5024_v17  ;;  %v5068_v17 = vpop.eup %3236  ;;  %1879 = vmatpush.msrb.mxu0 %v7031_v33  ;;  %v5095_v33 = vsub.f32 %v3380_v9, %v4470_v31  ;;  %v7040_v9 = vld [vmem:[#allocation30_spill] sm:$0xff] }
 0x179   : > { %7017 = vst [vmem:[#allocation149_spill] sm:$0xff] %v5027_v25  ;;  %v5073_v43 = vpop.eup %3238  ;;  %1300 = vmatmul.f32.vlgmr.msra.gmra.mxu3 %v5068_v17 }
 0x17a   : > { %7018 = vst [vmem:[#allocation150_spill] sm:$0xff] %v5033_v32  ;;  %v5078_v32 = vsub.f32 %v3377_v3, %v4470_v31  ;;  %v5081_v0 = vpop.eup %3240  ;;  %1341 = vmatmul.f32.vlgmr.msra.gmra.mxu0 %v5073_v43  ;;  %v5098_v3 = vld [vmem:[%s4013_s8 + $0x18] sm:$0xff] }
 0x17b   : > { %7019 = vst [vmem:[#allocation151_spill] sm:$0xff] %v5036_v8  ;;  %1382 = vmatmul.f32.vlgmr.msra.gmra.mxu1 %v5081_v0  ;;  %1798 = vmatpush.msrb.mxu2 %v5098_v3 }
 0x17c   : > { %7020 = vst [vmem:[#allocation152_spill] sm:$0xff] %v5041_v10  ;;  %v5086_v10 = vsub.f32 %v3378_v20, %v4470_v31  ;;  %v5103_v20 = vsub.f32 %v3382_v2, %v4470_v31  ;;  %v889_v15 = vmul.f32 1.442695, %v5078_v32  ;;  %1880 = vmatpush.msrb.mxu0 %v7040_v9  ;;  %v5119_v31 = vld [vmem:[%s4013_s8 + $0x90] sm:$0xff]  ;;  %v893_v2 = vmul.f32 1.442695, %v5095_v33 }
 0x17d   : > { %7021 = vst [vmem:[#allocation153_spill] sm:$0xff] %v5045_v21  ;;  %1840 = vmatpush.msrb.mxu3 %v5119_v31  ;;  %v5127_v9 = vld [vmem:[%s4013_s8 + $0x8] sm:$0xff] }
 0x17e   : > { %7022 = vst [vmem:[#allocation154_spill] sm:$0xff] %v5051_v34  ;;  %v891_v13 = vmul.f32 1.442695, %v5086_v10  ;;  %1881 = vmatpush.msrb.mxu0 %v4395_v7  ;;  %3250 = vpow2.f32 %v889_v15  ;;  %v3387_v7 = vld [vmem:[%s3995_s9 + $0x120] sm:$0xff]  ;;  %v3390_v15 = vld [vmem:[%s3995_s9 + $0x130] sm:$0xff] }
 0x17f   : > { %7024 = vst [vmem:[#allocation22_spill] sm:$0xff] %v5057_v52 }
 0x180   : > { %7025 = vst [vmem:[#allocation155_spill] sm:$0xff] %v5060_v39  ;;  %1882 = vmatpush.msrb.mxu0 %v7050_v37  ;;  %3252 = vpow2.f32 %v891_v13  ;;  %v5157_v37 = vsub.f32 %v3390_v15, %v4503_v36  ;;  %v3392_v13 = vld [vmem:[%s3995_s9 + $0x138] sm:$0xff]  ;;  %v3396_v39 = vld [vmem:[%s4013_s8 + $0x270] sm:$0xff] }
 0x181   : > { %7026 = vst [vmem:[#allocation156_spill] sm:$0xff] %v5065_v44  ;;  %3254 = vpow2.f32 %v893_v2  ;;  %v7059_v15 = vld [vmem:[#allocation41_spill] sm:$0xff] }
 0x182   : > { %7027 = vst [vmem:[#allocation157_spill] sm:$0xff] %v5068_v17  ;;  %1883 = vmatpush.msrb.mxu0 %v7059_v15 }
 0x183   : > { %7029 = vst [vmem:[#allocation23_spill] sm:$0xff] %v5073_v43  ;;  %v7038_v43 = vld [vmem:[#allocation27_spill] sm:$0xff] }
 0x184   : > { %7030 = vst [vmem:[#allocation158_spill] sm:$0xff] %v5078_v32  ;;  %1920 = vmatpush.msrb.mxu1 %v7038_v43  ;;  %v5122_v43 = vpop.eup %3242  ;;  %v7047_v32 = vld [vmem:[#allocation35_spill] sm:$0xff]  ;;  %2032 = vmatpush.msra.mxu0 %v4456_v53 }
 0x185   : > { %7032 = vst [vmem:[#allocation26_spill] sm:$0xff] %v5081_v0  ;;  %v5113_v0 = vld [vmem:[%s4013_s8 + $0x10] sm:$0xff]  ;;  %1262 = vmatmul.f32.gmra.mxu2 %v5122_v43 }
 0x186   : > { %7033 = vst [vmem:[#allocation159_spill] sm:$0xff] %v5086_v10  ;;  %1799 = vmatpush.msrb.mxu2 %v5113_v0  ;;  %1921 = vmatpush.msrb.mxu1 %v7042_v27  ;;  %v5130_v10 = vpop.eup %3244  ;;  %v895_v27 = vmul.f32 1.442695, %v5103_v20 }
 0x187   : > { %7034 = vst [vmem:[#allocation160_spill] sm:$0xff] %v5089_v49  ;;  %v5135_v22 = vpop.eup %3246  ;;  %1303 = vmatmul.f32.gmra.mxu3 %v5130_v10  ;;  %2033 = vmatpush.msra.mxu0 %v4475_v1 }
 0x188   : > { %7035 = vst [vmem:[#allocation161_spill] sm:$0xff] %v5095_v33  ;;  %1800 = vmatpush.msrb.mxu2 %v5127_v9  ;;  %1922 = vmatpush.msrb.mxu1 %v7047_v32  ;;  %v5140_v33 = vsub.f32 %v3387_v7, %v4503_v36  ;;  %v5143_v17 = vpop.eup %3248  ;;  %v3388_v32 = vld [vmem:[%s3995_s9 + $0x128] sm:$0xff]  ;;  %v5160_v7 = vld [vmem:[%s4013_s8] sm:$0xff]  ;;  %3256 = vpow2.f32 %v895_v27 }
 0x189   : > { %7036 = vst [vmem:[#allocation162_spill] sm:$0xff] %v5098_v3  ;;  %1344 = vmatmul.f32.gmra.mxu0 %v5135_v22  ;;  %1385 = vmatmul.f32.gmra.mxu1 %v5143_v17 }
 0x18a   : > { %7037 = vst [vmem:[#allocation163_spill] sm:$0xff] %v5103_v20  ;;  %v5148_v20 = vsub.f32 %v3388_v32, %v4503_v36  ;;  %1801 = vmatpush.msrb.mxu2 %v5160_v7  ;;  %v5165_v32 = vsub.f32 %v3392_v13, %v4503_v36  ;;  %v909_v2 = vmul.f32 1.442695, %v5140_v33  ;;  %v3395_v36 = vld [vmem:[%s4013_s8 + $0x2f8] sm:$0xff]  ;;  %v913_v13 = vmul.f32 1.442695, %v5157_v37  ;;  %2034 = vmatpush.msra.mxu0 %v4521_v40 }
 0x18b   : > { %7039 = vst [vmem:[#allocation27_spill] sm:$0xff] %v5107_v42  ;;  %v3409_v40 = vld [vmem:[%s3995_s9 + $0x1c0] sm:$0xff] }
 0x18c   : > { %7041 = vst [vmem:[#allocation30_spill] sm:$0xff] %v5113_v0  ;;  %v911_v27 = vmul.f32 1.442695, %v5148_v20  ;;  %3258 = vpow2.f32 %v909_v2  ;;  %v3402_v2 = vld [vmem:[%s3995_s9 + $0x180] sm:$0xff]  ;;  %2035 = vmatpush.msra.mxu0 %v4531_v56 }
 0x18d   : > { %7043 = vst [vmem:[#allocation31_spill] sm:$0xff] %v5119_v31 }
 0x18e   : > { %7044 = vst [vmem:[#allocation164_spill] sm:$0xff] %v5122_v43  ;;  %v5169_v43 = vld [vmem:[%s4013_s8 + $0x80] sm:$0xff]  ;;  %3260 = vpow2.f32 %v911_v27 }
 0x18f   : > { %7045 = vst [vmem:[#allocation165_spill] sm:$0xff] %v5127_v9  ;;  %3262 = vpow2.f32 %v913_v13  ;;  %v3406_v13 = vld [vmem:[%s4013_s8 + $0x258] sm:$0xff] }
 0x190   : > { %7046 = vst [vmem:[#allocation166_spill] sm:$0xff] %v5130_v10  ;;  %v5151_v10 = vld [vmem:[%s4013_s8 + $0x88] sm:$0xff] }
 0x191   : > { %7048 = vst [vmem:[#allocation35_spill] sm:$0xff] %v5135_v22  ;;  %1841 = vmatpush.msrb.mxu3 %v5151_v10  ;;  %v7057_v22 = vld [vmem:[#allocation38_spill] sm:$0xff] }
 0x192   : > { %7049 = vst [vmem:[#allocation167_spill] sm:$0xff] %v5140_v33  ;;  %1923 = vmatpush.msrb.mxu1 %v7057_v22  ;;  %v5178_v22 = vpop.eup %3250  ;;  %v3401_v33 = vld [vmem:[%s4013_s8 + $0x2e8] sm:$0xff] }
 0x193   : > { %7051 = vst [vmem:[#allocation37_spill] sm:$0xff] %v5143_v17  ;;  %1842 = vmatpush.msrb.mxu3 %v5169_v43  ;;  %v3394_v17 = vld [vmem:[%s4013_s8 + $0x278] sm:$0xff]  ;;  %v5183_v15 = vpop.eup %3252  ;;  %1265 = vmatmul.f32.gmra.mxu2 %v5178_v22 }
 0x194   : > { %7052 = vst [vmem:[#allocation168_spill] sm:$0xff] %v5148_v20  ;;  %1950 = vmatpush.msra.mxu2 %v3394_v17  ;;  %1924 = vmatpush.msrb.mxu1 %v4450_v45  ;;  %v915_v45 = vmul.f32 1.442695, %v5165_v32  ;;  %v3397_v17 = vld [vmem:[%s4013_s8 + $0x2f0] sm:$0xff] }
 0x195   : > { %7053 = vst [vmem:[#allocation169_spill] sm:$0xff] %v5151_v10  ;;  %1991 = vmatpush.msra.mxu3 %v3395_v36  ;;  %v5188_v36 = vpop.eup %3254  ;;  %v3813_v10 = vmov 3  }
 0x196   : > { %7054 = vst [vmem:[#allocation170_spill] sm:$0xff] %v5157_v37  ;;  %1951 = vmatpush.msra.mxu2 %v3396_v39  ;;  %1306 = vmatmul.f32.gmra.mxu3 %v5183_v15  ;;  %v3398_v39 = vld [vmem:[%s3995_s9 + $0x170] sm:$0xff]  ;;  %v3399_v37 = vld [vmem:[%s4013_s8 + $0x268] sm:$0xff]  ;;  %v5196_v20 = vpop.eup %3256  ;;  %3264 = vpow2.f32 %v915_v45  ;;  %v3407_v45 = vld [vmem:[%s4013_s8 + $0x2d8] sm:$0xff] }
 0x197   : > { %7055 = vst [vmem:[#allocation171_spill] sm:$0xff] %v5160_v7  ;;  %1992 = vmatpush.msra.mxu3 %v3397_v17  ;;  %v5193_v53 = vsub.f32 %v3398_v39, %v4305_v23  ;;  %1347 = vmatmul.f32.gmra.mxu0 %v5188_v36  ;;  %v3400_v17 = vld [vmem:[%s3995_s9 + $0x178] sm:$0xff]  ;;  %v3403_v39 = vld [vmem:[%s4013_s8 + $0x260] sm:$0xff] }
 0x198   : > { %7056 = vst [vmem:[#allocation172_spill] sm:$0xff] %v5165_v32  ;;  %1952 = vmatpush.msra.mxu2 %v3399_v37  ;;  %v5201_v32 = vsub.f32 %v3400_v17, %v4305_v23  ;;  %1388 = vmatmul.f32.gmra.mxu1 %v5196_v20  ;;  %v5207_v37 = vsub.f32 %v3402_v2, %v4305_v23  ;;  %v7068_v17 = vld [vmem:[#allocation44_spill] sm:$0xff] }
 0x199   : > { %7058 = vst [vmem:[#allocation38_spill] sm:$0xff] %v5169_v43  ;;  %1993 = vmatpush.msra.mxu3 %v3401_v33  ;;  %2073 = vmatpush.msra.mxu1 %v7068_v17  ;;  %v929_v33 = vmul.f32 1.442695, %v5193_v53  ;;  %v5237_v17 = vsub.f32 %v3409_v40, %v4388_v14  ;;  %v3413_v40 = vld [vmem:[%s4013_s8 + $0x248] sm:$0xff] }
 0x19a   : > { %7060 = vst [vmem:[#allocation41_spill] sm:$0xff] %v5178_v22  ;;  %1953 = vmatpush.msra.mxu2 %v3403_v39  ;;  %v931_v2 = vmul.f32 1.442695, %v5201_v32  ;;  %v5222_v39 = vpop.eup %3258  ;;  %3135 = vset.pattern.permute.xlu2 %v3813_v10 }
 0x19b   : > { %7061 = vst [vmem:[#allocation173_spill] sm:$0xff] %v5183_v15  ;;  %v3405_v15 = vld [vmem:[%s4013_s8 + $0x2e0] sm:$0xff]  ;;  %2074 = vmatpush.msra.mxu1 %v4493_v30  ;;  %v5227_v1 = vpop.eup %3260  ;;  %1268 = vmatmul.f32.gmra.mxu2 %v5222_v39  ;;  %3266 = vpow2.f32 %v929_v33  ;;  %v3412_v33 = vld [vmem:[%s3995_s9 + $0x1d0] sm:$0xff] }
 0x19c   : > { %7062 = vst [vmem:[#allocation174_spill] sm:$0xff] %v5188_v36  ;;  %v3404_v36 = vld [vmem:[%s3995_s9 + $0x188] sm:$0xff]  ;;  %1994 = vmatpush.msra.mxu3 %v3405_v15  ;;  %1954 = vmatpush.msra.mxu2 %v3406_v13  ;;  %v3408_v15 = vld [vmem:[%s4013_s8 + $0x250] sm:$0xff]  ;;  %v5232_v30 = vpop.eup %3262  ;;  %3268 = vpow2.f32 %v931_v2  ;;  %v5251_v56 = vsub.f32 %v3412_v33, %v4388_v14 }
 0x19d   : > { %7063 = vst [vmem:[#allocation175_spill] sm:$0xff] %v5193_v53  ;;  %v5212_v27 = vsub.f32 %v3404_v36, %v4305_v23  ;;  %v933_v23 = vmul.f32 1.442695, %v5207_v37  ;;  %2075 = vmatpush.msra.mxu1 %v4524_v11  ;;  %v5240_v13 = vpop.eup %3264  ;;  %v3410_v11 = vld [vmem:[%s3995_s9 + $0x1c8] sm:$0xff]  ;;  %3136 = vset.pattern.permute.xlu0 %v3813_v10 }
 0x19e   : > { %7064 = vst [vmem:[#allocation176_spill] sm:$0xff] %v5196_v20  ;;  %1995 = vmatpush.msra.mxu3 %v3407_v45  ;;  %1955 = vmatpush.msra.mxu2 %v3408_v15  ;;  %v5245_v45 = vsub.f32 %v3410_v11, %v4388_v14  ;;  %v3411_v15 = vld [vmem:[%s4013_s8 + $0x2d0] sm:$0xff]  ;;  %v7077_v11 = vld [vmem:[#allocation55_spill] sm:$0xff] }
 0x19f   : > { %7065 = vst [vmem:[#allocation177_spill] sm:$0xff] %v5201_v32  ;;  %v935_v36 = vmul.f32 1.442695, %v5212_v27  ;;  %1309 = vmatmul.f32.gmra.mxu3 %v5227_v1  ;;  %1350 = vmatmul.f32.gmra.mxu0 %v5232_v30  ;;  %3270 = vpow2.f32 %v933_v23  ;;  %v7078_v23 = vld [vmem:[#allocation63_spill] sm:$0xff]  ;;  %v3416_v32 = vld [vmem:[%s4013_s8 + $0x240] sm:$0xff] }
 0x1a0   : > { %7066 = vst [vmem:[#allocation178_spill] sm:$0xff] %v5207_v37  ;;  %1996 = vmatpush.msra.mxu3 %v3411_v15  ;;  %1391 = vmatmul.f32.gmra.mxu1 %v5240_v13  ;;  %v3415_v37 = vld [vmem:[%s4013_s8 + $0x2c8] sm:$0xff]  ;;  %v949_v15 = vmul.f32 1.442695, %v5237_v17  ;;  %v951_v33 = vmul.f32 1.442695, %v5245_v45 }
 0x1a1   : > { %7067 = vst [vmem:[#allocation179_spill] sm:$0xff] %v5212_v27  ;;  %1956 = vmatpush.msra.mxu2 %v3413_v40  ;;  %3272 = vpow2.f32 %v935_v36  ;;  %v3414_v27 = vld [vmem:[%s3995_s9 + $0x1d8] sm:$0xff]  ;;  %2076 = vmatpush.msra.mxu1 %v7077_v11  ;;  %v3417_v36 = vld [vmem:[%s4013_s8 + $0x2c0] sm:$0xff]  ;;  %v953_v40 = vmul.f32 1.442695, %v5251_v56  ;;  %v3424_v53 = vld [vmem:[%s3995_s9 + $0x228] sm:$0xff] }
 0x1a2   : > { %7069 = vst [vmem:[#allocation44_spill] sm:$0xff] %v5222_v39  ;;  %v5256_v2 = vsub.f32 %v3414_v27, %v4388_v14  ;;  %1997 = vmatpush.msra.mxu3 %v3415_v37  ;;  %2036 = vmatpush.msra.mxu0 %v7078_v23  ;;  %v5266_v14 = vpop.eup %3266  ;;  %v5268_v27 = vpop.f32.mrf.mxu0  ;;  %v3418_v37 = vld [vmem:[%s4013_s8 + $0x238] sm:$0xff]  ;;  %3274 = vpow2.f32 %v949_v15 }
 0x1a3   : > { %7070 = vst [vmem:[#allocation180_spill] sm:$0xff] %v5227_v1  ;;  %1957 = vmatpush.msra.mxu2 %v3416_v32  ;;  %2077 = vmatpush.msra.mxu1 %v4571_v59  ;;  %v5273_v11 = vpop.eup %3268  ;;  %v5275_v32 = vpop.f32.mrf.mxu1  ;;  %3276 = vpow2.f32 %v951_v33  ;;  %v3421_v15 = vld [vmem:[%s4013_s8 + $0x2b8] sm:$0xff]  ;;  %v5308_v33 = vsub.f32 %v3424_v53, %v4419_v4 }
 0x1a4   : > { %7071 = vst [vmem:[#allocation181_spill] sm:$0xff] %v5232_v30  ;;  %1998 = vmatpush.msra.mxu3 %v3417_v36  ;;  %2037 = vmatpush.msra.mxu0 %v4580_v5  ;;  %v955_v59 = vmul.f32 1.442695, %v5256_v2  ;;  %v5283_v5 = vpop.f32.mrf.mxu2  ;;  %v3419_v36 = vld [vmem:[%s3995_s9 + $0x210] sm:$0xff]  ;;  %3278 = vpow2.f32 %v953_v40  ;;  %v3426_v40 = vld [vmem:[%s4013_s8 + $0x228] sm:$0xff]  ;;  %v1056_v43 = vadd.f32 %v5275_v32, %v5268_v27 }
 0x1a5   : > { %7072 = vst [vmem:[#allocation182_spill] sm:$0xff] %v5237_v17  ;;  %1958 = vmatpush.msra.mxu2 %v3418_v37  ;;  %2078 = vmatpush.msra.mxu1 %v4588_v24  ;;  %v5280_v23 = vpop.eup %3270  ;;  %v5287_v37 = vsub.f32 %v3419_v36, %v4419_v4  ;;  %v5293_v24 = vpop.f32.mrf.mxu3  ;;  %v3423_v17 = vld [vmem:[%s4013_s8 + $0x230] sm:$0xff] }
 0x1a6   : > { %7073 = vst [vmem:[#allocation183_spill] sm:$0xff] %v5240_v13  ;;  %1271 = vmatmul.f32.gmra.mxu2 %v5266_v14  ;;  %2038 = vmatpush.msra.mxu0 %v4619_v46  ;;  %v3422_v46 = vld [vmem:[%s3995_s9 + $0x220] sm:$0xff]  ;;  %3280 = vpow2.f32 %v955_v59 }
 0x1a7   : > { %7074 = vst [vmem:[#allocation184_spill] sm:$0xff] %v5245_v45  ;;  %1312 = vmatmul.f32.gmra.mxu3 %v5273_v11  ;;  %1353 = vmatmul.f32.gmra.mxu0 %v5280_v23  ;;  %v5303_v36 = vsub.f32 %v3422_v46, %v4419_v4  ;;  %v3428_v59 = vld [vmem:[%s4013_s8 + $0x220] sm:$0xff] }
 0x1a8   : > { %7075 = vst [vmem:[#allocation185_spill] sm:$0xff] %v5251_v56  ;;  %v5290_v56 = vpop.eup %3272  ;;  %1999 = vmatpush.msra.mxu3 %v3421_v15  ;;  %1959 = vmatpush.msra.mxu2 %v3423_v17  ;;  %v969_v15 = vmul.f32 1.442695, %v5287_v37  ;;  %v3427_v17 = vld [vmem:[%s4013_s8 + $0x2a8] sm:$0xff] }
 0x1a9   : > { %7076 = vst [vmem:[#allocation186_spill] sm:$0xff] %v5256_v2  ;;  %v3420_v2 = vld [vmem:[%s3995_s9 + $0x218] sm:$0xff]  ;;  %1394 = vmatmul.f32.gmra.mxu1 %v5290_v56  ;;  %2039 = vmatpush.msra.mxu0 %v4632_v55 }
 0x1aa   : > { %7079 = vst [vmem:[#allocation55_spill] sm:$0xff] %v5266_v14  ;;  %v5297_v45 = vsub.f32 %v3420_v2, %v4419_v4  ;;  %2079 = vmatpush.msra.mxu1 %v4623_v6  ;;  %v3425_v2 = vld [vmem:[%s4013_s8 + $0x2b0] sm:$0xff]  ;;  %1960 = vmatpush.msra.mxu2 %v3426_v40  ;;  %v5318_v4 = vpop.eup %3274  ;;  %v5320_v53 = vpop.f32.mrf.mxu0  ;;  %v973_v6 = vmul.f32 1.442695, %v5303_v36  ;;  %3282 = vpow2.f32 %v969_v15 }
 0x1ab   : > { %7080 = vst [vmem:[#allocation63_spill] sm:$0xff] %v5273_v11  ;;  %2000 = vmatpush.msra.mxu3 %v3425_v2  ;;  %2040 = vmatpush.msra.mxu0 %v4671_v35  ;;  %v5325_v55 = vpop.eup %3276  ;;  %v5327_v2 = vpop.f32.mrf.mxu1  ;;  %v3429_v35 = vld [vmem:[%s3995_s9 + $0x260] sm:$0xff] }
 0x1ac   : > { %7081 = vst [vmem:[#allocation187_spill] sm:$0xff] %v5280_v23  ;;  %v971_v46 = vmul.f32 1.442695, %v5297_v45  ;;  %2080 = vmatpush.msra.mxu1 %v4638_v63  ;;  %1961 = vmatpush.msra.mxu2 %v3428_v59  ;;  %v975_v63 = vmul.f32 1.442695, %v5308_v33  ;;  %v5332_v40 = vpop.eup %3278  ;;  %v5349_v15 = vpop.f32.mrf.mxu2  ;;  %v1059_v49 = vadd.f32 %v5327_v2, %v5320_v53 }
 0x1ad   : > { %7082 = vst [vmem:[#allocation188_spill] sm:$0xff] %v5287_v37  ;;  %2001 = vmatpush.msra.mxu3 %v3427_v17  ;;  %v5337_v17 = vsub.f32 %v3429_v35, %v4458_v29  ;;  %2041 = vmatpush.msra.mxu0 %v4684_v19  ;;  %v5340_v59 = vpop.eup %3280  ;;  %v3432_v19 = vld [vmem:[%s3995_s9 + $0x270] sm:$0xff] }
 0x1ae   : > { %7083 = vst [vmem:[#allocation189_spill] sm:$0xff] %v5290_v56  ;;  %1274 = vmatmul.f32.gmra.mxu2 %v5318_v4  ;;  %2081 = vmatpush.msra.mxu1 %v4675_v12  ;;  %3284 = vpow2.f32 %v971_v46  ;;  %v3430_v12 = vld [vmem:[%s3995_s9 + $0x268] sm:$0xff]  ;;  %v5353_v35 = vsub.f32 %v3432_v19, %v4458_v29  ;;  %v5356_v46 = vpop.f32.mrf.mxu3  ;;  %v3436_v19 = vld [vmem:[%s4013_s8 + $0x210] sm:$0xff] }
 0x1af   : > { %7084 = vst [vmem:[#allocation190_spill] sm:$0xff] %v5297_v45  ;;  %1315 = vmatmul.f32.gmra.mxu3 %v5325_v55  ;;  %1356 = vmatmul.f32.gmra.mxu0 %v5332_v40  ;;  %3286 = vpow2.f32 %v973_v6  ;;  %v3433_v45 = vld [vmem:[%s4013_s8 + $0x218] sm:$0xff]  ;;  %v989_v6 = vmul.f32 1.442695, %v5337_v17 }
 0x1b0   : > { %7085 = vst [vmem:[#allocation191_spill] sm:$0xff] %v5303_v36  ;;  %v3431_v36 = vld [vmem:[%s4013_s8 + $0x2a0] sm:$0xff]  ;;  %1962 = vmatpush.msra.mxu2 %v3433_v45  ;;  %3288 = vpow2.f32 %v975_v63  ;;  %2082 = vmatpush.msra.mxu1 %v4690_v58  ;;  %v3437_v63 = vld [vmem:[%s4013_s8 + $0x290] sm:$0xff]  ;;  %v993_v58 = vmul.f32 1.442695, %v5353_v35 }
 0x1b1   : > { %7086 = vst [vmem:[#allocation192_spill] sm:$0xff] %v5308_v33  ;;  %v5345_v33 = vsub.f32 %v3430_v12, %v4458_v29  ;;  %2002 = vmatpush.msra.mxu3 %v3431_v36  ;;  %1397 = vmatmul.f32.gmra.mxu1 %v5340_v59  ;;  %v3434_v12 = vld [vmem:[%s3995_s9 + $0x278] sm:$0xff]  ;;  %3290 = vpow2.f32 %v989_v6  ;;  %s3749_s9 = scalar_lea.hbm %s3748_s7, 8 }
 0x1b2   : > { %7087 = vst [vmem:[#allocation193_spill] sm:$0xff] %v5318_v4  ;;  %v5360_v37 = vsub.f32 %v3434_v12, %v4458_v29  ;;  %v3435_v36 = vld [vmem:[%s4013_s8 + $0x298] sm:$0xff]  ;;  %2042 = vmatpush.msra.mxu0 %v4723_v61  ;;  %1963 = vmatpush.msra.mxu2 %v3436_v19  ;;  %v5372_v29 = vpop.f32.mrf.mxu0  ;;  %v7098_v19 = vld [vmem:[#allocation90_spill] sm:$0xff]  ;;  %p3750_p6 = scmp.ne.s32.totalorder %s3748_s7, %s3749_s9 }
 0x1b3   : > { %7088 = vst [vmem:[#allocation194_spill] sm:$0xff] %v5325_v55  ;;  %2003 = vmatpush.msra.mxu3 %v3435_v36  ;;  %v991_v45 = vmul.f32 1.442695, %v5345_v33  ;;  %2083 = vmatpush.msra.mxu1 %v4727_v18  ;;  %v7096_v12 = vld [vmem:[#allocation89_spill] sm:$0xff]  ;;  %v3438_v36 = vld [vmem:[%s4013_s8 + $0x208] sm:$0xff]  ;;  %v5379_v61 = vpop.f32.mrf.mxu1 }
 0x1b4   : > { %7089 = vst [vmem:[#allocation195_spill] sm:$0xff] %v5332_v40  ;;  %2043 = vmatpush.msra.mxu0 %v7096_v12  ;;  %1964 = vmatpush.msra.mxu2 %v3438_v36  ;;  %v995_v18 = vmul.f32 1.442695, %v5360_v37  ;;  %v7100_v12 = vld [vmem:[#allocation98_spill] sm:$0xff]  ;;  %v7103_v6 = vld [vmem:[#allocation101_spill] sm:$0xff]  ;;  %p3751_p13 = pnand %p3750_p6, %p3886_p11 }
 0x1b5   : > { %7090 = vst [vmem:[#allocation196_spill] sm:$0xff] %v5337_v17  ;;  %2004 = vmatpush.msra.mxu3 %v3437_v63  ;;  %2084 = vmatpush.msra.mxu1 %v7098_v19  ;;  %3292 = vpow2.f32 %v991_v45  ;;  %v3439_v19 = vld [vmem:[%s4013_s8 + $0x288] sm:$0xff]  ;;  %v3440_v40 = vld [vmem:[%s4013_s8 + $0x200] sm:$0xff] }
 0x1b6   : > { %7091 = vst [vmem:[#allocation197_spill] sm:$0xff] %v5340_v59  ;;  %v5370_v59 = vpop.eup %3282  ;;  %2044 = vmatpush.msra.mxu0 %v7100_v12  ;;  %3294 = vpow2.f32 %v993_v58  ;;  %v7104_v12 = vld [vmem:[#allocation102_spill] sm:$0xff]  ;;  %1965 = vmatpush.msra.mxu2 %v3440_v40  ;;  %p3752_p2 = pneg %p3751_p13 }
 0x1b7   : > { %7092 = vst [vmem:[#allocation198_spill] sm:$0xff] %v5345_v33  ;;  %v5377_v17 = vpop.eup %3284  ;;  %1277 = vmatmul.f32.gmra.mxu2 %v5370_v59  ;;  %2005 = vmatpush.msra.mxu3 %v3439_v19  ;;  %v5396_v33 = vpop.f32.mrf.mxu3  ;;  %3296 = vpow2.f32 %v995_v18  ;;  %v7105_v45 = vld [vmem:[#allocation110_spill] sm:$0xff]  ;;  %v7109_v18 = vld [vmem:[#allocation113_spill] sm:$0xff] }
 0x1b8   : > { %7093 = vst [vmem:[#allocation199_spill] sm:$0xff] %v5353_v35  ;;  %v5384_v63 = vpop.eup %3286  ;;  %1318 = vmatmul.f32.gmra.mxu3 %v5377_v17  ;;  %v7102_v35 = vld [vmem:[#allocation99_spill] sm:$0xff]  ;;  %2045 = vmatpush.msra.mxu0 %v7103_v6  ;;  %v7111_v40 = vld [vmem:[#allocation114_spill] sm:$0xff] }
 0x1b9   : > { %7094 = vst [vmem:[#allocation200_spill] sm:$0xff] %v5360_v37  ;;  %v5388_v36 = vpop.eup %3288  ;;  %1359 = vmatmul.f32.gmra.mxu0 %v5384_v63  ;;  %2085 = vmatpush.msra.mxu1 %v7102_v35  ;;  %v5393_v37 = vpop.f32.mrf.mxu2  ;;  %v7106_v35 = vld [vmem:[#allocation112_spill] sm:$0xff] }
 0x1ba   : > { %7095 = vst [vmem:[#allocation201_spill] sm:$0xff] %v5370_v59  ;;  %1400 = vmatmul.f32.gmra.mxu1 %v5388_v36  ;;  %2046 = vmatpush.msra.mxu0 %v7105_v45  ;;  %v5406_v58 = vpop.f32.mrf.mxu0 }
 0x1bb   : > { %7097 = vst [vmem:[#allocation89_spill] sm:$0xff] %v5377_v17  ;;  %2086 = vmatpush.msra.mxu1 %v7104_v12  ;;  %v5410_v56 = vpop.f32.mrf.mxu1  ;;  %3137 = vset.pattern.permute.xlu1 %v3813_v10  ;;  %v1062_v10 = vadd.f32 %v5379_v61, %v5372_v29 }
 0x1bc   : > { %7099 = vst [vmem:[#allocation90_spill] sm:$0xff] %v5384_v63  ;;  %v3441_v63 = vld [vmem:[%s4013_s8 + $0x280] sm:$0xff]  ;;  %2047 = vmatpush.msra.mxu0 %v7109_v18 }
 0x1bd   : > { %7101 = vst [vmem:[#allocation98_spill] sm:$0xff] %v5388_v36  ;;  %2006 = vmatpush.msra.mxu3 %v3441_v63  ;;  %2087 = vmatpush.msra.mxu1 %v7106_v35  ;;  %v5404_v36 = vpop.eup %3290 }
 0x1be   : > { %7107 = vst [vmem:[#allocation99_spill] sm:$0xff] %v5404_v36  ;;  %v5408_v19 = vpop.eup %3292 }
 0x1bf   : > { %7108 = vst [vmem:[#allocation101_spill] sm:$0xff] %v5408_v19  ;;  %1280 = vmatmul.f32.gmra.mxu2 %v5404_v36  ;;  %v5414_v6 = vpop.eup %3294  ;;  %2088 = vmatpush.msra.mxu1 %v7111_v40  ;;  %v5424_v45 = vpop.f32.mrf.mxu3 }
 0x1c0   : > { %7110 = vst [vmem:[#allocation102_spill] sm:$0xff] %v5414_v6  ;;  %1321 = vmatmul.f32.gmra.mxu3 %v5408_v19  ;;  %v5418_v63 = vpop.eup %3296 }
 0x1c1   : > { %7112 = vst [vmem:[#allocation110_spill] sm:$0xff] %v5418_v63  ;;  %1362 = vmatmul.f32.gmra.mxu0 %v5414_v6  ;;  %v5422_v12 = vpop.f32.mrf.mxu2 }
 0x1c2   : > { %1403 = vmatmul.f32.gmra.mxu1 %v5418_v63  ;;  %v1178_v35 = vpop.f32.mrf.mxu0 }
 0x1c3   : > { %v1219_v23 = vpop.f32.mrf.mxu1 }
 0x1c7   : > { %v1137_v18 = vpop.f32.mrf.mxu3 }
 0x1c9   : > { %v1096_v13 = vpop.f32.mrf.mxu2 }
 0x1ca   : > { %v1181_v30 = vpop.f32.mrf.mxu0  ;;  %v1097_v9 = vadd.f32 %v1096_v13, %v1056_v43 }
 0x1cb   : > { %v1222_v20 = vpop.f32.mrf.mxu1 }
 0x1cc   : > { %v1138_v42 = vadd.f32 %v1137_v18, %v1097_v9 }
 0x1ce   : > { %v1179_v27 = vadd.f32 %v1178_v35, %v1138_v42 }
 0x1cf   : > { %v1140_v19 = vpop.f32.mrf.mxu3 }
 0x1d0   : > { %v1220_v8 = vadd.f32 %v1219_v23, %v1179_v27  ;;  %v1065_v23 = vadd.f32 %v5410_v56, %v5406_v58  ;;  %v1068_v56 = vadd.f32 %v5293_v24, %v5283_v5 }
 0x1d1   : > { %v1099_v36 = vpop.f32.mrf.mxu2 }
 0x1d2   : > { %v1184_v17 = vpop.f32.mrf.mxu0  ;;  %v1100_v32 = vadd.f32 %v1099_v36, %v1059_v49 }
 0x1d3   : > { %v5426_v40 = vpop.f32.mrf.mxu1 }
 0x1d4   : > { %v1141_v21 = vadd.f32 %v1140_v19, %v1100_v32 }
 0x1d6   : > { %v1182_v9 = vadd.f32 %v1181_v30, %v1141_v21 }
 0x1d7   : > { %v1143_v55 = vpop.f32.mrf.mxu3 }
 0x1d8   : > { %v1223_v42 = vadd.f32 %v1222_v20, %v1182_v9 }
 0x1d9   : > { %v1102_v59 = vpop.f32.mrf.mxu2 }
 0x1da   : > { %v5428_v6 = vpop.f32.mrf.mxu0  ;;  %v1103_v18 = vadd.f32 %v1102_v59, %v1062_v10 }
 0x1db   : > { %v5430_v63 = vpop.f32.mrf.mxu1 }
 0x1dc   : > { %v1144_v2 = vadd.f32 %v1143_v55, %v1103_v18 }
 0x1df   : > { %v1146_v11 = vpop.f32.mrf.mxu3 }
 0x1e1   : > { %v1105_v4 = vpop.f32.mrf.mxu2 }
 0x1e2   : > { %v5432_v14 = vpop.f32.mrf.mxu0  ;;  %v1106_v61 = vadd.f32 %v1105_v4, %v1065_v23 }
 0x1e3   : > { %v5434_v1 = vpop.f32.mrf.mxu1 }
 0x1e7   : > { %v5438_v22 = vpop.f32.mrf.mxu3 }
 0x1e9   : > { %v5436_v39 = vpop.f32.mrf.mxu2 }
 0x1ea   : > { %v5440_v51 = vpop.f32.mrf.mxu0 }
 0x1eb   : > { %v5442_v57 = vpop.f32.mrf.mxu1 }
 0x1ef   : > { %v5446_v16 = vpop.f32.mrf.mxu3 }
 0x1f1   : > { %v5444_v41 = vpop.f32.mrf.mxu2 }
 0x1f2   : > { %v5448_v47 = vpop.f32.mrf.mxu0 }
 0x1f3   : > { %v5450_v26 = vpop.f32.mrf.mxu1 }
 0x1f7   : > { %v5456_v7 = vpop.f32.mrf.mxu3 }
 0x1f9   : > { %v5452_v62 = vpop.f32.mrf.mxu2 }
 0x1fa   : > { %v5458_v31 = vpop.f32.mrf.mxu0 }
 0x1fb   : > { %v5460_v0 = vpop.f32.mrf.mxu1 }
 0x1ff   : > { %v5466_v44 = vpop.f32.mrf.mxu3 }
 0x201   : > { %v5462_v3 = vpop.f32.mrf.mxu2 }
 0x202   : > { %v1342_v52 = vpop.f32.mrf.mxu0 }
 0x203   : > { %v1383_v34 = vpop.f32.mrf.mxu1 }
 0x207   : > { %v1301_v25 = vpop.f32.mrf.mxu3 }
 0x209   : > { %v1260_v43 = vpop.f32.mrf.mxu2 }
 0x20a   : > { %v1261_v13 = vadd.f32 %v1260_v43, %v1220_v8  ;;  %v1345_v48 = vpop.f32.mrf.mxu0  ;;  %v1185_v8 = vadd.f32 %v1184_v17, %v1144_v2  ;;  %v1109_v17 = vadd.f32 %v5436_v39, %v1068_v56 }
 0x20b   : > { %v1386_v53 = vpop.f32.mrf.mxu1 }
 0x20c   : > { %v1302_v60 = vadd.f32 %v1301_v25, %v1261_v13 }
 0x20e   : > { %v1343_v38 = vadd.f32 %v1342_v52, %v1302_v60  ;;  %v1147_v52 = vadd.f32 %v1146_v11, %v1106_v61 }
 0x20f   : > { %v1304_v29 = vpop.f32.mrf.mxu3 }
 0x210   : > { %v5470_v28 = vadd.f32 %v1383_v34, %v1343_v38  ;;  %v1226_v34 = vadd.f32 %v5426_v40, %v1185_v8  ;;  %v1150_v40 = vadd.f32 %v5438_v22, %v1109_v17 }
 0x211   : > { %v1263_v49 = vpop.f32.mrf.mxu2 }
 0x212   : > { %7113 = vst [vmem:[#allocation112_spill] sm:$0xff] %v5470_v28  ;;  %3298 = vrcp.f32 %v5470_v28  ;;  %v1264_v36 = vadd.f32 %v1263_v49, %v1223_v42  ;;  %v1191_v10 = vadd.f32 %v5432_v14, %v1150_v40  ;;  %v1074_v14 = vadd.f32 %v5396_v33, %v5393_v37 }
 0x213   : > { %v1077_v33 = vadd.f32 %v5424_v45, %v5422_v12 }
 0x214   : > { %v1305_v21 = vadd.f32 %v1304_v29, %v1264_v36  ;;  %v1348_v30 = vpop.f32.mrf.mxu0  ;;  %v1232_v42 = vadd.f32 %v5434_v1, %v1191_v10  ;;  %v1115_v36 = vadd.f32 %v5452_v62, %v1074_v14  ;;  %v421_v10 = vld [vmem:[%s4002_s1] sm:$0xff]  ;;  %v7131_v14 = vld [vmem:[#allocation73_spill] sm:$0xff] }
 0x215   : > { %v1389_v59 = vpop.f32.mrf.mxu1 }
 0x216   : > { %v1346_v25 = vadd.f32 %v1345_v48, %v1305_v21  ;;  %v1188_v48 = vadd.f32 %v5428_v6, %v1147_v52  ;;  %v1071_v6 = vadd.f32 %v5356_v46, %v5349_v15  ;;  %v1156_v1 = vadd.f32 %v5456_v7, %v1115_v36 }
 0x217   : > { %v1118_v7 = vadd.f32 %v5462_v3, %v1077_v33 }
 0x218   : > { %v5475_v60 = vpop.eup %3298  ;;  %v5477_v38 = vadd.f32 %v1386_v53, %v1346_v25  ;;  %v1229_v5 = vadd.f32 %v5430_v63, %v1188_v48  ;;  %v1112_v13 = vadd.f32 %v5444_v41, %v1071_v6 }
 0x219   : > { %7114 = vst [vmem:[#allocation113_spill] sm:$0xff] %v5475_v60  ;;  %v1266_v20 = vpop.f32.mrf.mxu2  ;;  %1417 = vperm.xlu2 %3135, %v5475_v60   ;;  %v1307_v55 = vpop.f32.mrf.mxu3  ;;  %v7183_v60 = vld [vmem:[#allocation77_spill] sm:$0xff] }
 0x21a   : > { %7115 = vst [vmem:[#allocation114_spill] sm:$0xff] %v5477_v38  ;;  %3300 = vrcp.f32 %v5477_v38  ;;  %v1267_v4 = vadd.f32 %v1266_v20, %v1226_v34  ;;  %v1153_v63 = vadd.f32 %v5446_v16, %v1112_v13 }
 0x21c   : > { %v1308_v58 = vadd.f32 %v1307_v55, %v1267_v4  ;;  %v1351_v11 = vpop.f32.mrf.mxu0  ;;  %v1194_v23 = vadd.f32 %v5440_v51, %v1153_v63  ;;  %v7129_v63 = vld [vmem:[#allocation39_spill] sm:$0xff] }
 0x21d   : > { %v1392_v35 = vpop.f32.mrf.mxu1 }
 0x21e   : > { %v1349_v19 = vadd.f32 %v1348_v30, %v1308_v58  ;;  %v1235_v21 = vadd.f32 %v5442_v57, %v1194_v23  ;;  %v1159_v57 = vadd.f32 %v5466_v44, %v1118_v7  ;;  %v3446_v7 = vld [vmem:[%s4013_s8 + $0x470] sm:$0xff] }
 0x220   : > { %v5486_v27 = vpop.eup %3300  ;;  %v5489_v32 = vadd.f32 %v1389_v59, %v1349_v19  ;;  %v1197_v59 = vadd.f32 %v5448_v47, %v1156_v1  ;;  %v1200_v3 = vadd.f32 %v5458_v31, %v1159_v57  ;;  %v3449_v57 = vld [vmem:[%s4013_s8 + $0xf0] sm:$0xff] }
 0x221   : > { %7116 = vst [vmem:[#allocation202_spill] sm:$0xff] %v5486_v27  ;;  %v1269_v24 = vpop.f32.mrf.mxu2  ;;  %1422 = vperm.xlu0 %3136, %v5486_v27  }
 0x222   : > { %7117 = vst [vmem:[#allocation203_spill] sm:$0xff] %v5489_v32  ;;  %3302 = vrcp.f32 %v5489_v32  ;;  %v1270_v39 = vadd.f32 %v1269_v24, %v1229_v5  ;;  %v1310_v43 = vpop.f32.mrf.mxu3  ;;  %v1238_v4 = vadd.f32 %v5450_v26, %v1197_v59  ;;  %v1241_v19 = vadd.f32 %v5460_v0, %v1200_v3  ;;  %v3445_v59 = vld [vmem:[%s4013_s8 + $0xf8] sm:$0xff]  ;;  %v3455_v3 = vld [vmem:[%s4013_s8 + $0x4e0] sm:$0xff] }
 0x224   : > { %v1311_v9 = vadd.f32 %v1310_v43, %v1270_v39  ;;  %v1354_v18 = vpop.f32.mrf.mxu0 }
 0x226   : > { %v1352_v22 = vadd.f32 %v1351_v11, %v1311_v9  ;;  %v1395_v15 = vpop.f32.mrf.mxu1  ;;  %v422_v9 = vld [vmem:[%s4002_s1 + $0x8] sm:$0xff] }
 0x228   : > { %v5498_v53 = vpop.eup %3302  ;;  %v5501_v2 = vadd.f32 %v1392_v35, %v1352_v22  ;;  %v423_v22 = vld [vmem:[%s4002_s1 + $0x10] sm:$0xff] }
 0x229   : > { %7118 = vst [vmem:[#allocation204_spill] sm:$0xff] %v5498_v53  ;;  %v1272_v46 = vpop.f32.mrf.mxu2  ;;  %1427 = vperm.xlu1 %3137, %v5498_v53   ;;  %v491_v53 = vld [vmem:[%s4002_s1 + $0x230] sm:$0xff] }
 0x22a   : > { %7119 = vst [vmem:[#allocation205_spill] sm:$0xff] %v5501_v2  ;;  %3304 = vrcp.f32 %v5501_v2  ;;  %v1273_v41 = vadd.f32 %v1272_v46, %v1232_v42  ;;  %v1313_v49 = vpop.f32.mrf.mxu3 }
 0x22c   : > { %v1314_v16 = vadd.f32 %v1313_v49, %v1273_v41  ;;  %v1357_v30 = vpop.f32.mrf.mxu0  ;;  %v7132_v49 = vld [vmem:[#allocation74_spill] sm:$0xff] }
 0x22e   : > { %v1355_v29 = vadd.f32 %v1354_v18, %v1314_v16  ;;  %v1398_v25 = vpop.f32.mrf.mxu1  ;;  %v424_v18 = vld [vmem:[%s4002_s1 + $0x18] sm:$0xff] }
 0x230   : > { %v5510_v8 = vpop.eup %3304  ;;  %v5513_v61 = vadd.f32 %v1395_v15, %v1355_v29  ;;  %v7130_v15 = vld [vmem:[#allocation42_spill] sm:$0xff] }
 0x231   : > { %7120 = vst [vmem:[#allocation206_spill] sm:$0xff] %v5510_v8  ;;  %v1275_v37 = vpop.f32.mrf.mxu2  ;;  %1432 = vperm.xlu2 %3135, %v5510_v8   ;;  %v501_v8 = vld [vmem:[%s4010_s22] sm:$0xff] }
 0x232   : > { %7121 = vst [vmem:[#allocation207_spill] sm:$0xff] %v5513_v61  ;;  %3306 = vrcp.f32 %v5513_v61  ;;  %v1276_v62 = vadd.f32 %v1275_v37, %v1235_v21  ;;  %v1316_v51 = vpop.f32.mrf.mxu3 }
 0x234   : > { %v1317_v52 = vadd.f32 %v1316_v51, %v1276_v62  ;;  %v3442_v62 = vld [vmem:[%s4013_s8 + $0x478] sm:$0xff] }
 0x235   : > { %v3443_v51 = vld [vmem:[%s4013_s8 + $0x4f8] sm:$0xff] }
 0x236   : > { %v1358_v34 = vadd.f32 %v1357_v30, %v1317_v52  ;;  %v1360_v47 = vpop.f32.mrf.mxu0  ;;  %v3447_v52 = vld [vmem:[%s4013_s8 + $0x4f0] sm:$0xff] }
 0x237   : > { %v1401_v17 = vpop.f32.mrf.mxu1 }
 0x238   : > { %v5522_v20 = vpop.eup %3306  ;;  %v5525_v56 = vadd.f32 %v1398_v25, %v1358_v34  ;;  %v3444_v25 = vld [vmem:[%s4013_s8 + $0x78] sm:$0xff]  ;;  %v3448_v34 = vld [vmem:[%s4013_s8 + $0x70] sm:$0xff] }
 0x239   : > { %7122 = vst [vmem:[#allocation208_spill] sm:$0xff] %v5522_v20  ;;  %1437 = vperm.xlu2 %3135, %v5522_v20   ;;  %v7175_v20 = vld [vmem:[#allocation131_spill] sm:$0xff] }
 0x23a   : > { %7123 = vst [vmem:[#allocation209_spill] sm:$0xff] %v5525_v56  ;;  %v1278_v12 = vpop.f32.mrf.mxu2  ;;  %3308 = vrcp.f32 %v5525_v56 }
 0x23b   : > { %v1279_v45 = vadd.f32 %v1278_v12, %v1238_v4  ;;  %v1319_v55 = vpop.f32.mrf.mxu3  ;;  %v3450_v4 = vld [vmem:[%s4013_s8 + $0x468] sm:$0xff] }
 0x23c   : > { %v3451_v12 = vld [vmem:[%s4013_s8 + $0x4e8] sm:$0xff] }
 0x23d   : > { %v1320_v48 = vadd.f32 %v1319_v55, %v1279_v45  ;;  %v3452_v45 = vld [vmem:[%s4013_s8 + $0x68] sm:$0xff] }
 0x23e   : > { %v1363_v5 = vpop.f32.mrf.mxu0  ;;  %v3453_v55 = vld [vmem:[%s4013_s8 + $0xe8] sm:$0xff] }
 0x23f   : > { %v1361_v58 = vadd.f32 %v1360_v47, %v1320_v48  ;;  %v1404_v6 = vpop.f32.mrf.mxu1  ;;  %v3454_v47 = vld [vmem:[%s4013_s8 + $0x460] sm:$0xff] }
 0x240   : > { %v5531_v11 = vpop.eup %3308  ;;  %v3456_v48 = vld [vmem:[%s4013_s8 + $0x60] sm:$0xff] }
 0x241   : > { %7124 = vst [vmem:[#allocation210_spill] sm:$0xff] %v5531_v11  ;;  %v5533_v44 = vadd.f32 %v1401_v17, %v1361_v58  ;;  %1442 = vperm.xlu1 %3137, %v5531_v11   ;;  %v3457_v17 = vld [vmem:[%s4013_s8 + $0xe0] sm:$0xff]  ;;  %v3458_v58 = vld [vmem:[%s4013_s8 + $0x458] sm:$0xff] }
 0x242   : > { %v1281_v26 = vpop.f32.mrf.mxu2  ;;  %v481_v11 = vld [vmem:[%s4002_s1 + $0x1e0] sm:$0xff] }
 0x243   : > { %7125 = vst [vmem:[#allocation211_spill] sm:$0xff] %v5533_v44  ;;  %3310 = vrcp.f32 %v5533_v44  ;;  %v1282_v35 = vadd.f32 %v1281_v26, %v1241_v19  ;;  %v1322_v31 = vpop.f32.mrf.mxu3  ;;  %v3459_v19 = vld [vmem:[%s4013_s8 + $0x4d8] sm:$0xff]  ;;  %v482_v44 = vld [vmem:[%s4002_s1 + $0x1e8] sm:$0xff] }
 0x244   : > { %v3460_v26 = vld [vmem:[%s4013_s8 + $0x58] sm:$0xff] }
 0x245   : > { %v1323_v40 = vadd.f32 %v1322_v31, %v1282_v35  ;;  %v3461_v35 = vld [vmem:[%s4013_s8 + $0xd8] sm:$0xff]  ;;  %v3462_v31 = vld [vmem:[%s4013_s8 + $0x450] sm:$0xff] }
 0x247   : > { %v1364_v24 = vadd.f32 %v1363_v5, %v1323_v40  ;;  %v3463_v40 = vld [vmem:[%s4013_s8 + $0x4d0] sm:$0xff] }
 0x248   : > { %v3464_v5 = vld [vmem:[%s4013_s8 + $0x50] sm:$0xff] }
 0x249   : > { %v5538_v39 = vpop.eup %3310  ;;  %v5540_v43 = vadd.f32 %v1404_v6, %v1364_v24  ;;  %v3465_v24 = vld [vmem:[%s4013_s8 + $0x448] sm:$0xff] }
 0x24a   : > { %7126 = vst [vmem:[#allocation212_spill] sm:$0xff] %v5538_v39  ;;  %1447 = vperm.xlu2 %3135, %v5538_v39   ;;  %v3466_v6 = vld [vmem:[%s4013_s8 + $0x4c8] sm:$0xff] }
 0x24b   : > { %7127 = vst [vmem:[#allocation213_spill] sm:$0xff] %v5540_v43  ;;  %3312 = vrcp.f32 %v5540_v43 }
 0x251   : > { %v5544_v0 = vpop.eup %3312 }
 0x252   : > { %7128 = vst [vmem:[#allocation214_spill] sm:$0xff] %v5544_v0  ;;  %1452 = vperm.xlu1 %3137, %v5544_v0   ;;  %v7174_v0 = vld [vmem:[#allocation57_spill] sm:$0xff] }
 0x273   : > { %v5548_v13 = vpop.permute.xlu2 %1417 }
 0x274   : > { %v1455_v42 = vmul.f32 %v7129_v63, %v5548_v13  ;;  %v1456_v46 = vmul.f32 %v7130_v15, %v5548_v13  ;;  %v1457_v41 = vmul.f32 %v7131_v14, %v5548_v13  ;;  %v1458_v23 = vmul.f32 %v7132_v49, %v5548_v13 }
 0x276   : > { %v1626_v36 = vsub.f32 %v1455_v42, %v421_v10  ;;  %v1627_v16 = vsub.f32 %v1456_v46, %v422_v9  ;;  %v1628_v29 = vsub.f32 %v1457_v41, %v423_v22  ;;  %v1629_v1 = vsub.f32 %v1458_v23, %v424_v18  ;;  %v7133_v10 = vld [vmem:[#allocation139_spill] sm:$0xff]  ;;  %v3467_v9 = vld [vmem:[%s4013_s8 + $0x440] sm:$0xff]  ;;  %v7134_v18 = vld [vmem:[#allocation140_spill] sm:$0xff] }
 0x277   : > { %v3468_v22 = vld [vmem:[%s4013_s8 + $0x4c0] sm:$0xff]  ;;  %v7135_v42 = vld [vmem:[#allocation141_spill] sm:$0xff]  ;;  %v7136_v41 = vld [vmem:[#allocation143_spill] sm:$0xff] }
 0x278   : > { %v1706_v21 = vand.u32 2147483647, %v1626_v36  ;;  %v1707_v30 = vand.u32 2147483647, %v1627_v16  ;;  %v1708_v37 = vand.u32 2147483647, %v1628_v29 }
 0x279   : > { %v1709_v33 = vand.u32 2147483647, %v1629_v1  ;;  %v3470_v46 = vld [vmem:[%s4013_s8 + $0x4b8] sm:$0xff]  ;;  %v3472_v23 = vld [vmem:[%s4013_s8 + $0x4b0] sm:$0xff]  ;;  %v3473_v16 = vld [vmem:[%s4013_s8 + $0x428] sm:$0xff] }
 0x27a   : > { %1802 = vmatmul.f32.vlgmr.msrb.gmra.mxu2 %v1706_v21  ;;  %1843 = vmatmul.f32.vlgmr.msrb.gmra.mxu3 %v1707_v30  ;;  %v7137_v36 = vld [vmem:[#allocation149_spill] sm:$0xff]  ;;  %v7138_v29 = vld [vmem:[#allocation151_spill] sm:$0xff]  ;;  %v431_v30 = vld [vmem:[%s4002_s1 + $0x50] sm:$0xff] }
 0x27b   : > { %1884 = vmatmul.f32.vlgmr.msrb.gmra.mxu0 %v1708_v37  ;;  %1925 = vmatmul.f32.vlgmr.msrb.gmra.mxu1 %v1709_v33  ;;  %v3474_v1 = vld [vmem:[%s4013_s8 + $0x4a8] sm:$0xff]  ;;  %v7139_v21 = vld [vmem:[#allocation153_spill] sm:$0xff]  ;;  %v3475_v37 = vld [vmem:[%s4013_s8 + $0x420] sm:$0xff] }
 0x27c   : > { %2114 = vmatpush.msrb.mxu2 %v3442_v62  ;;  %2155 = vmatpush.msrb.mxu3 %v3443_v51  ;;  %v7140_v33 = vld [vmem:[#allocation154_spill] sm:$0xff]  ;;  %v432_v51 = vld [vmem:[%s4002_s1 + $0x58] sm:$0xff] }
 0x27d   : > { %2333 = vmatpush.msrb.mxu0 %v3444_v25  ;;  %2374 = vmatpush.msrb.mxu1 %v3445_v59  ;;  %v433_v25 = vld [vmem:[%s4002_s1 + $0x60] sm:$0xff]  ;;  %v434_v59 = vld [vmem:[%s4002_s1 + $0x68] sm:$0xff] }
 0x27e   : > { %2115 = vmatpush.msrb.mxu2 %v3446_v7  ;;  %2156 = vmatpush.msrb.mxu3 %v3447_v52  ;;  %v3476_v7 = vld [vmem:[%s4013_s8 + $0x4a0] sm:$0xff] }
 0x27f   : > { %2334 = vmatpush.msrb.mxu0 %v3448_v34  ;;  %2375 = vmatpush.msrb.mxu1 %v3449_v57  ;;  %v7141_v52 = vld [vmem:[#allocation22_spill] sm:$0xff]  ;;  %v7142_v34 = vld [vmem:[#allocation45_spill] sm:$0xff] }
 0x280   : > { %2116 = vmatpush.msrb.mxu2 %v3450_v4  ;;  %2157 = vmatpush.msrb.mxu3 %v3451_v12  ;;  %v7143_v4 = vld [vmem:[#allocation46_spill] sm:$0xff] }
 0x281   : > { %2335 = vmatpush.msrb.mxu0 %v3452_v45  ;;  %2376 = vmatpush.msrb.mxu1 %v3453_v55  ;;  %v7144_v45 = vld [vmem:[#allocation81_spill] sm:$0xff] }
 0x282   : > { %2117 = vmatpush.msrb.mxu2 %v3454_v47  ;;  %2158 = vmatpush.msrb.mxu3 %v3455_v3  ;;  %v7145_v47 = vld [vmem:[#allocation82_spill] sm:$0xff] }
 0x283   : > { %2336 = vmatpush.msrb.mxu0 %v3456_v48  ;;  %2377 = vmatpush.msrb.mxu1 %v3457_v17  ;;  %v3477_v48 = vld [vmem:[%s4013_s8 + $0x418] sm:$0xff] }
 0x284   : > { %2118 = vmatpush.msrb.mxu2 %v3458_v58  ;;  %2159 = vmatpush.msrb.mxu3 %v3459_v19  ;;  %v3478_v17 = vld [vmem:[%s4013_s8 + $0x498] sm:$0xff] }
 0x285   : > { %2337 = vmatpush.msrb.mxu0 %v3460_v26  ;;  %2378 = vmatpush.msrb.mxu1 %v3461_v35 }
 0x286   : > { %2119 = vmatpush.msrb.mxu2 %v3462_v31  ;;  %2160 = vmatpush.msrb.mxu3 %v3463_v40  ;;  %v3479_v31 = vld [vmem:[%s4013_s8 + $0x410] sm:$0xff] }
 0x287   : > { %2338 = vmatpush.msrb.mxu0 %v3464_v5  ;;  %2379 = vmatpush.msrb.mxu1 %v4965_v50  ;;  %v3469_v50 = vld [vmem:[%s4013_s8 + $0x438] sm:$0xff]  ;;  %v3480_v40 = vld [vmem:[%s4013_s8 + $0x490] sm:$0xff] }
 0x288   : > { %2120 = vmatpush.msrb.mxu2 %v3465_v24  ;;  %2161 = vmatpush.msrb.mxu3 %v3466_v6 }
 0x289   : > { %2339 = vmatpush.msrb.mxu0 %v4974_v54  ;;  %2380 = vmatpush.msrb.mxu1 %v7133_v10  ;;  %v3471_v54 = vld [vmem:[%s4013_s8 + $0x430] sm:$0xff] }
 0x28a   : > { %2121 = vmatpush.msrb.mxu2 %v3467_v9  ;;  %2162 = vmatpush.msrb.mxu3 %v3468_v22  ;;  %v7146_v10 = vld [vmem:[#allocation156_spill] sm:$0xff] }
 0x28b   : > { %2340 = vmatpush.msrb.mxu0 %v7134_v18  ;;  %2381 = vmatpush.msrb.mxu1 %v7135_v42  ;;  %v7147_v9 = vld [vmem:[#allocation160_spill] sm:$0xff]  ;;  %v3481_v18 = vld [vmem:[%s4013_s8 + $0x408] sm:$0xff] }
 0x28c   : > { %2122 = vmatpush.msrb.mxu2 %v3469_v50  ;;  %2163 = vmatpush.msrb.mxu3 %v3470_v46  ;;  %v3482_v42 = vld [vmem:[%s4013_s8 + $0x488] sm:$0xff]  ;;  %v441_v50 = vld [vmem:[%s4002_s1 + $0xa0] sm:$0xff]  ;;  %v5630_v46 = vpop.permute.xlu2 %1432 }
 0x28d   : > { %2341 = vmatpush.msrb.mxu0 %v7136_v41  ;;  %2382 = vmatpush.msrb.mxu1 %v7137_v36  ;;  %v444_v36 = vld [vmem:[%s4002_s1 + $0xb8] sm:$0xff] }
 0x28e   : > { %2123 = vmatpush.msrb.mxu2 %v3471_v54  ;;  %2164 = vmatpush.msrb.mxu3 %v3472_v23  ;;  %v442_v54 = vld [vmem:[%s4002_s1 + $0xa8] sm:$0xff]  ;;  %v443_v23 = vld [vmem:[%s4002_s1 + $0xb0] sm:$0xff] }
 0x28f   : > { %2342 = vmatpush.msrb.mxu0 %v7138_v29  ;;  %2383 = vmatpush.msrb.mxu1 %v7139_v21 }
 0x290   : > { %2124 = vmatpush.msrb.mxu2 %v3473_v16  ;;  %2165 = vmatpush.msrb.mxu3 %v3474_v1  ;;  %v7148_v16 = vld [vmem:[#allocation58_spill] sm:$0xff]  ;;  %v7149_v1 = vld [vmem:[#allocation60_spill] sm:$0xff] }
 0x291   : > { %2343 = vmatpush.msrb.mxu0 %v7140_v33  ;;  %2384 = vmatpush.msrb.mxu1 %v7141_v52  ;;  %v7151_v33 = vld [vmem:[#allocation92_spill] sm:$0xff] }
 0x292   : > { %2125 = vmatpush.msrb.mxu2 %v3475_v37  ;;  %2166 = vmatpush.msrb.mxu3 %v3476_v7 }
 0x293   : > { %v5606_v62 = vpop.permute.xlu0 %1422  ;;  %2344 = vmatpush.msrb.mxu0 %v7146_v10  ;;  %2385 = vmatpush.msrb.mxu1 %v7147_v9  ;;  %v451_v10 = vld [vmem:[%s4002_s1 + $0xf0] sm:$0xff]  ;;  %v452_v9 = vld [vmem:[%s4002_s1 + $0xf8] sm:$0xff] }
 0x294   : > { %v1465_v57 = vmul.f32 %v7142_v34, %v5606_v62  ;;  %v1466_v12 = vmul.f32 %v7143_v4, %v5606_v62  ;;  %v1467_v55 = vmul.f32 %v7144_v45, %v5606_v62  ;;  %v1468_v3 = vmul.f32 %v7145_v47, %v5606_v62  ;;  %2126 = vmatpush.msrb.mxu2 %v3477_v48 }
 0x295   : > { %2167 = vmatpush.msrb.mxu3 %v3478_v17  ;;  %v7156_v17 = vld [vmem:[#allocation31_spill] sm:$0xff] }
 0x296   : > { %v1636_v58 = vsub.f32 %v1465_v57, %v431_v30  ;;  %v1637_v19 = vsub.f32 %v1466_v12, %v432_v51  ;;  %v1638_v26 = vsub.f32 %v1467_v55, %v433_v25  ;;  %v1639_v35 = vsub.f32 %v1468_v3, %v434_v59  ;;  %2127 = vmatpush.msrb.mxu2 %v3479_v31  ;;  %v7150_v30 = vld [vmem:[#allocation91_spill] sm:$0xff]  ;;  %v7152_v25 = vld [vmem:[#allocation162_spill] sm:$0xff]  ;;  %v7157_v31 = vld [vmem:[#allocation68_spill] sm:$0xff] }
 0x297   : > { %2168 = vmatpush.msrb.mxu3 %v3480_v40  ;;  %2345 = vmatpush.msrb.mxu0 %v7152_v25  ;;  %v7153_v59 = vld [vmem:[#allocation27_spill] sm:$0xff]  ;;  %v7154_v55 = vld [vmem:[#allocation30_spill] sm:$0xff]  ;;  %v1486_v40 = vmul.f32 %v7157_v31, %v5630_v46 }
 0x298   : > { %v1716_v5 = vand.u32 2147483647, %v1636_v58  ;;  %v1717_v24 = vand.u32 2147483647, %v1637_v19  ;;  %v1718_v6 = vand.u32 2147483647, %v1638_v26  ;;  %2128 = vmatpush.msrb.mxu2 %v3481_v18  ;;  %2386 = vmatpush.msrb.mxu1 %v7153_v59 }
 0x299   : > { %v1719_v22 = vand.u32 2147483647, %v1639_v35  ;;  %2169 = vmatpush.msrb.mxu3 %v3482_v42  ;;  %2346 = vmatpush.msrb.mxu0 %v7154_v55  ;;  %v7155_v3 = vld [vmem:[#allocation67_spill] sm:$0xff]  ;;  %v3483_v58 = vld [vmem:[%s4013_s8 + $0x400] sm:$0xff]  ;;  %v7160_v42 = vld [vmem:[#allocation104_spill] sm:$0xff] }
 0x29a   : > { %1805 = vmatmul.f32.gmra.mxu2 %v1716_v5  ;;  %1846 = vmatmul.f32.gmra.mxu3 %v1717_v24  ;;  %v1485_v48 = vmul.f32 %v7155_v3, %v5630_v46  ;;  %v7158_v5 = vld [vmem:[#allocation165_spill] sm:$0xff]  ;;  %v3484_v24 = vld [vmem:[%s4013_s8 + $0x480] sm:$0xff] }
 0x29b   : > { %1887 = vmatmul.f32.gmra.mxu0 %v1718_v6  ;;  %1928 = vmatmul.f32.gmra.mxu1 %v1719_v22  ;;  %v5632_v41 = vpop.permute.xlu1 %1427  ;;  %v7159_v22 = vld [vmem:[#allocation103_spill] sm:$0xff] }
 0x29c   : > { %v1475_v29 = vmul.f32 %v7148_v16, %v5632_v41  ;;  %v1476_v21 = vmul.f32 %v7149_v1, %v5632_v41  ;;  %v1477_v37 = vmul.f32 %v7150_v30, %v5632_v41  ;;  %v1478_v51 = vmul.f32 %v7151_v33, %v5632_v41  ;;  %2387 = vmatpush.msrb.mxu1 %v7156_v17  ;;  %v7165_v17 = vld [vmem:[#allocation36_spill] sm:$0xff]  ;;  %v437_v33 = vld [vmem:[%s4002_s1 + $0x80] sm:$0xff] }
 0x29d   : > { %2129 = vmatpush.msrb.mxu2 %v3483_v58  ;;  %2347 = vmatpush.msrb.mxu0 %v7158_v5  ;;  %v1487_v18 = vmul.f32 %v7159_v22, %v5630_v46 }
 0x29e   : > { %v1646_v7 = vsub.f32 %v1475_v29, %v441_v50  ;;  %v1647_v52 = vsub.f32 %v1476_v21, %v442_v54  ;;  %v1648_v57 = vsub.f32 %v1477_v37, %v443_v23  ;;  %v1649_v12 = vsub.f32 %v1478_v51, %v444_v36  ;;  %2170 = vmatpush.msrb.mxu3 %v3484_v24  ;;  %v7161_v54 = vld [vmem:[#allocation169_spill] sm:$0xff]  ;;  %v453_v23 = vld [vmem:[%s4002_s1 + $0x100] sm:$0xff]  ;;  %v454_v36 = vld [vmem:[%s4002_s1 + $0x108] sm:$0xff]  ;;  %v5666_v51 = vpop.permute.xlu2 %1437 }
 0x29f   : > { %v1488_v50 = vmul.f32 %v7160_v42, %v5630_v46  ;;  %2388 = vmatpush.msrb.mxu1 %v7161_v54  ;;  %v1656_v29 = vsub.f32 %v1485_v48, %v451_v10  ;;  %v1657_v21 = vsub.f32 %v1486_v40, %v452_v9  ;;  %v7162_v37 = vld [vmem:[#allocation171_spill] sm:$0xff]  ;;  %v1658_v25 = vsub.f32 %v1487_v18, %v453_v23  ;;  %v7167_v24 = vld [vmem:[#allocation116_spill] sm:$0xff]  ;;  %v464_v9 = vld [vmem:[%s4002_s1 + $0x158] sm:$0xff] }
 0x2a0   : > { %v1726_v19 = vand.u32 2147483647, %v1646_v7  ;;  %v1727_v26 = vand.u32 2147483647, %v1647_v52  ;;  %v1728_v35 = vand.u32 2147483647, %v1648_v57  ;;  %2348 = vmatpush.msrb.mxu0 %v7162_v37  ;;  %v1496_v58 = vmul.f32 %v7165_v17, %v5666_v51 }
 0x2a1   : > { %v1729_v6 = vand.u32 2147483647, %v1649_v12  ;;  %v1659_v59 = vsub.f32 %v1488_v50, %v454_v36  ;;  %v7163_v7 = vld [vmem:[#allocation38_spill] sm:$0xff]  ;;  %v1736_v52 = vand.u32 2147483647, %v1656_v29  ;;  %v7164_v12 = vld [vmem:[#allocation32_spill] sm:$0xff] }
 0x2a2   : > { %1808 = vmatmul.f32.gmra.mxu2 %v1726_v19  ;;  %1849 = vmatmul.f32.gmra.mxu3 %v1727_v26  ;;  %v1737_v57 = vand.u32 2147483647, %v1657_v21  ;;  %v1495_v55 = vmul.f32 %v7164_v12, %v5666_v51  ;;  %v1738_v48 = vand.u32 2147483647, %v1658_v25  ;;  %v461_v26 = vld [vmem:[%s4002_s1 + $0x140] sm:$0xff]  ;;  %v7166_v40 = vld [vmem:[#allocation115_spill] sm:$0xff] }
 0x2a3   : > { %1890 = vmatmul.f32.gmra.mxu0 %v1728_v35  ;;  %1931 = vmatmul.f32.gmra.mxu1 %v1729_v6  ;;  %v1739_v19 = vand.u32 2147483647, %v1659_v59  ;;  %v462_v35 = vld [vmem:[%s4002_s1 + $0x148] sm:$0xff]  ;;  %v1497_v5 = vmul.f32 %v7166_v40, %v5666_v51  ;;  %v1498_v6 = vmul.f32 %v7167_v24, %v5666_v51  ;;  %v463_v10 = vld [vmem:[%s4002_s1 + $0x150] sm:$0xff] }
 0x2a4   : > { %2389 = vmatpush.msrb.mxu1 %v7163_v7  ;;  %v1666_v18 = vsub.f32 %v1495_v55, %v461_v26  ;;  %v1667_v50 = vsub.f32 %v1496_v58, %v462_v35  ;;  %v471_v25 = vld [vmem:[%s4002_s1 + $0x190] sm:$0xff]  ;;  %v472_v7 = vld [vmem:[%s4002_s1 + $0x198] sm:$0xff]  ;;  %v7169_v58 = vld [vmem:[#allocation47_spill] sm:$0xff] }
 0x2a5   : > { %v1668_v54 = vsub.f32 %v1497_v5, %v463_v10  ;;  %v1669_v23 = vsub.f32 %v1498_v6, %v464_v9  ;;  %v7171_v35 = vld [vmem:[#allocation123_spill] sm:$0xff]  ;;  %v7172_v6 = vld [vmem:[#allocation124_spill] sm:$0xff] }
 0x2a6   : > { %v1746_v36 = vand.u32 2147483647, %v1666_v18  ;;  %v1747_v29 = vand.u32 2147483647, %v1667_v50  ;;  %v5687_v55 = vpop.permute.xlu2 %1447 }
 0x2a7   : > { %v1748_v21 = vand.u32 2147483647, %v1668_v54  ;;  %v1749_v37 = vand.u32 2147483647, %v1669_v23  ;;  %7168 = vst [vmem:[#allocation39_spill] sm:$0xff] %v5687_v55  ;;  %v7173_v23 = vld [vmem:[#allocation56_spill] sm:$0xff]  ;;  %v1516_v39 = vmul.f32 %v7174_v0, %v5687_v55 }
 0x2aa   : > { %1811 = vmatmul.f32.gmra.mxu2 %v1736_v52  ;;  %1852 = vmatmul.f32.gmra.mxu3 %v1737_v57  ;;  %v473_v52 = vld [vmem:[%s4002_s1 + $0x1a0] sm:$0xff]  ;;  %v474_v57 = vld [vmem:[%s4002_s1 + $0x1a8] sm:$0xff] }
 0x2ab   : > { %1893 = vmatmul.f32.gmra.mxu0 %v1738_v48  ;;  %1934 = vmatmul.f32.gmra.mxu1 %v1739_v19  ;;  %v7170_v19 = vld [vmem:[#allocation51_spill] sm:$0xff] }
 0x2b2   : > { %1814 = vmatmul.f32.gmra.mxu2 %v1746_v36  ;;  %1855 = vmatmul.f32.gmra.mxu3 %v1747_v29  ;;  %v1515_v36 = vmul.f32 %v7173_v23, %v5687_v55 }
 0x2b3   : > { %1896 = vmatmul.f32.gmra.mxu0 %v1748_v21  ;;  %1937 = vmatmul.f32.gmra.mxu1 %v1749_v37  ;;  %v5682_v59 = vpop.permute.xlu1 %1442 }
 0x2b4   : > { %v1505_v48 = vmul.f32 %v7169_v58, %v5682_v59  ;;  %v1506_v26 = vmul.f32 %v7170_v19, %v5682_v59  ;;  %v1507_v5 = vmul.f32 %v7171_v35, %v5682_v59  ;;  %v1508_v10 = vmul.f32 %v7172_v6, %v5682_v59 }
 0x2b6   : > { %v1676_v9 = vsub.f32 %v1505_v48, %v471_v25  ;;  %v1677_v18 = vsub.f32 %v1506_v26, %v472_v7  ;;  %v1678_v50 = vsub.f32 %v1507_v5, %v473_v52  ;;  %v1679_v54 = vsub.f32 %v1508_v10, %v474_v57  ;;  %v7176_v7 = vld [vmem:[#allocation132_spill] sm:$0xff]  ;;  %v484_v48 = vld [vmem:[%s4002_s1 + $0x1f8] sm:$0xff] }
 0x2b7   : > { %v1517_v25 = vmul.f32 %v7175_v20, %v5687_v55  ;;  %v1518_v52 = vmul.f32 %v7176_v7, %v5687_v55  ;;  %v483_v57 = vld [vmem:[%s4002_s1 + $0x1f0] sm:$0xff]  ;;  %v1686_v26 = vsub.f32 %v1515_v36, %v481_v11  ;;  %v1687_v5 = vsub.f32 %v1516_v39, %v482_v44  ;;  %v492_v44 = vld [vmem:[%s4002_s1 + $0x238] sm:$0xff]  ;;  %v493_v39 = vld [vmem:[%s4002_s1 + $0x240] sm:$0xff] }
 0x2b8   : > { %v1756_v29 = vand.u32 2147483647, %v1676_v9  ;;  %v1757_v21 = vand.u32 2147483647, %v1677_v18  ;;  %v1758_v37 = vand.u32 2147483647, %v1678_v50  ;;  %v1535_v18 = vmul.f32 %v5548_v13, %v5470_v28 }
 0x2b9   : > { %v1759_v43 = vand.u32 2147483647, %v1679_v54  ;;  %v1688_v10 = vsub.f32 %v1517_v25, %v483_v57  ;;  %v1689_v9 = vsub.f32 %v1518_v52, %v484_v48  ;;  %v1766_v50 = vand.u32 2147483647, %v1686_v26  ;;  %v7179_v52 = vld [vmem:[#allocation66_spill] sm:$0xff]  ;;  %v427_v7 = vld [vmem:[%s4002_s1 + $0x30] sm:$0xff] }
 0x2ba   : > { %1817 = vmatmul.f32.gmra.mxu2 %v1756_v29  ;;  %1858 = vmatmul.f32.gmra.mxu3 %v1757_v21  ;;  %v1767_v54 = vand.u32 2147483647, %v1687_v5  ;;  %v1543_v36 = vsub.f32 %v1535_v18, %v501_v8  ;;  %v7180_v48 = vld [vmem:[#allocation142_spill] sm:$0xff]  ;;  %v7181_v5 = vld [vmem:[#allocation144_spill] sm:$0xff]  ;;  %v426_v18 = vld [vmem:[%s4002_s1 + $0x28] sm:$0xff]  ;;  %v1460_v28 = vmul.f32 %v7183_v60, %v5548_v13 }
 0x2bb   : > { %1899 = vmatmul.f32.gmra.mxu0 %v1758_v37  ;;  %1940 = vmatmul.f32.gmra.mxu1 %v1759_v43  ;;  %v1768_v29 = vand.u32 2147483647, %v1688_v10  ;;  %v1769_v21 = vand.u32 2147483647, %v1689_v9  ;;  %v494_v43 = vld [vmem:[%s4002_s1 + $0x248] sm:$0xff]  ;;  %v7178_v37 = vld [vmem:[#allocation65_spill] sm:$0xff] }
 0x2bc   : > { %v7182_v9 = vld [vmem:[#allocation75_spill] sm:$0xff]  ;;  %v425_v8 = vld [vmem:[%s4002_s1 + $0x20] sm:$0xff]  ;;  %v5735_v6 = vand.u32 2147483647, %v1543_v36  ;;  %v504_v36 = vld [vmem:[%s4010_s22 + $0x18] sm:$0xff] }
 0x2be   : > { %vm1583_vm0 = vcmp.gt.f32.partialorder %v5735_v6, 0.01 }
 0x2c2   : > { %1820 = vmatmul.f32.gmra.mxu2 %v1766_v50  ;;  %1861 = vmatmul.f32.gmra.mxu3 %v1767_v54  ;;  %v1459_v50 = vmul.f32 %v7182_v9, %v5548_v13 }
 0x2c3   : > { %1902 = vmatmul.f32.gmra.mxu0 %v1768_v29  ;;  %1943 = vmatmul.f32.gmra.mxu1 %v1769_v21 }
 0x2c4   : > { %v5713_v11 = vpop.permute.xlu1 %1452 }
 0x2c5   : > { %7177 = vst [vmem:[#allocation42_spill] sm:$0xff] %v5713_v11  ;;  %v1525_v25 = vmul.f32 %v7178_v37, %v5713_v11  ;;  %v1526_v57 = vmul.f32 %v7179_v52, %v5713_v11  ;;  %v1527_v26 = vmul.f32 %v7180_v48, %v5713_v11  ;;  %v1528_v10 = vmul.f32 %v7181_v5, %v5713_v11  ;;  %v7184_v48 = vld [vmem:[#allocation155_spill] sm:$0xff] }
 0x2c6   : > { %v1461_v20 = vmul.f32 %v7184_v48, %v5548_v13  ;;  %v7186_v48 = vld [vmem:[#allocation83_spill] sm:$0xff] }
 0x2c7   : > { %v1696_v54 = vsub.f32 %v1525_v25, %v491_v53  ;;  %v1697_v29 = vsub.f32 %v1526_v57, %v492_v44  ;;  %v1698_v21 = vsub.f32 %v1527_v26, %v493_v39  ;;  %v1699_v27 = vsub.f32 %v1528_v10, %v494_v43  ;;  %v7185_v39 = vld [vmem:[#allocation157_spill] sm:$0xff] }
 0x2c8   : > { %v1462_v43 = vmul.f32 %v7185_v39, %v5548_v13  ;;  %v1538_v25 = vmul.f32 %v5630_v46, %v5501_v2  ;;  %v1630_v57 = vsub.f32 %v1459_v50, %v425_v8  ;;  %v428_v26 = vld [vmem:[%s4002_s1 + $0x38] sm:$0xff]  ;;  %v1536_v10 = vmul.f32 %v5606_v62, %v5477_v38  ;;  %v7188_v38 = vld [vmem:[#allocation164_spill] sm:$0xff] }
 0x2c9   : > { %v1776_v5 = vand.u32 2147483647, %v1696_v54  ;;  %v1777_v35 = vand.u32 2147483647, %v1697_v29  ;;  %v1778_v53 = vand.u32 2147483647, %v1698_v21  ;;  %v1632_v54 = vsub.f32 %v1461_v20, %v427_v7 }
 0x2ca   : > { %v1779_v44 = vand.u32 2147483647, %v1699_v27  ;;  %v1631_v27 = vsub.f32 %v1460_v28, %v426_v18  ;;  %v502_v29 = vld [vmem:[%s4010_s22 + $0x8] sm:$0xff]  ;;  %v503_v21 = vld [vmem:[%s4010_s22 + $0x10] sm:$0xff]  ;;  %v1469_v2 = vmul.f32 %v7186_v48, %v5606_v62  ;;  %v1559_v50 = vmul.f32 %v5735_v6, %v5735_v6  ;;  %v436_v39 = vld [vmem:[%s4002_s1 + $0x78] sm:$0xff] }
 0x2cb   : > { %1823 = vmatmul.f32.gmra.mxu2 %v1776_v5  ;;  %1864 = vmatmul.f32.gmra.mxu3 %v1777_v35  ;;  %v505_v35 = vld [vmem:[%s4010_s22 + $0x20] sm:$0xff]  ;;  %v1537_v5 = vmul.f32 %v5632_v41, %v5489_v32  ;;  %v1633_v8 = vsub.f32 %v1462_v43, %v428_v26  ;;  %v1539_v20 = vmul.f32 %v5666_v51, %v5513_v61  ;;  %v1710_v18 = vand.u32 2147483647, %v1630_v57 }
 0x2cc   : > { %1905 = vmatmul.f32.gmra.mxu0 %v1778_v53  ;;  %1946 = vmatmul.f32.gmra.mxu1 %v1779_v44  ;;  %v435_v53 = vld [vmem:[%s4002_s1 + $0x70] sm:$0xff]  ;;  %v7187_v44 = vld [vmem:[#allocation85_spill] sm:$0xff]  ;;  %v1546_v7 = vsub.f32 %v1538_v25, %v504_v36  ;;  %v1471_v24 = vmul.f32 %v7188_v38, %v5606_v62  ;;  %v1544_v40 = vsub.f32 %v1536_v10, %v502_v29  ;;  %v1711_v32 = vand.u32 2147483647, %v1631_v27  ;;  %v7191_v61 = vld [vmem:[#allocation166_spill] sm:$0xff] }
 0x2cd   : > { %v1470_v28 = vmul.f32 %v7187_v44, %v5606_v62  ;;  %v1545_v42 = vsub.f32 %v1537_v5, %v503_v21  ;;  %v1712_v22 = vand.u32 2147483647, %v1632_v54  ;;  %v1547_v43 = vsub.f32 %v1539_v20, %v505_v35  ;;  %v438_v29 = vld [vmem:[%s4002_s1 + $0x88] sm:$0xff]  ;;  %v3485_v35 = vld [vmem:[%s4013_s8 + $0x178] sm:$0xff] }
 0x2ce   : > { %v7189_v26 = vlaneseq  ;;  %v1640_v44 = vsub.f32 %v1469_v2, %v435_v53  ;;  %v1552_v48 = vand.u32 2147483647, %v1544_v40  ;;  %v1567_v25 = vmul.f32 50.0, %v1559_v50  ;;  %v3487_v50 = vld [vmem:[%s4013_s8 + $0x278] sm:$0xff] }
 0x2cf   : > { %v5766_v47 = vand.u32 2147483647, %v1545_v42  ;;  %v1713_v57 = vand.u32 2147483647, %v1633_v8  ;;  %v1641_v36 = vsub.f32 %v1470_v28, %v436_v39  ;;  %v1472_v10 = vmul.f32 %v7191_v61, %v5606_v62  ;;  %v7192_v20 = vld [vmem:[#allocation93_spill] sm:$0xff]  ;;  %v7218_v61 = vld [vmem:[#allocation26_spill] sm:$0xff] }
 0x2d0   : > { %v5764_v30 = vand.u32 127, %v7189_v26  ;;  %v5770_v27 = vand.u32 2147483647, %v1546_v7  ;;  %v1642_v54 = vsub.f32 %v1471_v24, %v437_v33  ;;  %v1560_v21 = vmul.f32 %v1552_v48, %v1552_v48  ;;  %v3495_v26 = vld [vmem:[%s4013_s8 + $0x268] sm:$0xff] }
 0x2d1   : > { %v1561_v2 = vmul.f32 %v5766_v47, %v5766_v47  ;;  %v3009_v42 = vadd.f32 -0.005, %v5735_v6  ;;  %v5776_v40 = vand.u32 2147483647, %v1547_v43  ;;  %v1720_v39 = vand.u32 2147483647, %v1640_v44 }
 0x2d2   : > { %7190 = vst [vmem:[#allocation73_spill] sm:$0xff] %v5764_v30  ;;  %v1568_v33 = vmul.f32 50.0, %v1560_v21  ;;  %vm1601_vm1 = vcmp.eq.s32.totalorder %v5764_v30, 3  ;;  %v1643_v5 = vsub.f32 %v1472_v10, %v438_v29  ;;  %v1562_v6 = vmul.f32 %v5770_v27, %v5770_v27  ;;  %v3490_v43 = vld [vmem:[%s4013_s8 + $0x1f0] sm:$0xff] }
 0x2d3   : > { %1966 = vmatmul.f32.vlgmr.msra.gmra.mxu2 %v1710_v18  ;;  %2007 = vmatmul.f32.vlgmr.msra.gmra.mxu3 %v1711_v32  ;;  %v3486_v32 = vld [vmem:[%s4013_s8 + $0x1f8] sm:$0xff]  ;;  %v1591_v24 = vsel %vm1583_vm0, %v3009_v42, %v1567_v25  ;;  %v1569_v8 = vmul.f32 50.0, %v1561_v2  ;;  %v3010_v53 = vadd.f32 -0.005, %v1552_v48  ;;  %v1721_v44 = vand.u32 2147483647, %v1641_v36 }
 0x2d4   : > { %2048 = vmatmul.f32.vlgmr.msra.gmra.mxu0 %v1712_v22  ;;  %2089 = vmatmul.f32.vlgmr.msra.gmra.mxu1 %v1713_v57  ;;  %v3488_v22 = vld [vmem:[%s4013_s8 + $0x2f8] sm:$0xff]  ;;  %v1722_v28 = vand.u32 2147483647, %v1642_v54  ;;  %v5788_v7 = vmul.f32 %v7192_v20, %v5632_v41  ;;  %v3489_v18 = vld [vmem:[%s4013_s8 + $0x170] sm:$0xff]  ;;  %vm1584_vm2 = vcmp.gt.f32.partialorder %v1552_v48, 0.01  ;;  %v1563_v36 = vmul.f32 %v5776_v40, %v5776_v40 }
 0x2d5   : > { %2415 = vmatpush.msra.mxu2 %v3485_v35  ;;  %2456 = vmatpush.msra.mxu3 %v3486_v32  ;;  %v445_v25 = vld [vmem:[%s4002_s1 + $0xc0] sm:$0xff]  ;;  %v7193_v57 = vld [vmem:[#allocation95_spill] sm:$0xff]  ;;  %v3491_v29 = vld [vmem:[%s4013_s8 + $0x270] sm:$0xff]  ;;  %v3011_v54 = vadd.f32 -0.005, %v5766_v47  ;;  %v1592_v21 = vsel %vm1584_vm2, %v3010_v53, %v1568_v33 }
 0x2d6   : > { %2497 = vmatpush.msra.mxu0 %v3487_v50  ;;  %2538 = vmatpush.msra.mxu1 %v3488_v22  ;;  %v5795_v10 = vmul.f32 %v7193_v57, %v5632_v41  ;;  %v446_v2 = vld [vmem:[%s4002_s1 + $0xc8] sm:$0xff]  ;;  %v7194_v48 = vld [vmem:[#allocation41_spill] sm:$0xff]  ;;  %vm1585_vm3 = vcmp.gt.f32.partialorder %v5766_v47, 0.01  ;;  %v447_v33 = vld [vmem:[%s4002_s1 + $0xd0] sm:$0xff]  ;;  %v1603_v47 = vsel %vm1601_vm1, 0.0, %v1592_v21 }
 0x2d7   : > { %2416 = vmatpush.msra.mxu2 %v3489_v18  ;;  %2457 = vmatpush.msra.mxu3 %v3490_v43  ;;  %v1481_v42 = vmul.f32 %v7194_v48, %v5632_v41  ;;  %v7195_v35 = vld [vmem:[#allocation173_spill] sm:$0xff]  ;;  %v3492_v50 = vld [vmem:[%s4013_s8 + $0x168] sm:$0xff]  ;;  %v1540_v18 = vmul.f32 %v5682_v59, %v5525_v56  ;;  %v1723_v43 = vand.u32 2147483647, %v1643_v5  ;;  %v1570_v48 = vmul.f32 50.0, %v1562_v6 }
 0x2d8   : > { %2498 = vmatpush.msra.mxu0 %v3491_v29  ;;  %v5806_v32 = vmul.f32 %v7195_v35, %v5632_v41  ;;  %v3493_v22 = vld [vmem:[%s4013_s8 + $0x1e8] sm:$0xff]  ;;  %v448_v53 = vld [vmem:[%s4002_s1 + $0xd8] sm:$0xff]  ;;  %v3494_v29 = vld [vmem:[%s4013_s8 + $0x2f0] sm:$0xff]  ;;  %v1593_v35 = vsel %vm1585_vm3, %v3011_v54, %v1569_v8  ;;  %v1602_v56 = vsel %vm1601_vm1, 0.0, %v1591_v24  ;;  %v1571_v6 = vmul.f32 50.0, %v1563_v36 }
 0x2d9   : > { %2417 = vmatpush.msra.mxu2 %v3492_v50  ;;  %2458 = vmatpush.msra.mxu3 %v3493_v22  ;;  %v1650_v50 = vsub.f32 %v5788_v7, %v445_v25  ;;  %v506_v22 = vld [vmem:[%s4010_s22 + $0x28] sm:$0xff]  ;;  %v1652_v8 = vsub.f32 %v1481_v42, %v447_v33  ;;  %v3496_v7 = vld [vmem:[%s4013_s8 + $0x160] sm:$0xff]  ;;  %vm1586_vm4 = vcmp.gt.f32.partialorder %v5770_v27, 0.01  ;;  %v3013_v54 = vadd.f32 -0.005, %v5776_v40 }
 0x2da   : > { %2539 = vmatpush.msra.mxu1 %v3494_v29  ;;  %2499 = vmatpush.msra.mxu0 %v3495_v26  ;;  %v1651_v26 = vsub.f32 %v5795_v10, %v446_v2  ;;  %v1548_v5 = vsub.f32 %v1540_v18, %v506_v22  ;;  %v3497_v24 = vld [vmem:[%s4013_s8 + $0x1e0] sm:$0xff]  ;;  %v3498_v25 = vld [vmem:[%s4013_s8 + $0x2e8] sm:$0xff]  ;;  %v1610_v2 = vadd.f32 %v1603_v47, %v1602_v56  ;;  %v7196_v42 = vld [vmem:[#allocation105_spill] sm:$0xff]  ;;  %vm1587_vm5 = vcmp.gt.f32.partialorder %v5776_v40, 0.01 }
 0x2db   : > { %1969 = vmatmul.f32.gmra.mxu2 %v1720_v39  ;;  %2010 = vmatmul.f32.gmra.mxu3 %v1721_v44  ;;  %v3012_v39 = vadd.f32 -0.005, %v5770_v27  ;;  %v1653_v44 = vsub.f32 %v5806_v32, %v448_v53  ;;  %v3499_v10 = vld [vmem:[%s4013_s8 + $0x260] sm:$0xff]  ;;  %v5836_v32 = vmul.f32 %v7196_v42, %v5630_v46  ;;  %v7197_v27 = vld [vmem:[#allocation107_spill] sm:$0xff]  ;;  %v3500_v33 = vld [vmem:[%s4013_s8 + $0x158] sm:$0xff]  ;;  %v1595_v47 = vsel %vm1587_vm5, %v3013_v54, %v1571_v6 }
 0x2dc   : > { %2051 = vmatmul.f32.gmra.mxu0 %v1722_v28  ;;  %2092 = vmatmul.f32.gmra.mxu1 %v1723_v43  ;;  %v1604_v28 = vsel %vm1601_vm1, 0.0, %v1593_v35  ;;  %v1556_v36 = vand.u32 2147483647, %v1548_v5  ;;  %v5840_v18 = vmul.f32 %v7197_v27, %v5630_v46  ;;  %v7198_v35 = vld [vmem:[#allocation44_spill] sm:$0xff]  ;;  %v3501_v53 = vld [vmem:[%s4013_s8 + $0x1d8] sm:$0xff]  ;;  %v457_v54 = vld [vmem:[%s4002_s1 + $0x120] sm:$0xff] }
 0x2dd   : > { %2418 = vmatpush.msra.mxu2 %v3496_v7  ;;  %2459 = vmatpush.msra.mxu3 %v3497_v24  ;;  %v1594_v21 = vsel %vm1586_vm4, %v3012_v39, %v1570_v48  ;;  %v5844_v43 = vmul.f32 %v7198_v35, %v5630_v46  ;;  %v1730_v56 = vand.u32 2147483647, %v1650_v50  ;;  %v3502_v48 = vld [vmem:[%s4013_s8 + $0x2e0] sm:$0xff]  ;;  %v3503_v29 = vld [vmem:[%s4013_s8 + $0x258] sm:$0xff]  ;;  %v1611_v5 = vadd.f32 %v1610_v2, %v1604_v28  ;;  %v455_v24 = vld [vmem:[%s4002_s1 + $0x110] sm:$0xff] }
 0x2de   : > { %2540 = vmatpush.msra.mxu1 %v3498_v25  ;;  %2500 = vmatpush.msra.mxu0 %v3499_v10  ;;  %v1564_v22 = vmul.f32 %v1556_v36, %v1556_v36  ;;  %v1731_v39 = vand.u32 2147483647, %v1651_v26  ;;  %v1732_v7 = vand.u32 2147483647, %v1652_v8  ;;  %v7199_v25 = vld [vmem:[#allocation180_spill] sm:$0xff]  ;;  %v1605_v50 = vsel %vm1601_vm1, 0.0, %v1594_v21 }
 0x2df   : > { %2419 = vmatpush.msra.mxu2 %v3500_v33  ;;  %2460 = vmatpush.msra.mxu3 %v3501_v53  ;;  %v1492_v10 = vmul.f32 %v7199_v25, %v5630_v46  ;;  %v3504_v33 = vld [vmem:[%s4013_s8 + $0x150] sm:$0xff]  ;;  %v1733_v53 = vand.u32 2147483647, %v1653_v44  ;;  %v3014_v8 = vadd.f32 -0.005, %v1556_v36  ;;  %v1612_v28 = vadd.f32 %v1611_v5, %v1605_v50  ;;  %v458_v2 = vld [vmem:[%s4002_s1 + $0x128] sm:$0xff] }
 0x2e0   : > { %2541 = vmatpush.msra.mxu1 %v3502_v48  ;;  %2501 = vmatpush.msra.mxu0 %v3503_v29  ;;  %v3505_v40 = vld [vmem:[%s4013_s8 + $0x1d0] sm:$0xff]  ;;  %v456_v48 = vld [vmem:[%s4002_s1 + $0x118] sm:$0xff]  ;;  %v1572_v26 = vmul.f32 50.0, %v1564_v22  ;;  %vm1588_vm6 = vcmp.gt.f32.partialorder %v1556_v36, 0.01  ;;  %v1606_v21 = vsel %vm1601_vm1, 0.0, %v1595_v47  ;;  %v1660_v22 = vsub.f32 %v5836_v32, %v455_v24 }
 0x2e1   : > { %2420 = vmatpush.msra.mxu2 %v3504_v33  ;;  %2461 = vmatpush.msra.mxu3 %v3505_v40  ;;  %v3506_v29 = vld [vmem:[%s4013_s8 + $0x2d8] sm:$0xff]  ;;  %v3507_v6 = vld [vmem:[%s4013_s8 + $0x250] sm:$0xff]  ;;  %v1613_v33 = vadd.f32 %v1612_v28, %v1606_v21  ;;  %v1661_v5 = vsub.f32 %v5840_v18, %v456_v48  ;;  %v1662_v47 = vsub.f32 %v5844_v43, %v457_v54  ;;  %v3511_v50 = vld [vmem:[%s4013_s8 + $0x248] sm:$0xff] }
 0x2e2   : > { %2542 = vmatpush.msra.mxu1 %v3506_v29  ;;  %2502 = vmatpush.msra.mxu0 %v3507_v6  ;;  %v1596_v44 = vsel %vm1588_vm6, %v3014_v8, %v1572_v26  ;;  %v3510_v40 = vld [vmem:[%s4013_s8 + $0x2d0] sm:$0xff]  ;;  %v3512_v18 = vld [vmem:[%s4013_s8 + $0x140] sm:$0xff]  ;;  %v1740_v43 = vand.u32 2147483647, %v1660_v22  ;;  %v7201_v29 = vld [vmem:[#allocation117_spill] sm:$0xff] }
 0x2e3   : > { %1972 = vmatmul.f32.gmra.mxu2 %v1730_v56  ;;  %2013 = vmatmul.f32.gmra.mxu3 %v1731_v39  ;;  %v3508_v56 = vld [vmem:[%s4013_s8 + $0x148] sm:$0xff]  ;;  %v1607_v36 = vsel %vm1601_vm1, 0.0, %v1596_v44  ;;  %v3513_v24 = vld [vmem:[%s4013_s8 + $0x1c0] sm:$0xff]  ;;  %v1499_v6 = vmul.f32 %v7201_v29, %v5666_v51  ;;  %v3516_v28 = vld [vmem:[%s4013_s8 + $0x138] sm:$0xff] }
 0x2e4   : > { %2054 = vmatmul.f32.gmra.mxu0 %v1732_v7  ;;  %2095 = vmatmul.f32.gmra.mxu1 %v1733_v53  ;;  %v3509_v39 = vld [vmem:[%s4013_s8 + $0x1c8] sm:$0xff]  ;;  %v1663_v7 = vsub.f32 %v1492_v10, %v458_v2  ;;  %v5874_v32 = vadd.f32 %v1613_v33, %v1607_v36  ;;  %v3515_v48 = vld [vmem:[%s4013_s8 + $0x240] sm:$0xff]  ;;  %v1741_v10 = vand.u32 2147483647, %v1661_v5  ;;  %v3517_v54 = vld [vmem:[%s4013_s8 + $0x1b8] sm:$0xff] }
 0x2e5   : > { %2421 = vmatpush.msra.mxu2 %v3508_v56  ;;  %2462 = vmatpush.msra.mxu3 %v3509_v39  ;;  %v3514_v53 = vld [vmem:[%s4013_s8 + $0x2c8] sm:$0xff]  ;;  %v1742_v2 = vand.u32 2147483647, %v1662_v47  ;;  %v465_v44 = vld [vmem:[%s4002_s1 + $0x160] sm:$0xff]  ;;  %v467_v47 = vld [vmem:[%s4002_s1 + $0x170] sm:$0xff] }
 0x2e6   : > { %2543 = vmatpush.msra.mxu1 %v3510_v40  ;;  %2503 = vmatpush.msra.mxu0 %v3511_v50  ;;  %7200 = vst [vmem:[#allocation74_spill] sm:$0xff] %v5874_v32  ;;  %v7202_v26 = vld [vmem:[#allocation119_spill] sm:$0xff]  ;;  %v1743_v21 = vand.u32 2147483647, %v1663_v7  ;;  %v3518_v36 = vld [vmem:[%s4013_s8 + $0x2c0] sm:$0xff]  ;;  %v3519_v40 = vld [vmem:[%s4013_s8 + $0x238] sm:$0xff]  ;;  %v1670_v50 = vsub.f32 %v1499_v6, %v465_v44 }
 0x2e7   : > { %2422 = vmatpush.msra.mxu2 %v3512_v18  ;;  %2463 = vmatpush.msra.mxu3 %v3513_v24  ;;  %v1500_v8 = vmul.f32 %v7202_v26, %v5666_v51  ;;  %v466_v33 = vld [vmem:[%s4002_s1 + $0x168] sm:$0xff]  ;;  %v468_v7 = vld [vmem:[%s4002_s1 + $0x178] sm:$0xff]  ;;  %v3520_v24 = vld [vmem:[%s4013_s8 + $0x130] sm:$0xff] }
 0x2e8   : > { %2544 = vmatpush.msra.mxu1 %v3514_v53  ;;  %2504 = vmatpush.msra.mxu0 %v3515_v48  ;;  %v7203_v22 = vld [vmem:[#allocation55_spill] sm:$0xff]  ;;  %v3521_v53 = vld [vmem:[%s4013_s8 + $0x1b0] sm:$0xff]  ;;  %v3533_v32 = vld [vmem:[%s4013_s8 + $0x198] sm:$0xff] }
 0x2e9   : > { %2423 = vmatpush.msra.mxu2 %v3516_v28  ;;  %2464 = vmatpush.msra.mxu3 %v3517_v54  ;;  %v1501_v5 = vmul.f32 %v7203_v22, %v5666_v51  ;;  %v7204_v56 = vld [vmem:[#allocation63_spill] sm:$0xff]  ;;  %v1671_v18 = vsub.f32 %v1500_v8, %v466_v33  ;;  %v3522_v54 = vld [vmem:[%s4013_s8 + $0x2b8] sm:$0xff]  ;;  %v3526_v6 = vld [vmem:[%s4013_s8 + $0x2b0] sm:$0xff] }
 0x2ea   : > { %v1502_v39 = vmul.f32 %v7204_v56, %v5666_v51  ;;  %2545 = vmatpush.msra.mxu1 %v3518_v36  ;;  %2505 = vmatpush.msra.mxu0 %v3519_v40  ;;  %v3527_v8 = vld [vmem:[%s4013_s8 + $0x228] sm:$0xff]  ;;  %v7205_v33 = vld [vmem:[#allocation125_spill] sm:$0xff]  ;;  %v3528_v40 = vld [vmem:[%s4013_s8 + $0x120] sm:$0xff] }
 0x2eb   : > { %1975 = vmatmul.f32.gmra.mxu2 %v1740_v43  ;;  %2016 = vmatmul.f32.gmra.mxu3 %v1741_v10  ;;  %v1672_v48 = vsub.f32 %v1501_v5, %v467_v47  ;;  %v3523_v43 = vld [vmem:[%s4013_s8 + $0x230] sm:$0xff]  ;;  %v3524_v10 = vld [vmem:[%s4013_s8 + $0x128] sm:$0xff]  ;;  %v1751_v44 = vand.u32 2147483647, %v1671_v18  ;;  %v1509_v5 = vmul.f32 %v7205_v33, %v5682_v59  ;;  %v3529_v47 = vld [vmem:[%s4013_s8 + $0x1a0] sm:$0xff] }
 0x2ec   : > { %2057 = vmatmul.f32.gmra.mxu0 %v1742_v2  ;;  %2098 = vmatmul.f32.gmra.mxu1 %v1743_v21  ;;  %v1673_v28 = vsub.f32 %v1502_v39, %v468_v7  ;;  %v3525_v2 = vld [vmem:[%s4013_s8 + $0x1a8] sm:$0xff]  ;;  %v1750_v21 = vand.u32 2147483647, %v1670_v50  ;;  %v7207_v50 = vld [vmem:[#allocation193_spill] sm:$0xff]  ;;  %v3546_v56 = vld [vmem:[%s4013_s8 + $0x180] sm:$0xff] }
 0x2ed   : > { %2424 = vmatpush.msra.mxu2 %v3520_v24  ;;  %2465 = vmatpush.msra.mxu3 %v3521_v53  ;;  %v7206_v39 = vld [vmem:[#allocation127_spill] sm:$0xff]  ;;  %v1752_v7 = vand.u32 2147483647, %v1672_v48  ;;  %v475_v53 = vld [vmem:[%s4002_s1 + $0x1b0] sm:$0xff]  ;;  %v1511_v18 = vmul.f32 %v7207_v50, %v5682_v59  ;;  %v477_v48 = vld [vmem:[%s4002_s1 + $0x1c0] sm:$0xff] }
 0x2ee   : > { %2546 = vmatpush.msra.mxu1 %v3522_v54  ;;  %2506 = vmatpush.msra.mxu0 %v3523_v43  ;;  %v1510_v36 = vmul.f32 %v7206_v39, %v5682_v59  ;;  %v1753_v24 = vand.u32 2147483647, %v1673_v28  ;;  %v476_v54 = vld [vmem:[%s4002_s1 + $0x1b8] sm:$0xff]  ;;  %v7208_v43 = vld [vmem:[#allocation194_spill] sm:$0xff]  ;;  %v478_v28 = vld [vmem:[%s4002_s1 + $0x1c8] sm:$0xff] }
 0x2ef   : > { %2425 = vmatpush.msra.mxu2 %v3524_v10  ;;  %2466 = vmatpush.msra.mxu3 %v3525_v2  ;;  %v1512_v10 = vmul.f32 %v7208_v43, %v5682_v59  ;;  %v3530_v2 = vld [vmem:[%s4013_s8 + $0x2a8] sm:$0xff] }
 0x2f0   : > { %2547 = vmatpush.msra.mxu1 %v3526_v6  ;;  %2507 = vmatpush.msra.mxu0 %v3527_v8  ;;  %v3531_v6 = vld [vmem:[%s4013_s8 + $0x220] sm:$0xff]  ;;  %v1680_v8 = vsub.f32 %v1509_v5, %v475_v53  ;;  %v3538_v5 = vld [vmem:[%s4013_s8 + $0x298] sm:$0xff]  ;;  %v3543_v43 = vld [vmem:[%s4013_s8 + $0x208] sm:$0xff] }
 0x2f1   : > { %2426 = vmatpush.msra.mxu2 %v3528_v40  ;;  %2467 = vmatpush.msra.mxu3 %v3529_v47  ;;  %v1681_v40 = vsub.f32 %v1510_v36, %v476_v54  ;;  %v3532_v47 = vld [vmem:[%s4013_s8 + $0x118] sm:$0xff]  ;;  %v1683_v30 = vsub.f32 %v1512_v10, %v478_v28  ;;  %v3539_v36 = vld [vmem:[%s4013_s8 + $0x210] sm:$0xff]  ;;  %v3541_v28 = vld [vmem:[%s4013_s8 + $0x188] sm:$0xff] }
 0x2f2   : > { %2548 = vmatpush.msra.mxu1 %v3530_v2  ;;  %2508 = vmatpush.msra.mxu0 %v3531_v6  ;;  %v1682_v2 = vsub.f32 %v1511_v18, %v477_v48  ;;  %v3534_v6 = vld [vmem:[%s4013_s8 + $0x2a0] sm:$0xff]  ;;  %v7209_v53 = vld [vmem:[#allocation133_spill] sm:$0xff]  ;;  %v7210_v18 = vld [vmem:[#allocation135_spill] sm:$0xff] }
 0x2f3   : > { %1978 = vmatmul.f32.gmra.mxu2 %v1750_v21  ;;  %2019 = vmatmul.f32.gmra.mxu3 %v1751_v44  ;;  %v3535_v21 = vld [vmem:[%s4013_s8 + $0x218] sm:$0xff]  ;;  %v3536_v44 = vld [vmem:[%s4013_s8 + $0x110] sm:$0xff]  ;;  %v1519_v54 = vmul.f32 %v7209_v53, %v5687_v55  ;;  %v1520_v10 = vmul.f32 %v7210_v18, %v5687_v55  ;;  %v3540_v48 = vld [vmem:[%s4013_s8 + $0x108] sm:$0xff] }
 0x2f4   : > { %2060 = vmatmul.f32.gmra.mxu0 %v1752_v7  ;;  %2101 = vmatmul.f32.gmra.mxu1 %v1753_v24  ;;  %v3537_v7 = vld [vmem:[%s4013_s8 + $0x190] sm:$0xff]  ;;  %v1761_v24 = vand.u32 2147483647, %v1681_v40  ;;  %v3545_v50 = vld [vmem:[%s4013_s8 + $0x288] sm:$0xff] }
 0x2f5   : > { %2427 = vmatpush.msra.mxu2 %v3532_v47  ;;  %2468 = vmatpush.msra.mxu3 %v3533_v32  ;;  %v1760_v32 = vand.u32 2147483647, %v1680_v8  ;;  %v1762_v47 = vand.u32 2147483647, %v1682_v2  ;;  %v7211_v8 = vld [vmem:[#allocation201_spill] sm:$0xff]  ;;  %v487_v2 = vld [vmem:[%s4002_s1 + $0x210] sm:$0xff] }
 0x2f6   : > { %2549 = vmatpush.msra.mxu1 %v3534_v6  ;;  %2509 = vmatpush.msra.mxu0 %v3535_v21  ;;  %v1763_v6 = vand.u32 2147483647, %v1683_v30  ;;  %v485_v21 = vld [vmem:[%s4002_s1 + $0x200] sm:$0xff]  ;;  %v1521_v40 = vmul.f32 %v7211_v8, %v5687_v55  ;;  %v488_v30 = vld [vmem:[%s4002_s1 + $0x218] sm:$0xff]  ;;  %v7217_v35 = vld [vmem:[#allocation23_spill] sm:$0xff] }
 0x2f7   : > { %2428 = vmatpush.msra.mxu2 %v3536_v44  ;;  %2469 = vmatpush.msra.mxu3 %v3537_v7  ;;  %v486_v44 = vld [vmem:[%s4002_s1 + $0x208] sm:$0xff]  ;;  %v7212_v7 = vld [vmem:[#allocation89_spill] sm:$0xff]  ;;  %v3544_v8 = vld [vmem:[%s4013_s8 + $0x100] sm:$0xff] }
 0x2f8   : > { %2550 = vmatpush.msra.mxu1 %v3538_v5  ;;  %2510 = vmatpush.msra.mxu0 %v3539_v36  ;;  %v1522_v5 = vmul.f32 %v7212_v7, %v5687_v55  ;;  %v3542_v36 = vld [vmem:[%s4013_s8 + $0x290] sm:$0xff] }
 0x2f9   : > { %2429 = vmatpush.msra.mxu2 %v3540_v48  ;;  %2470 = vmatpush.msra.mxu3 %v3541_v28  ;;  %v1690_v48 = vsub.f32 %v1519_v54, %v485_v21  ;;  %v1691_v28 = vsub.f32 %v1520_v10, %v486_v44  ;;  %v7213_v54 = vld [vmem:[#allocation145_spill] sm:$0xff] }
 0x2fa   : > { %2551 = vmatpush.msra.mxu1 %v3542_v36  ;;  %2511 = vmatpush.msra.mxu0 %v3543_v43  ;;  %v1692_v36 = vsub.f32 %v1521_v40, %v487_v2  ;;  %v1693_v7 = vsub.f32 %v1522_v5, %v488_v30  ;;  %v3547_v43 = vld [vmem:[%s4013_s8 + $0x200] sm:$0xff]  ;;  %v1529_v10 = vmul.f32 %v7213_v54, %v5713_v11  ;;  %v496_v40 = vld [vmem:[%s4002_s1 + $0x258] sm:$0xff] }
 0x2fb   : > { %1981 = vmatmul.f32.gmra.mxu2 %v1760_v32  ;;  %2022 = vmatmul.f32.gmra.mxu3 %v1761_v24  ;;  %v3548_v32 = vld [vmem:[%s4013_s8 + $0x280] sm:$0xff]  ;;  %v1770_v24 = vand.u32 2147483647, %v1690_v48  ;;  %v7216_v2 = vld [vmem:[#allocation101_spill] sm:$0xff] }
 0x2fc   : > { %2063 = vmatmul.f32.gmra.mxu0 %v1762_v47  ;;  %2104 = vmatmul.f32.gmra.mxu1 %v1763_v6  ;;  %v1771_v47 = vand.u32 2147483647, %v1691_v28  ;;  %v7214_v6 = vld [vmem:[#allocation147_spill] sm:$0xff]  ;;  %v1773_v44 = vand.u32 2147483647, %v1693_v7  ;;  %v1532_v30 = vmul.f32 %v7216_v2, %v5713_v11  ;;  %v497_v48 = vld [vmem:[%s4002_s1 + $0x260] sm:$0xff]  ;;  %v1464_v2 = vmul.f32 %v7218_v61, %v5548_v13 }
 0x2fd   : > { %2430 = vmatpush.msra.mxu2 %v3544_v8  ;;  %2552 = vmatpush.msra.mxu1 %v3545_v50  ;;  %v1530_v21 = vmul.f32 %v7214_v6, %v5713_v11  ;;  %v1772_v50 = vand.u32 2147483647, %v1692_v36  ;;  %v495_v8 = vld [vmem:[%s4002_s1 + $0x250] sm:$0xff]  ;;  %v498_v28 = vld [vmem:[%s4002_s1 + $0x268] sm:$0xff] }
 0x2fe   : > { %2471 = vmatpush.msra.mxu3 %v3546_v56  ;;  %2512 = vmatpush.msra.mxu0 %v3547_v43  ;;  %v7215_v56 = vld [vmem:[#allocation99_spill] sm:$0xff]  ;;  %v1700_v43 = vsub.f32 %v1529_v10, %v495_v8  ;;  %v1703_v7 = vsub.f32 %v1532_v30, %v498_v28  ;;  %v7220_v30 = vld [vmem:[#allocation37_spill] sm:$0xff] }
 0x2ff   : > { %2553 = vmatpush.msra.mxu1 %v3548_v32  ;;  %v1531_v5 = vmul.f32 %v7215_v56, %v5713_v11  ;;  %v1701_v32 = vsub.f32 %v1530_v21, %v496_v40  ;;  %v1463_v56 = vmul.f32 %v7217_v35, %v5548_v13  ;;  %v430_v6 = vld [vmem:[%s4002_s1 + $0x48] sm:$0xff] }
 0x300   : > { %v1780_v22 = vand.u32 2147483647, %v1700_v43  ;;  %v1783_v38 = vand.u32 2147483647, %v1703_v7  ;;  %v1635_v21 = vsub.f32 %v1464_v2, %v430_v6  ;;  %v7219_v40 = vld [vmem:[#allocation35_spill] sm:$0xff]  ;;  %v440_v2 = vld [vmem:[%s4002_s1 + $0x98] sm:$0xff] }
 0x301   : > { %v1702_v36 = vsub.f32 %v1531_v5, %v497_v48  ;;  %v1781_v25 = vand.u32 2147483647, %v1701_v32  ;;  %v1473_v5 = vmul.f32 %v7219_v40, %v5606_v62  ;;  %v1474_v48 = vmul.f32 %v7220_v30, %v5606_v62  ;;  %v3549_v62 = vld [vmem:[%s4013_s8 + $0x378] sm:$0xff]  ;;  %v5983_v32 = vpop.f32.mrf.mxu2 }
 0x302   : > { %v1715_v13 = vand.u32 2147483647, %v1635_v21  ;;  %v3552_v7 = vld [vmem:[%s4013_s8 + $0x4f8] sm:$0xff]  ;;  %v3556_v21 = vld [vmem:[%s4013_s8 + $0x4f0] sm:$0xff] }
 0x303   : > { %1984 = vmatmul.f32.gmra.mxu2 %v1770_v24  ;;  %2025 = vmatmul.f32.gmra.mxu3 %v1771_v47  ;;  %v1782_v24 = vand.u32 2147483647, %v1702_v36  ;;  %v429_v47 = vld [vmem:[%s4002_s1 + $0x40] sm:$0xff]  ;;  %v1645_v43 = vsub.f32 %v1474_v48, %v440_v2  ;;  %v3551_v36 = vld [vmem:[%s4013_s8 + $0x478] sm:$0xff]  ;;  %v3558_v2 = vld [vmem:[%s4013_s8 + $0x3e8] sm:$0xff] }
 0x304   : > { %2066 = vmatmul.f32.gmra.mxu0 %v1772_v50  ;;  %2107 = vmatmul.f32.gmra.mxu1 %v1773_v44  ;;  %v1634_v10 = vsub.f32 %v1463_v56, %v429_v47  ;;  %v5967_v50 = vpop.f32.mrf.mxu0  ;;  %v5969_v44 = vpop.f32.mrf.mxu1  ;;  %v439_v56 = vld [vmem:[%s4002_s1 + $0x90] sm:$0xff] }
 0x305   : > { %v1644_v28 = vsub.f32 %v1473_v5, %v439_v56  ;;  %v3554_v47 = vld [vmem:[%s4013_s8 + $0x3f0] sm:$0xff]  ;;  %v1725_v48 = vand.u32 2147483647, %v1645_v43  ;;  %v3557_v56 = vld [vmem:[%s4013_s8 + $0x368] sm:$0xff] }
 0x306   : > { %v1714_v8 = vand.u32 2147483647, %v1634_v10  ;;  %v3555_v10 = vld [vmem:[%s4013_s8 + $0x470] sm:$0xff]  ;;  %v450_v43 = vld [vmem:[%s4002_s1 + $0xe8] sm:$0xff] }
 0x307   : > { %v1724_v5 = vand.u32 2147483647, %v1644_v28  ;;  %v449_v28 = vld [vmem:[%s4002_s1 + $0xe0] sm:$0xff] }
 0x30b   : > { %1987 = vmatmul.f32.gmra.mxu2 %v1780_v22  ;;  %2028 = vmatmul.f32.gmra.mxu3 %v1781_v25  ;;  %v7221_v22 = vld [vmem:[#allocation24_spill] sm:$0xff] }
 0x30c   : > { %2069 = vmatmul.f32.gmra.mxu0 %v1782_v24  ;;  %2110 = vmatmul.f32.gmra.mxu1 %v1783_v38  ;;  %v2253_v25 = vmul.f32 %v7129_v63, %v7221_v22  ;;  %v7222_v38 = vld [vmem:[#allocation25_spill] sm:$0xff]  ;;  %v3553_v24 = vld [vmem:[%s4013_s8 + $0x370] sm:$0xff]  ;;  %v7223_v22 = vld [vmem:[#allocation174_spill] sm:$0xff] }
 0x30d   : > { %v2254_v6 = vmul.f32 %v7130_v15, %v7222_v38  ;;  %v3550_v63 = vld [vmem:[%s4013_s8 + $0x3f8] sm:$0xff]  ;;  %v5985_v15 = vpop.f32.mrf.mxu3  ;;  %v7224_v38 = vld [vmem:[#allocation176_spill] sm:$0xff] }
 0x313   : > { %2130 = vmatmul.f32.vlgmr.msrb.gmra.mxu2 %v1714_v8  ;;  %2171 = vmatmul.f32.vlgmr.msrb.gmra.mxu3 %v1715_v13 }
 0x314   : > { %2349 = vmatmul.f32.vlgmr.msrb.gmra.mxu0 %v2253_v25  ;;  %2390 = vmatmul.f32.vlgmr.msrb.gmra.mxu1 %v2254_v6  ;;  %v1483_v25 = vmul.f32 %v7223_v22, %v5632_v41  ;;  %v1484_v6 = vmul.f32 %v7224_v38, %v5632_v41 }
 0x315   : > { %2579 = vmatpush.msrb.mxu2 %v3549_v62  ;;  %2620 = vmatpush.msrb.mxu3 %v3550_v63  ;;  %v7225_v62 = vld [vmem:[#allocation28_spill] sm:$0xff] }
 0x316   : > { %2661 = vmatpush.msrb.mxu0 %v3551_v36  ;;  %2702 = vmatpush.msrb.mxu1 %v3552_v7  ;;  %v2263_v63 = vmul.f32 %v7142_v34, %v7225_v62  ;;  %v7226_v36 = vld [vmem:[#allocation29_spill] sm:$0xff]  ;;  %v1654_v41 = vsub.f32 %v1483_v25, %v449_v28  ;;  %v1655_v34 = vsub.f32 %v1484_v6, %v450_v43  ;;  %v3564_v62 = vld [vmem:[%s4013_s8 + $0x4e0] sm:$0xff] }
 0x317   : > { %2580 = vmatpush.msrb.mxu2 %v3553_v24  ;;  %2621 = vmatpush.msrb.mxu3 %v3554_v47  ;;  %v2264_v7 = vmul.f32 %v7143_v4, %v7226_v36  ;;  %v3559_v24 = vld [vmem:[%s4013_s8 + $0x468] sm:$0xff]  ;;  %v3562_v4 = vld [vmem:[%s4013_s8 + $0x3e0] sm:$0xff]  ;;  %v7227_v25 = vld [vmem:[#allocation181_spill] sm:$0xff] }
 0x318   : > { %2662 = vmatpush.msrb.mxu0 %v3555_v10  ;;  %2703 = vmatpush.msrb.mxu1 %v3556_v21  ;;  %v1888_v8 = vpop.f32.mrf.mxu0  ;;  %v5993_v13 = vpop.f32.mrf.mxu1  ;;  %v3560_v47 = vld [vmem:[%s4013_s8 + $0x4e8] sm:$0xff]  ;;  %v3561_v10 = vld [vmem:[%s4013_s8 + $0x360] sm:$0xff]  ;;  %v1493_v6 = vmul.f32 %v7227_v25, %v5630_v46  ;;  %v3567_v36 = vld [vmem:[%s4013_s8 + $0x458] sm:$0xff] }
 0x319   : > { %2581 = vmatpush.msrb.mxu2 %v3557_v56  ;;  %2622 = vmatpush.msrb.mxu3 %v3558_v2  ;;  %v3563_v2 = vld [vmem:[%s4013_s8 + $0x460] sm:$0xff] }
 0x31a   : > { %2663 = vmatpush.msrb.mxu0 %v3559_v24  ;;  %2704 = vmatpush.msrb.mxu1 %v3560_v47  ;;  %v1734_v47 = vand.u32 2147483647, %v1654_v41  ;;  %v3572_v41 = vld [vmem:[%s4013_s8 + $0x4d0] sm:$0xff] }
 0x31b   : > { %2133 = vmatmul.f32.gmra.mxu2 %v1724_v5  ;;  %2174 = vmatmul.f32.gmra.mxu3 %v1725_v48  ;;  %v3565_v48 = vld [vmem:[%s4013_s8 + $0x358] sm:$0xff] }
 0x31c   : > { %2352 = vmatmul.f32.gmra.mxu0 %v2263_v63  ;;  %2393 = vmatmul.f32.gmra.mxu1 %v2264_v7  ;;  %v3566_v63 = vld [vmem:[%s4013_s8 + $0x3d8] sm:$0xff] }
 0x31d   : > { %2582 = vmatpush.msrb.mxu2 %v3561_v10  ;;  %2623 = vmatpush.msrb.mxu3 %v3562_v4  ;;  %v1806_v21 = vpop.f32.mrf.mxu2  ;;  %v1847_v56 = vpop.f32.mrf.mxu3  ;;  %v3568_v7 = vld [vmem:[%s4013_s8 + $0x4d8] sm:$0xff]  ;;  %v1735_v10 = vand.u32 2147483647, %v1655_v34  ;;  %v7228_v4 = vld [vmem:[#allocation183_spill] sm:$0xff] }
 0x31e   : > { %2664 = vmatpush.msrb.mxu0 %v3563_v2  ;;  %2705 = vmatpush.msrb.mxu1 %v3564_v62  ;;  %v1848_v5 = vadd.f32 %v1847_v56, %v1806_v21  ;;  %v1494_v21 = vmul.f32 %v7228_v4, %v5630_v46  ;;  %v3569_v56 = vld [vmem:[%s4013_s8 + $0x350] sm:$0xff]  ;;  %v3573_v34 = vld [vmem:[%s4013_s8 + $0x348] sm:$0xff] }
 0x31f   : > { %2583 = vmatpush.msrb.mxu2 %v3565_v48  ;;  %2624 = vmatpush.msrb.mxu3 %v3566_v63  ;;  %v3570_v2 = vld [vmem:[%s4013_s8 + $0x3d0] sm:$0xff]  ;;  %v7230_v63 = vld [vmem:[#allocation49_spill] sm:$0xff] }
 0x320   : > { %2665 = vmatpush.msrb.mxu0 %v3567_v36  ;;  %2706 = vmatpush.msrb.mxu1 %v3568_v7  ;;  %v6019_v28 = vadd.f32 %v1888_v8, %v1848_v5  ;;  %v1891_v43 = vpop.f32.mrf.mxu0  ;;  %v6021_v24 = vpop.f32.mrf.mxu1  ;;  %v7229_v62 = vld [vmem:[#allocation48_spill] sm:$0xff]  ;;  %v2274_v8 = vmul.f32 %v7149_v1, %v7230_v63  ;;  %v460_v36 = vld [vmem:[%s4002_s1 + $0x138] sm:$0xff]  ;;  %v3574_v1 = vld [vmem:[%s4013_s8 + $0x3c8] sm:$0xff] }
 0x321   : > { %2584 = vmatpush.msrb.mxu2 %v3569_v56  ;;  %2625 = vmatpush.msrb.mxu3 %v3570_v2  ;;  %v2273_v48 = vmul.f32 %v7148_v16, %v7229_v62  ;;  %v459_v5 = vld [vmem:[%s4002_s1 + $0x130] sm:$0xff]  ;;  %v1665_v16 = vsub.f32 %v1494_v21, %v460_v36  ;;  %v3575_v62 = vld [vmem:[%s4013_s8 + $0x448] sm:$0xff] }
 0x322   : > { %v3571_v7 = vld [vmem:[%s4013_s8 + $0x450] sm:$0xff]  ;;  %2707 = vmatpush.msrb.mxu1 %v3572_v41  ;;  %v1664_v46 = vsub.f32 %v1493_v6, %v459_v5  ;;  %v3576_v63 = vld [vmem:[%s4013_s8 + $0x4c8] sm:$0xff]  ;;  %v3580_v5 = vld [vmem:[%s4013_s8 + $0x4c0] sm:$0xff] }
 0x323   : > { %2666 = vmatpush.msrb.mxu0 %v3571_v7  ;;  %2136 = vmatmul.f32.gmra.mxu2 %v1734_v47  ;;  %v7231_v6 = vld [vmem:[#allocation187_spill] sm:$0xff] }
 0x324   : > { %2177 = vmatmul.f32.gmra.mxu3 %v1735_v10  ;;  %2355 = vmatmul.f32.gmra.mxu0 %v2273_v48  ;;  %v3577_v10 = vld [vmem:[%s4013_s8 + $0x340] sm:$0xff]  ;;  %v1503_v21 = vmul.f32 %v7231_v6, %v5666_v51  ;;  %v3583_v6 = vld [vmem:[%s4013_s8 + $0x438] sm:$0xff] }
 0x325   : > { %2396 = vmatmul.f32.gmra.mxu1 %v2274_v8  ;;  %2585 = vmatpush.msrb.mxu2 %v3573_v34  ;;  %v1809_v56 = vpop.f32.mrf.mxu2  ;;  %v1850_v2 = vpop.f32.mrf.mxu3  ;;  %v3578_v48 = vld [vmem:[%s4013_s8 + $0x3c0] sm:$0xff]  ;;  %v1744_v34 = vand.u32 2147483647, %v1664_v46  ;;  %v3584_v46 = vld [vmem:[%s4013_s8 + $0x4b8] sm:$0xff] }
 0x326   : > { %2626 = vmatpush.msrb.mxu3 %v3574_v1  ;;  %2667 = vmatpush.msrb.mxu0 %v3575_v62  ;;  %v1851_v47 = vadd.f32 %v1850_v2, %v1809_v56  ;;  %v3579_v8 = vld [vmem:[%s4013_s8 + $0x440] sm:$0xff]  ;;  %v1745_v1 = vand.u32 2147483647, %v1665_v16  ;;  %v7232_v2 = vld [vmem:[#allocation189_spill] sm:$0xff] }
 0x327   : > { %2708 = vmatpush.msrb.mxu1 %v3576_v63  ;;  %2586 = vmatpush.msrb.mxu2 %v3577_v10  ;;  %v469_v56 = vld [vmem:[%s4002_s1 + $0x180] sm:$0xff]  ;;  %v1504_v62 = vmul.f32 %v7232_v2, %v5666_v51  ;;  %v3581_v63 = vld [vmem:[%s4013_s8 + $0x338] sm:$0xff] }
 0x328   : > { %2627 = vmatpush.msrb.mxu3 %v3578_v48  ;;  %2668 = vmatpush.msrb.mxu0 %v3579_v8  ;;  %v6045_v36 = vadd.f32 %v1891_v43, %v1851_v47  ;;  %v1894_v7 = vpop.f32.mrf.mxu0  ;;  %v6047_v41 = vpop.f32.mrf.mxu1  ;;  %v3582_v10 = vld [vmem:[%s4013_s8 + $0x3b8] sm:$0xff]  ;;  %v7234_v47 = vld [vmem:[#allocation54_spill] sm:$0xff]  ;;  %v1674_v51 = vsub.f32 %v1503_v21, %v469_v56  ;;  %v3591_v56 = vld [vmem:[%s4013_s8 + $0x428] sm:$0xff] }
 0x329   : > { %2709 = vmatpush.msrb.mxu1 %v3580_v5  ;;  %2587 = vmatpush.msrb.mxu2 %v3581_v63  ;;  %v7233_v48 = vld [vmem:[#allocation53_spill] sm:$0xff]  ;;  %v2284_v8 = vmul.f32 %v7157_v31, %v7234_v47  ;;  %v470_v5 = vld [vmem:[%s4002_s1 + $0x188] sm:$0xff]  ;;  %v3585_v63 = vld [vmem:[%s4013_s8 + $0x330] sm:$0xff] }
 0x32a   : > { %2628 = vmatpush.msrb.mxu3 %v3582_v10  ;;  %v2283_v43 = vmul.f32 %v7155_v3, %v7233_v48  ;;  %2669 = vmatpush.msrb.mxu0 %v3583_v6  ;;  %v1675_v16 = vsub.f32 %v1504_v62, %v470_v5  ;;  %v3586_v3 = vld [vmem:[%s4013_s8 + $0x3b0] sm:$0xff]  ;;  %v1754_v21 = vand.u32 2147483647, %v1674_v51  ;;  %v3592_v62 = vld [vmem:[%s4013_s8 + $0x4a8] sm:$0xff] }
 0x32b   : > { %2710 = vmatpush.msrb.mxu1 %v3584_v46  ;;  %2139 = vmatmul.f32.gmra.mxu2 %v1744_v34  ;;  %v3587_v6 = vld [vmem:[%s4013_s8 + $0x430] sm:$0xff] }
 0x32c   : > { %2180 = vmatmul.f32.gmra.mxu3 %v1745_v1  ;;  %2358 = vmatmul.f32.gmra.mxu0 %v2283_v43  ;;  %v3588_v48 = vld [vmem:[%s4013_s8 + $0x4b0] sm:$0xff]  ;;  %v3589_v1 = vld [vmem:[%s4013_s8 + $0x328] sm:$0xff]  ;;  %v1755_v46 = vand.u32 2147483647, %v1675_v16  ;;  %v480_v16 = vld [vmem:[%s4002_s1 + $0x1d8] sm:$0xff] }
 0x32d   : > { %2399 = vmatmul.f32.gmra.mxu1 %v2284_v8  ;;  %2588 = vmatpush.msrb.mxu2 %v3585_v63  ;;  %v1812_v31 = vpop.f32.mrf.mxu2  ;;  %v1853_v10 = vpop.f32.mrf.mxu3  ;;  %v3590_v43 = vld [vmem:[%s4013_s8 + $0x3a8] sm:$0xff] }
 0x32e   : > { %2629 = vmatpush.msrb.mxu3 %v3586_v3  ;;  %2670 = vmatpush.msrb.mxu0 %v3587_v6  ;;  %v1854_v34 = vadd.f32 %v1853_v10, %v1812_v31  ;;  %v7235_v63 = vld [vmem:[#allocation195_spill] sm:$0xff]  ;;  %v7236_v31 = vld [vmem:[#allocation197_spill] sm:$0xff]  ;;  %v3593_v10 = vld [vmem:[%s4013_s8 + $0x320] sm:$0xff] }
 0x32f   : > { %2711 = vmatpush.msrb.mxu1 %v3588_v48  ;;  %2589 = vmatpush.msrb.mxu2 %v3589_v1  ;;  %v1513_v3 = vmul.f32 %v7235_v63, %v5682_v59  ;;  %v1514_v51 = vmul.f32 %v7236_v31, %v5682_v59  ;;  %v3594_v6 = vld [vmem:[%s4013_s8 + $0x3a0] sm:$0xff]  ;;  %v7237_v48 = vld [vmem:[#allocation20_spill] sm:$0xff]  ;;  %v3607_v31 = vld [vmem:[%s4013_s8 + $0x408] sm:$0xff] }
 0x330   : > { %2630 = vmatpush.msrb.mxu3 %v3590_v43  ;;  %2671 = vmatpush.msrb.mxu0 %v3591_v56  ;;  %v6069_v47 = vadd.f32 %v1894_v7, %v1854_v34  ;;  %v1897_v8 = vpop.f32.mrf.mxu0  ;;  %v6071_v5 = vpop.f32.mrf.mxu1  ;;  %v2293_v7 = vmul.f32 %v7164_v12, %v7237_v48  ;;  %v7238_v34 = vld [vmem:[#allocation21_spill] sm:$0xff]  ;;  %v479_v43 = vld [vmem:[%s4002_s1 + $0x1d0] sm:$0xff]  ;;  %v3595_v56 = vld [vmem:[%s4013_s8 + $0x420] sm:$0xff] }
 0x331   : > { %2712 = vmatpush.msrb.mxu1 %v3592_v62  ;;  %2590 = vmatpush.msrb.mxu2 %v3593_v10  ;;  %v2294_v1 = vmul.f32 %v7165_v17, %v7238_v34  ;;  %v3596_v62 = vld [vmem:[%s4013_s8 + $0x4a0] sm:$0xff]  ;;  %v1684_v59 = vsub.f32 %v1513_v3, %v479_v43  ;;  %v1685_v12 = vsub.f32 %v1514_v51, %v480_v16  ;;  %v3597_v10 = vld [vmem:[%s4013_s8 + $0x318] sm:$0xff]  ;;  %v3604_v43 = vld [vmem:[%s4013_s8 + $0x490] sm:$0xff] }
 0x332   : > { %2631 = vmatpush.msrb.mxu3 %v3594_v6  ;;  %2672 = vmatpush.msrb.mxu0 %v3595_v56  ;;  %v3598_v17 = vld [vmem:[%s4013_s8 + $0x398] sm:$0xff]  ;;  %v7239_v3 = vld [vmem:[#allocation90_spill] sm:$0xff] }
 0x333   : > { %2713 = vmatpush.msrb.mxu1 %v3596_v62  ;;  %2142 = vmatmul.f32.gmra.mxu2 %v1754_v21  ;;  %v3599_v34 = vld [vmem:[%s4013_s8 + $0x418] sm:$0xff]  ;;  %v1523_v51 = vmul.f32 %v7239_v3, %v5687_v55  ;;  %v490_v3 = vld [vmem:[%s4002_s1 + $0x228] sm:$0xff] }
 0x334   : > { %2183 = vmatmul.f32.gmra.mxu3 %v1755_v46  ;;  %2361 = vmatmul.f32.gmra.mxu0 %v2293_v7  ;;  %v3600_v56 = vld [vmem:[%s4013_s8 + $0x498] sm:$0xff]  ;;  %v3601_v46 = vld [vmem:[%s4013_s8 + $0x310] sm:$0xff] }
 0x335   : > { %2402 = vmatmul.f32.gmra.mxu1 %v2294_v1  ;;  %2591 = vmatpush.msrb.mxu2 %v3597_v10  ;;  %v1815_v6 = vpop.f32.mrf.mxu2  ;;  %v1856_v48 = vpop.f32.mrf.mxu3  ;;  %v3602_v7 = vld [vmem:[%s4013_s8 + $0x390] sm:$0xff] }
 0x336   : > { %2632 = vmatpush.msrb.mxu3 %v3598_v17  ;;  %2673 = vmatpush.msrb.mxu0 %v3599_v34  ;;  %v1857_v21 = vadd.f32 %v1856_v48, %v1815_v6  ;;  %v3603_v1 = vld [vmem:[%s4013_s8 + $0x410] sm:$0xff]  ;;  %v1764_v17 = vand.u32 2147483647, %v1684_v59  ;;  %v1765_v6 = vand.u32 2147483647, %v1685_v12  ;;  %v489_v48 = vld [vmem:[%s4002_s1 + $0x220] sm:$0xff] }
 0x337   : > { %2714 = vmatpush.msrb.mxu1 %v3600_v56  ;;  %2592 = vmatpush.msrb.mxu2 %v3601_v46  ;;  %v7240_v34 = vld [vmem:[#allocation98_spill] sm:$0xff]  ;;  %v3605_v46 = vld [vmem:[%s4013_s8 + $0x308] sm:$0xff]  ;;  %v1694_v12 = vsub.f32 %v1523_v51, %v489_v48 }
 0x338   : > { %2633 = vmatpush.msrb.mxu3 %v3602_v7  ;;  %2674 = vmatpush.msrb.mxu0 %v3603_v1  ;;  %v6097_v16 = vadd.f32 %v1897_v8, %v1857_v21  ;;  %v1900_v62 = vpop.f32.mrf.mxu0  ;;  %v6099_v10 = vpop.f32.mrf.mxu1  ;;  %v1524_v56 = vmul.f32 %v7240_v34, %v5687_v55  ;;  %v3606_v7 = vld [vmem:[%s4013_s8 + $0x388] sm:$0xff]  ;;  %v7241_v1 = vld [vmem:[#allocation33_spill] sm:$0xff]  ;;  %v7242_v8 = vld [vmem:[#allocation34_spill] sm:$0xff] }
 0x339   : > { %2715 = vmatpush.msrb.mxu1 %v3604_v43  ;;  %2593 = vmatpush.msrb.mxu2 %v3605_v46  ;;  %v2303_v43 = vmul.f32 %v7169_v58, %v7241_v1  ;;  %v2304_v21 = vmul.f32 %v7170_v19, %v7242_v8  ;;  %v3608_v59 = vld [vmem:[%s4013_s8 + $0x488] sm:$0xff]  ;;  %v6115_v46 = vadd.f32 %v5993_v13, %v6019_v28  ;;  %v3610_v19 = vld [vmem:[%s4013_s8 + $0x380] sm:$0xff] }
 0x33a   : > { %2634 = vmatpush.msrb.mxu3 %v3606_v7  ;;  %2675 = vmatpush.msrb.mxu0 %v3607_v31  ;;  %v1695_v58 = vsub.f32 %v1524_v56, %v490_v3  ;;  %v3609_v7 = vld [vmem:[%s4013_s8 + $0x300] sm:$0xff]  ;;  %v7246_v55 = vld [vmem:[#allocation43_spill] sm:$0xff] }
 0x33b   : > { %2716 = vmatpush.msrb.mxu1 %v3608_v59  ;;  %2145 = vmatmul.f32.gmra.mxu2 %v1764_v17  ;;  %v3611_v8 = vld [vmem:[%s4013_s8 + $0x400] sm:$0xff] }
 0x33c   : > { %2186 = vmatmul.f32.gmra.mxu3 %v1765_v6  ;;  %2364 = vmatmul.f32.gmra.mxu0 %v2303_v43  ;;  %v3612_v17 = vld [vmem:[%s4013_s8 + $0x480] sm:$0xff]  ;;  %v1774_v43 = vand.u32 2147483647, %v1694_v12  ;;  %v1775_v13 = vand.u32 2147483647, %v1695_v58 }
 0x33d   : > { %2405 = vmatmul.f32.gmra.mxu1 %v2304_v21  ;;  %2594 = vmatpush.msrb.mxu2 %v3609_v7  ;;  %v1818_v1 = vpop.f32.mrf.mxu2  ;;  %v1859_v31 = vpop.f32.mrf.mxu3  ;;  %v7243_v28 = vld [vmem:[#allocation102_spill] sm:$0xff]  ;;  %v7245_v7 = vld [vmem:[#allocation40_spill] sm:$0xff] }
 0x33e   : > { %2635 = vmatpush.msrb.mxu3 %v3610_v19  ;;  %2676 = vmatpush.msrb.mxu0 %v3611_v8  ;;  %v1860_v6 = vadd.f32 %v1859_v31, %v1818_v1  ;;  %v1533_v3 = vmul.f32 %v7243_v28, %v5713_v11  ;;  %v7244_v56 = vld [vmem:[#allocation110_spill] sm:$0xff]  ;;  %v2313_v19 = vmul.f32 %v7173_v23, %v7245_v7  ;;  %v500_v1 = vld [vmem:[%s4002_s1 + $0x278] sm:$0xff] }
 0x33f   : > { %2717 = vmatpush.msrb.mxu1 %v3612_v17  ;;  %v1534_v59 = vmul.f32 %v7244_v56, %v5713_v11  ;;  %v2314_v8 = vmul.f32 %v7174_v0, %v7246_v55  ;;  %v499_v17 = vld [vmem:[%s4002_s1 + $0x270] sm:$0xff]  ;;  %v7247_v28 = vld [vmem:[#allocation50_spill] sm:$0xff]  ;;  %s3753_s1 = scalar_lea.hbm %s6565_s4, 16 }
 0x340   : > { %v1901_v51 = vadd.f32 %v1900_v62, %v1860_v6  ;;  %v1903_v48 = vpop.f32.mrf.mxu0  ;;  %v6121_v21 = vpop.f32.mrf.mxu1  ;;  %v6135_v62 = vadd.f32 %v6021_v24, %v6045_v36  ;;  %v1704_v12 = vsub.f32 %v1533_v3, %v499_v17  ;;  %v6145_v24 = vadd.f32 %v6047_v41, %v6069_v47  ;;  %p3755_p4 = scmp.lt.s32.totalorder %s3753_s1, %s3749_s9 }
 0x341   : > { %v1705_v58 = vsub.f32 %v1534_v59, %v500_v1  ;;  %v7251_v1 = vld [vmem:[#allocation62_spill] sm:$0xff]  ;;  %v6161_v47 = vadd.f32 %v6071_v5, %v6097_v16  ;;  %v7259_v5 = vld [vmem:[#allocation85_spill] sm:$0xff] }
 0x342   : > { %v1784_v0 = vand.u32 2147483647, %v1704_v12  ;;  %v2257_v12 = vmul.f32 %v7182_v9, %v7251_v1  ;;  %v7253_v9 = vld [vmem:[#allocation69_spill] sm:$0xff]  ;;  %p3756_p5 = por %p3755_p4, %p3754_p3 }
 0x343   : > { %2148 = vmatmul.f32.gmra.mxu2 %v1774_v43  ;;  %v1785_v55 = vand.u32 2147483647, %v1705_v58  ;;  %v2323_v43 = vmul.f32 %v7178_v37, %v7247_v28  ;;  %v7249_v37 = vld [vmem:[#allocation59_spill] sm:$0xff]  ;;  %v7252_v58 = vld [vmem:[#allocation64_spill] sm:$0xff] }
 0x344   : > { %2189 = vmatmul.f32.gmra.mxu3 %v1775_v13  ;;  %2367 = vmatmul.f32.gmra.mxu0 %v2313_v19  ;;  %v7248_v13 = vld [vmem:[#allocation52_spill] sm:$0xff]  ;;  %v2255_v28 = vmul.f32 %v7131_v14, %v7249_v37  ;;  %v2258_v41 = vmul.f32 %v7183_v60, %v7252_v58  ;;  %v7254_v60 = vld [vmem:[#allocation70_spill] sm:$0xff]  ;;  %p3757_p7 = pnand %p3756_p5, %p3752_p2 }
 0x345   : > { %2408 = vmatmul.f32.gmra.mxu1 %v2314_v8  ;;  %v1821_v31 = vpop.f32.mrf.mxu2  ;;  %v1862_v6 = vpop.f32.mrf.mxu3  ;;  %v2324_v19 = vmul.f32 %v7179_v52, %v7248_v13  ;;  %v7250_v52 = vld [vmem:[#allocation61_spill] sm:$0xff]  ;;  %v7257_v13 = vld [vmem:[#allocation83_spill] sm:$0xff]  ;;  %v7263_v58 = vld [vmem:[#allocation92_spill] sm:$0xff] }
 0x346   : > { %v1863_v11 = vadd.f32 %v1862_v6, %v1821_v31  ;;  %v2256_v17 = vmul.f32 %v7132_v49, %v7250_v52  ;;  %v7260_v52 = vld [vmem:[#allocation76_spill] sm:$0xff] }
 0x348   : > { %v1904_v56 = vadd.f32 %v1903_v48, %v1863_v11 }
 0x349   : > { %v1906_v23 = vpop.f32.mrf.mxu0  ;;  %v6137_v7 = vpop.f32.mrf.mxu1 }
 0x34b   : > { %2151 = vmatmul.f32.gmra.mxu2 %v1784_v0  ;;  %v7255_v0 = vld [vmem:[#allocation82_spill] sm:$0xff] }
 0x34c   : > { %2192 = vmatmul.f32.gmra.mxu3 %v1785_v55  ;;  %2370 = vmatmul.f32.gmra.mxu0 %v2323_v43  ;;  %v2266_v55 = vmul.f32 %v7255_v0, %v7254_v60  ;;  %v7256_v43 = vld [vmem:[#allocation71_spill] sm:$0xff]  ;;  %v7265_v60 = vld [vmem:[#allocation80_spill] sm:$0xff] }
 0x34d   : > { %2411 = vmatmul.f32.gmra.mxu1 %v2324_v19  ;;  %v2267_v19 = vmul.f32 %v7257_v13, %v7256_v43 }
 0x34e   : > { %v1824_v11 = vpop.f32.mrf.mxu2  ;;  %v1865_v36 = vpop.f32.mrf.mxu3 }
 0x34f   : > { %v1866_v48 = vadd.f32 %v1865_v36, %v1824_v11  ;;  %v7258_v11 = vld [vmem:[#allocation72_spill] sm:$0xff]  ;;  %v6180_v36 = vadd.f32 %v6099_v10, %v1901_v51  ;;  %v2278_v10 = vmul.f32 %v7193_v57, %v7265_v60  ;;  %v6199_v51 = vadd.f32 %v6121_v21, %v1904_v56  ;;  %v7273_v60 = vld [vmem:[#allocation115_spill] sm:$0xff] }
 0x350   : > { %v2268_v16 = vmul.f32 %v7259_v5, %v7258_v11  ;;  %v7268_v5 = vld [vmem:[#allocation86_spill] sm:$0xff]  ;;  %v7269_v57 = vld [vmem:[#allocation104_spill] sm:$0xff] }
 0x351   : > { %v1907_v3 = vadd.f32 %v1906_v23, %v1866_v48  ;;  %v6147_v59 = vpop.f32.mrf.mxu0  ;;  %v6149_v8 = vpop.f32.mrf.mxu1  ;;  %v2265_v23 = vmul.f32 %v7144_v45, %v7253_v9  ;;  %v7264_v9 = vld [vmem:[#allocation79_spill] sm:$0xff] }
 0x353   : > { %2431 = vmatmul.f32.vlgmr.msra.gmra.mxu2 %v2255_v28  ;;  %v1948_v56 = vadd.f32 %v6137_v7, %v1907_v3 }
 0x354   : > { %2472 = vmatmul.f32.vlgmr.msra.gmra.mxu3 %v2256_v17  ;;  %2513 = vmatmul.f32.vlgmr.msra.gmra.mxu0 %v2257_v12  ;;  %v7261_v17 = vld [vmem:[#allocation91_spill] sm:$0xff]  ;;  %v7262_v12 = vld [vmem:[#allocation78_spill] sm:$0xff] }
 0x355   : > { %2554 = vmatmul.f32.vlgmr.msra.gmra.mxu1 %v2258_v41  ;;  %v2275_v1 = vmul.f32 %v7261_v17, %v7260_v52  ;;  %v2276_v41 = vmul.f32 %v7263_v58, %v7262_v12  ;;  %v7270_v52 = vld [vmem:[#allocation87_spill] sm:$0xff] }
 0x356   : > { %v6163_v31 = vpop.f32.mrf.mxu2  ;;  %v6165_v14 = vpop.f32.mrf.mxu3  ;;  %v2287_v17 = vmul.f32 %v7196_v42, %v7270_v52 }
 0x359   : > { %v6167_v6 = vpop.f32.mrf.mxu0  ;;  %v6169_v49 = vpop.f32.mrf.mxu1 }
 0x35b   : > { %2434 = vmatmul.f32.gmra.mxu2 %v2265_v23  ;;  %v2277_v23 = vmul.f32 %v7192_v20, %v7264_v9  ;;  %v7267_v20 = vld [vmem:[#allocation103_spill] sm:$0xff] }
 0x35c   : > { %2475 = vmatmul.f32.gmra.mxu3 %v2266_v55  ;;  %2516 = vmatmul.f32.gmra.mxu0 %v2267_v19  ;;  %v7266_v19 = vld [vmem:[#allocation84_spill] sm:$0xff] }
 0x35d   : > { %2557 = vmatmul.f32.gmra.mxu1 %v2268_v16  ;;  %v2285_v11 = vmul.f32 %v7267_v20, %v7266_v19  ;;  %v2286_v16 = vmul.f32 %v7269_v57, %v7268_v5  ;;  %v7275_v19 = vld [vmem:[#allocation116_spill] sm:$0xff]  ;;  %v7276_v20 = vld [vmem:[#allocation97_spill] sm:$0xff] }
 0x35e   : > { %v6182_v48 = vpop.f32.mrf.mxu2  ;;  %v6184_v37 = vpop.f32.mrf.mxu3  ;;  %v7277_v5 = vld [vmem:[#allocation100_spill] sm:$0xff] }
 0x35f   : > { %v2298_v7 = vmul.f32 %v7202_v26, %v7277_v5 }
 0x361   : > { %v6186_v45 = vpop.f32.mrf.mxu0  ;;  %v6188_v28 = vpop.f32.mrf.mxu1 }
 0x363   : > { %2437 = vmatmul.f32.gmra.mxu2 %v2275_v1  ;;  %v7271_v1 = vld [vmem:[#allocation88_spill] sm:$0xff] }
 0x364   : > { %2478 = vmatmul.f32.gmra.mxu3 %v2276_v41  ;;  %2519 = vmatmul.f32.gmra.mxu0 %v2277_v23  ;;  %v2288_v21 = vmul.f32 %v7197_v27, %v7271_v1  ;;  %v7272_v23 = vld [vmem:[#allocation94_spill] sm:$0xff]  ;;  %v7279_v1 = vld [vmem:[#allocation123_spill] sm:$0xff] }
 0x365   : > { %2560 = vmatmul.f32.gmra.mxu1 %v2278_v10  ;;  %v2295_v42 = vmul.f32 %v7273_v60, %v7272_v23  ;;  %v7274_v10 = vld [vmem:[#allocation96_spill] sm:$0xff] }
 0x366   : > { %v6201_v0 = vpop.f32.mrf.mxu2  ;;  %v6203_v55 = vpop.f32.mrf.mxu3  ;;  %v2296_v27 = vmul.f32 %v7275_v19, %v7274_v10  ;;  %v7280_v23 = vld [vmem:[#allocation108_spill] sm:$0xff]  ;;  %v7282_v10 = vld [vmem:[#allocation109_spill] sm:$0xff] }
 0x367   : > { %v2307_v26 = vmul.f32 %v7205_v33, %v7282_v10  ;;  %v7286_v33 = vld [vmem:[#allocation131_spill] sm:$0xff]  ;;  %v7290_v10 = vld [vmem:[#allocation122_spill] sm:$0xff] }
 0x369   : > { %v6205_v43 = vpop.f32.mrf.mxu0  ;;  %v6207_v13 = vpop.f32.mrf.mxu1 }
 0x36b   : > { %2440 = vmatmul.f32.gmra.mxu2 %v2285_v11  ;;  %v2297_v11 = vmul.f32 %v7201_v29, %v7276_v20  ;;  %v7281_v29 = vld [vmem:[#allocation124_spill] sm:$0xff] }
 0x36c   : > { %2481 = vmatmul.f32.gmra.mxu3 %v2286_v16  ;;  %2522 = vmatmul.f32.gmra.mxu0 %v2287_v17  ;;  %v7278_v17 = vld [vmem:[#allocation106_spill] sm:$0xff]  ;;  %v2306_v60 = vmul.f32 %v7281_v29, %v7280_v23  ;;  %v7287_v23 = vld [vmem:[#allocation120_spill] sm:$0xff]  ;;  %v7289_v29 = vld [vmem:[#allocation121_spill] sm:$0xff] }
 0x36d   : > { %2563 = vmatmul.f32.gmra.mxu1 %v2288_v21  ;;  %v2305_v21 = vmul.f32 %v7279_v1, %v7278_v17  ;;  %v7285_v17 = vld [vmem:[#allocation118_spill] sm:$0xff] }
 0x36e   : > { %v6218_v12 = vpop.f32.mrf.mxu2  ;;  %v6220_v58 = vpop.f32.mrf.mxu3  ;;  %v2315_v1 = vmul.f32 %v7286_v33, %v7285_v17 }
 0x371   : > { %v6222_v41 = vpop.f32.mrf.mxu0  ;;  %v6224_v9 = vpop.f32.mrf.mxu1 }
 0x373   : > { %2443 = vmatmul.f32.gmra.mxu2 %v2295_v42  ;;  %v7283_v42 = vld [vmem:[#allocation111_spill] sm:$0xff] }
 0x374   : > { %2484 = vmatmul.f32.gmra.mxu3 %v2296_v27  ;;  %2525 = vmatmul.f32.gmra.mxu0 %v2297_v11  ;;  %v2308_v19 = vmul.f32 %v7206_v39, %v7283_v42  ;;  %v1845_v11 = vadd.f32 %v5985_v15, %v5983_v32  ;;  %v7288_v39 = vld [vmem:[#allocation132_spill] sm:$0xff] }
 0x375   : > { %2566 = vmatmul.f32.gmra.mxu1 %v2298_v7 }
 0x376   : > { %v6234_v3 = vpop.f32.mrf.mxu2  ;;  %v6236_v57 = vpop.f32.mrf.mxu3  ;;  %v1886_v42 = vadd.f32 %v5967_v50, %v1845_v11  ;;  %v7294_v50 = vld [vmem:[#allocation144_spill] sm:$0xff] }
 0x379   : > { %v6238_v16 = vpop.f32.mrf.mxu0  ;;  %v6240_v52 = vpop.f32.mrf.mxu1 }
 0x37b   : > { %2446 = vmatmul.f32.gmra.mxu2 %v2305_v21  ;;  %v2316_v21 = vmul.f32 %v7288_v39, %v7287_v23  ;;  %v7292_v39 = vld [vmem:[#allocation142_spill] sm:$0xff] }
 0x37c   : > { %2487 = vmatmul.f32.gmra.mxu3 %v2306_v60  ;;  %2528 = vmatmul.f32.gmra.mxu0 %v2307_v26  ;;  %v2317_v60 = vmul.f32 %v7209_v53, %v7289_v29  ;;  %v2318_v26 = vmul.f32 %v7210_v18, %v7290_v10  ;;  %v7291_v53 = vld [vmem:[#allocation126_spill] sm:$0xff]  ;;  %v7293_v29 = vld [vmem:[#allocation128_spill] sm:$0xff]  ;;  %v7297_v10 = vld [vmem:[#allocation147_spill] sm:$0xff] }
 0x37d   : > { %2569 = vmatmul.f32.gmra.mxu1 %v2308_v19  ;;  %v1927_v19 = vadd.f32 %v5969_v44, %v1886_v42  ;;  %v2325_v18 = vmul.f32 %v7292_v39, %v7291_v53  ;;  %v2326_v11 = vmul.f32 %v7294_v50, %v7293_v29  ;;  %v7299_v53 = vld [vmem:[#allocation155_spill] sm:$0xff] }
 0x37e   : > { %v6250_v27 = vpop.f32.mrf.mxu2  ;;  %v6252_v20 = vpop.f32.mrf.mxu3 }
 0x37f   : > { %v1968_v17 = vadd.f32 %v6163_v31, %v1927_v19 }
 0x381   : > { %v6256_v5 = vpop.f32.mrf.mxu0  ;;  %v6258_v7 = vpop.f32.mrf.mxu1  ;;  %v2009_v44 = vadd.f32 %v6165_v14, %v1968_v17  ;;  %v7302_v14 = vld [vmem:[#allocation137_spill] sm:$0xff] }
 0x382   : > { %7284 = vst [vmem:[#allocation139_spill] sm:$0xff] %v6258_v7  ;;  %v7298_v7 = vld [vmem:[#allocation134_spill] sm:$0xff]  ;;  %v2261_v17 = vmul.f32 %v7217_v35, %v7302_v14 }
 0x383   : > { %2449 = vmatmul.f32.gmra.mxu2 %v2315_v1  ;;  %v7295_v1 = vld [vmem:[#allocation129_spill] sm:$0xff]  ;;  %v2259_v39 = vmul.f32 %v7299_v53, %v7298_v7  ;;  %v2050_v29 = vadd.f32 %v6147_v59, %v2009_v44 }
 0x384   : > { %2490 = vmatmul.f32.gmra.mxu3 %v2316_v21  ;;  %2531 = vmatmul.f32.gmra.mxu0 %v2317_v60  ;;  %v2327_v21 = vmul.f32 %v7213_v54, %v7295_v1  ;;  %v7296_v60 = vld [vmem:[#allocation130_spill] sm:$0xff]  ;;  %v1971_v54 = vadd.f32 %v6182_v48, %v6115_v46 }
 0x385   : > { %2572 = vmatmul.f32.gmra.mxu1 %v2318_v26  ;;  %v2328_v26 = vmul.f32 %v7297_v10, %v7296_v60  ;;  %v2091_v59 = vadd.f32 %v6149_v8, %v2050_v29  ;;  %v7308_v8 = vld [vmem:[#allocation150_spill] sm:$0xff] }
 0x386   : > { %v6269_v32 = vpop.f32.mrf.mxu2  ;;  %v6271_v15 = vpop.f32.mrf.mxu3  ;;  %v2012_v46 = vadd.f32 %v6184_v37, %v1971_v54  ;;  %v2271_v29 = vmul.f32 %v7219_v40, %v7308_v8  ;;  %v7309_v54 = vld [vmem:[#allocation152_spill] sm:$0xff] }
 0x388   : > { %v2053_v35 = vadd.f32 %v6167_v6, %v2012_v46 }
 0x389   : > { %v2070_v33 = vpop.f32.mrf.mxu0  ;;  %v6275_v23 = vpop.f32.mrf.mxu1 }
 0x38a   : > { %v2094_v6 = vadd.f32 %v6169_v49, %v2053_v35  ;;  %v7314_v49 = vld [vmem:[#allocation161_spill] sm:$0xff] }
 0x38b   : > { %2452 = vmatmul.f32.gmra.mxu2 %v2325_v18  ;;  %v7300_v18 = vld [vmem:[#allocation136_spill] sm:$0xff] }
 0x38c   : > { %2493 = vmatmul.f32.gmra.mxu3 %v2326_v11  ;;  %2534 = vmatmul.f32.gmra.mxu0 %v2327_v21  ;;  %v7301_v11 = vld [vmem:[#allocation157_spill] sm:$0xff] }
 0x38d   : > { %2575 = vmatmul.f32.gmra.mxu1 %v2328_v26  ;;  %v2260_v21 = vmul.f32 %v7301_v11, %v7300_v18  ;;  %v2272_v11 = vmul.f32 %v7220_v30, %v7309_v54  ;;  %v1977_v30 = vadd.f32 %v6218_v12, %v6145_v24 }
 0x38e   : > { %v1988_v31 = vpop.f32.mrf.mxu2  ;;  %v2029_v42 = vpop.f32.mrf.mxu3 }
 0x38f   : > { %v1989_v19 = vadd.f32 %v1988_v31, %v1948_v56  ;;  %v7303_v56 = vld [vmem:[#allocation138_spill] sm:$0xff]  ;;  %v2018_v24 = vadd.f32 %v6220_v58, %v1977_v30  ;;  %v7319_v58 = vld [vmem:[#allocation180_spill] sm:$0xff] }
 0x390   : > { %v2262_v26 = vmul.f32 %v7218_v61, %v7303_v56  ;;  %v1974_v61 = vadd.f32 %v6201_v0, %v6135_v62  ;;  %v7311_v56 = vld [vmem:[#allocation41_spill] sm:$0xff] }
 0x391   : > { %v2030_v50 = vadd.f32 %v2029_v42, %v1989_v19  ;;  %v2350_v1 = vpop.f32.mrf.mxu0  ;;  %v2391_v60 = vpop.f32.mrf.mxu1  ;;  %v7304_v42 = vld [vmem:[#allocation146_spill] sm:$0xff]  ;;  %v7305_v19 = vld [vmem:[#allocation164_spill] sm:$0xff] }
 0x392   : > { %v6293_v10 = vadd.f32 %v2391_v60, %v2350_v1  ;;  %v2269_v53 = vmul.f32 %v7305_v19, %v7304_v42  ;;  %v7306_v1 = vld [vmem:[#allocation148_spill] sm:$0xff]  ;;  %v7307_v60 = vld [vmem:[#allocation166_spill] sm:$0xff]  ;;  %v2015_v62 = vadd.f32 %v6203_v55, %v1974_v61  ;;  %v7312_v55 = vld [vmem:[#allocation159_spill] sm:$0xff]  ;;  %v2281_v19 = vmul.f32 %v7223_v22, %v7314_v49 }
 0x393   : > { %v6299_v7 = vadd.f32 %v2070_v33, %v2030_v50  ;;  %2595 = vmatmul.f32.vlgmr.msrb.gmra.mxu2 %v2259_v39  ;;  %v2270_v18 = vmul.f32 %v7307_v60, %v7306_v1  ;;  %v2059_v22 = vadd.f32 %v6205_v43, %v2018_v24  ;;  %v7330_v24 = vld [vmem:[#allocation193_spill] sm:$0xff] }
 0x394   : > { %2636 = vmatmul.f32.vlgmr.msrb.gmra.mxu3 %v2260_v21  ;;  %2677 = vmatmul.f32.vlgmr.msrb.gmra.mxu0 %v2261_v17  ;;  %v7310_v17 = vld [vmem:[#allocation158_spill] sm:$0xff] }
 0x395   : > { %2718 = vmatmul.f32.vlgmr.msrb.gmra.mxu1 %v2262_v26  ;;  %v2279_v40 = vmul.f32 %v7311_v56, %v7310_v17  ;;  %v2056_v26 = vadd.f32 %v6186_v45, %v2015_v62  ;;  %v2100_v43 = vadd.f32 %v6207_v13, %v2059_v22  ;;  %v7322_v17 = vld [vmem:[#allocation175_spill] sm:$0xff] }
 0x396   : > { %v2131_v48 = vpop.f32.mrf.mxu2  ;;  %v2172_v44 = vpop.f32.mrf.mxu3  ;;  %v7323_v56 = vld [vmem:[#allocation55_spill] sm:$0xff] }
 0x397   : > { %v2132_v31 = vadd.f32 %v2131_v48, %v2091_v59  ;;  %v2097_v45 = vadd.f32 %v6188_v28, %v2056_v26  ;;  %v7320_v28 = vld [vmem:[#allocation170_spill] sm:$0xff]  ;;  %v1983_v26 = vadd.f32 %v6250_v27, %v6180_v36  ;;  %v7325_v13 = vld [vmem:[#allocation63_spill] sm:$0xff] }
 0x398   : > { %v2291_v62 = vmul.f32 %v7227_v25, %v7320_v28 }
 0x399   : > { %v2173_v33 = vadd.f32 %v2172_v44, %v2132_v31  ;;  %v2353_v39 = vpop.f32.mrf.mxu0  ;;  %v2394_v50 = vpop.f32.mrf.mxu1  ;;  %v7313_v44 = vld [vmem:[#allocation173_spill] sm:$0xff]  ;;  %v2024_v36 = vadd.f32 %v6252_v20, %v1983_v26  ;;  %v7332_v20 = vld [vmem:[#allocation194_spill] sm:$0xff] }
 0x39a   : > { %v6310_v37 = vadd.f32 %v2394_v50, %v2353_v39  ;;  %v2280_v31 = vmul.f32 %v7313_v44, %v7312_v55  ;;  %v7316_v39 = vld [vmem:[#allocation167_spill] sm:$0xff]  ;;  %v7317_v50 = vld [vmem:[#allocation44_spill] sm:$0xff] }
 0x39b   : > { %2598 = vmatmul.f32.gmra.mxu2 %v2269_v53  ;;  %2204 = vrot.lane.b32.xlu0 %v2173_v33, %s3814_s25  ;;  %v7315_v53 = vld [vmem:[#allocation163_spill] sm:$0xff]  ;;  %v2289_v1 = vmul.f32 %v7317_v50, %v7316_v39  ;;  %v7331_v50 = vld [vmem:[#allocation184_spill] sm:$0xff] }
 0x39c   : > { %2639 = vmatmul.f32.gmra.mxu3 %v2270_v18  ;;  %2680 = vmatmul.f32.gmra.mxu0 %v2271_v29  ;;  %v2282_v35 = vmul.f32 %v7224_v38, %v7315_v53  ;;  %v1980_v38 = vadd.f32 %v6234_v3, %v6161_v47  ;;  %v7318_v29 = vld [vmem:[#allocation168_spill] sm:$0xff]  ;;  %v6353_v3 = vadd.f32 %v6275_v23, %v6299_v7  ;;  %v7326_v23 = vld [vmem:[#allocation178_spill] sm:$0xff]  ;;  %v7327_v7 = vld [vmem:[#allocation187_spill] sm:$0xff] }
 0x39d   : > { %2721 = vmatmul.f32.gmra.mxu1 %v2272_v11  ;;  %v2290_v54 = vmul.f32 %v7319_v58, %v7318_v29  ;;  %v2301_v44 = vmul.f32 %v7327_v7, %v7326_v23  ;;  %v7345_v23 = vld [vmem:[#allocation99_spill] sm:$0xff] }
 0x39e   : > { %v2134_v0 = vpop.f32.mrf.mxu2  ;;  %v2175_v21 = vpop.f32.mrf.mxu3  ;;  %v2021_v47 = vadd.f32 %v6236_v57, %v1980_v38 }
 0x39f   : > { %v2135_v14 = vadd.f32 %v2134_v0, %v2094_v6  ;;  %v7321_v6 = vld [vmem:[#allocation172_spill] sm:$0xff] }
 0x3a0   : > { %v2292_v0 = vmul.f32 %v7228_v4, %v7321_v6  ;;  %v2299_v4 = vmul.f32 %v7323_v56, %v7322_v17  ;;  %v7336_v6 = vld [vmem:[#allocation188_spill] sm:$0xff]  ;;  %v7341_v17 = vld [vmem:[#allocation90_spill] sm:$0xff] }
 0x3a1   : > { %v2176_v46 = vadd.f32 %v2175_v21, %v2135_v14  ;;  %v2356_v59 = vpop.f32.mrf.mxu0 }
 0x3a2   : > { %v2397_v48 = vpop.f32.mrf.mxu1 }
 0x3a3   : > { %v6326_v42 = vadd.f32 %v2397_v48, %v2356_v59  ;;  %2601 = vmatmul.f32.gmra.mxu2 %v2279_v40  ;;  %2206 = vrot.lane.b32.xlu2 %v2176_v46, %s3814_s25  ;;  %v2062_v40 = vadd.f32 %v6222_v41, %v2021_v47  ;;  %v7324_v59 = vld [vmem:[#allocation177_spill] sm:$0xff] }
 0x3a4   : > { %2642 = vmatmul.f32.gmra.mxu3 %v2280_v31  ;;  %2683 = vmatmul.f32.gmra.mxu0 %v2281_v19  ;;  %v2300_v48 = vmul.f32 %v7325_v13, %v7324_v59  ;;  %v7328_v31 = vld [vmem:[#allocation179_spill] sm:$0xff] }
 0x3a5   : > { %2724 = vmatmul.f32.gmra.mxu1 %v2282_v35  ;;  %v2302_v49 = vmul.f32 %v7232_v2, %v7328_v31  ;;  %v2103_v41 = vadd.f32 %v6224_v9, %v2062_v40  ;;  %v7329_v35 = vld [vmem:[#allocation182_spill] sm:$0xff]  ;;  %v1986_v2 = vadd.f32 %v6269_v32, %v6199_v51  ;;  %v7333_v9 = vld [vmem:[#allocation185_spill] sm:$0xff] }
 0x3a6   : > { %v2137_v12 = vpop.f32.mrf.mxu2  ;;  %v2311_v38 = vmul.f32 %v7235_v63, %v7333_v9  ;;  %v7347_v31 = vld [vmem:[#allocation101_spill] sm:$0xff] }
 0x3a7   : > { %v2178_v61 = vpop.f32.mrf.mxu3  ;;  %v2138_v33 = vadd.f32 %v2137_v12, %v2097_v45  ;;  %v2309_v45 = vmul.f32 %v7330_v24, %v7329_v35  ;;  %v2065_v12 = vadd.f32 %v6238_v16, %v2024_v36  ;;  %v2027_v51 = vadd.f32 %v6271_v15, %v1986_v2  ;;  %v7340_v15 = vld [vmem:[#allocation191_spill] sm:$0xff] }
 0x3a8   : > { %v2321_v56 = vmul.f32 %v7341_v17, %v7340_v15  ;;  %v7348_v36 = vld [vmem:[#allocation199_spill] sm:$0xff] }
 0x3a9   : > { %v2179_v60 = vadd.f32 %v2178_v61, %v2138_v33  ;;  %v2359_v18 = vpop.f32.mrf.mxu0  ;;  %v2106_v16 = vadd.f32 %v6240_v52, %v2065_v12  ;;  %v7342_v52 = vld [vmem:[#allocation192_spill] sm:$0xff] }
 0x3aa   : > { %v2400_v8 = vpop.f32.mrf.mxu1 }
 0x3ab   : > { %v6342_v11 = vadd.f32 %v2400_v8, %v2359_v18  ;;  %2604 = vmatmul.f32.gmra.mxu2 %v2289_v1  ;;  %2208 = vrot.lane.b32.xlu1 %v2179_v60, %s3814_s25  ;;  %v2310_v1 = vmul.f32 %v7332_v20, %v7331_v50  ;;  %v7334_v60 = vld [vmem:[#allocation186_spill] sm:$0xff]  ;;  %v7335_v18 = vld [vmem:[#allocation197_spill] sm:$0xff] }
 0x3ac   : > { %2645 = vmatmul.f32.gmra.mxu3 %v2290_v54  ;;  %2686 = vmatmul.f32.gmra.mxu0 %v2291_v62  ;;  %v2312_v8 = vmul.f32 %v7335_v18, %v7334_v60  ;;  %v2068_v54 = vadd.f32 %v6256_v5, %v2027_v51  ;;  %v7343_v5 = vld [vmem:[#allocation139_spill] sm:$0xff] }
 0x3ad   : > { %2727 = vmatmul.f32.gmra.mxu1 %v2292_v0  ;;  %v7337_v0 = vld [vmem:[#allocation201_spill] sm:$0xff] }
 0x3ae   : > { %v2140_v21 = vpop.f32.mrf.mxu2  ;;  %v2319_v47 = vmul.f32 %v7337_v0, %v7336_v6  ;;  %v2109_v40 = vadd.f32 %v7343_v5, %v2068_v54 }
 0x3af   : > { %v2181_v14 = vpop.f32.mrf.mxu3  ;;  %v2141_v25 = vadd.f32 %v2140_v21, %v2100_v43  ;;  %v7338_v43 = vld [vmem:[#allocation190_spill] sm:$0xff]  ;;  %v7339_v21 = vld [vmem:[#allocation89_spill] sm:$0xff] }
 0x3b1   : > { %v2182_v57 = vadd.f32 %v2181_v14, %v2141_v25  ;;  %v2362_v30 = vpop.f32.mrf.mxu0  ;;  %v2320_v14 = vmul.f32 %v7339_v21, %v7338_v43 }
 0x3b2   : > { %v2403_v46 = vpop.f32.mrf.mxu1 }
 0x3b3   : > { %v6362_v55 = vadd.f32 %v2403_v46, %v2362_v30  ;;  %2607 = vmatmul.f32.gmra.mxu2 %v2299_v4  ;;  %2210 = vrot.lane.b32.xlu1 %v2182_v57, %s3814_s25  ;;  %v2322_v4 = vmul.f32 %v7240_v34, %v7342_v52 }
 0x3b4   : > { %2648 = vmatmul.f32.gmra.mxu3 %v2300_v48  ;;  %2689 = vmatmul.f32.gmra.mxu0 %v2301_v44  ;;  %v7344_v48 = vld [vmem:[#allocation196_spill] sm:$0xff]  ;;  %v7346_v44 = vld [vmem:[#allocation198_spill] sm:$0xff] }
 0x3b5   : > { %2730 = vmatmul.f32.gmra.mxu1 %v2302_v49  ;;  %v2329_v7 = vmul.f32 %v7345_v23, %v7344_v48  ;;  %v2330_v34 = vmul.f32 %v7347_v31, %v7346_v44 }
 0x3b6   : > { %v2143_v27 = vpop.f32.mrf.mxu2 }
 0x3b7   : > { %v2184_v19 = vpop.f32.mrf.mxu3  ;;  %v2144_v53 = vadd.f32 %v2143_v27, %v2103_v41  ;;  %v7349_v41 = vld [vmem:[#allocation102_spill] sm:$0xff] }
 0x3b8   : > { %v2331_v27 = vmul.f32 %v7349_v41, %v7348_v36 }
 0x3b9   : > { %v2185_v61 = vadd.f32 %v2184_v19, %v2144_v53  ;;  %v2365_v33 = vpop.f32.mrf.mxu0  ;;  %v7350_v19 = vld [vmem:[#allocation200_spill] sm:$0xff]  ;;  %v7351_v53 = vld [vmem:[#allocation110_spill] sm:$0xff] }
 0x3ba   : > { %v2406_v39 = vpop.f32.mrf.mxu1  ;;  %v2332_v35 = vmul.f32 %v7351_v53, %v7350_v19 }
 0x3bb   : > { %v6378_v22 = vadd.f32 %v2406_v39, %v2365_v33  ;;  %2610 = vmatmul.f32.gmra.mxu2 %v2309_v45  ;;  %2212 = vrot.lane.b32.xlu2 %v2185_v61, %s3814_s25 }
 0x3bc   : > { %2651 = vmatmul.f32.gmra.mxu3 %v2310_v1  ;;  %2692 = vmatmul.f32.gmra.mxu0 %v2311_v38 }
 0x3bd   : > { %2733 = vmatmul.f32.gmra.mxu1 %v2312_v8 }
 0x3be   : > { %v2146_v32 = vpop.f32.mrf.mxu2 }
 0x3bf   : > { %v2187_v29 = vpop.f32.mrf.mxu3  ;;  %v2147_v58 = vadd.f32 %v2146_v32, %v2106_v16 }
 0x3c1   : > { %v2188_v28 = vadd.f32 %v2187_v29, %v2147_v58  ;;  %v2368_v63 = vpop.f32.mrf.mxu0 }
 0x3c2   : > { %v2409_v62 = vpop.f32.mrf.mxu1 }
 0x3c3   : > { %v6392_v25 = vadd.f32 %v2409_v62, %v2368_v63  ;;  %2613 = vmatmul.f32.gmra.mxu2 %v2319_v47  ;;  %2214 = vrot.lane.b32.xlu0 %v2188_v28, %s3814_s25 }
 0x3c4   : > { %2654 = vmatmul.f32.gmra.mxu3 %v2320_v14  ;;  %2695 = vmatmul.f32.gmra.mxu0 %v2321_v56 }
 0x3c5   : > { %2736 = vmatmul.f32.gmra.mxu1 %v2322_v4 }
 0x3c6   : > { %v2149_v26 = vpop.f32.mrf.mxu2 }
 0x3c7   : > { %v2190_v57 = vpop.f32.mrf.mxu3  ;;  %v2150_v30 = vadd.f32 %v2149_v26, %v2109_v40 }
 0x3c9   : > { %v2191_v46 = vadd.f32 %v2190_v57, %v2150_v30  ;;  %v2371_v59 = vpop.f32.mrf.mxu0 }
 0x3ca   : > { %v2412_v13 = vpop.f32.mrf.mxu1 }
 0x3cb   : > { %v6404_v49 = vadd.f32 %v2412_v13, %v2371_v59  ;;  %2616 = vmatmul.f32.gmra.mxu2 %v2329_v7  ;;  %2216 = vrot.lane.b32.xlu1 %v2191_v46, %s3814_s25  ;;  %v7352_v7 = vld [vmem:[#allocation112_spill] sm:$0xff] }
 0x3cc   : > { %2657 = vmatmul.f32.gmra.mxu3 %v2330_v34  ;;  %2698 = vmatmul.f32.gmra.mxu0 %v2331_v27  ;;  %3314 = vlog2.f32 %v7352_v7 }
 0x3cd   : > { %2739 = vmatmul.f32.gmra.mxu1 %v2332_v35 }
 0x3ce   : > { %v2152_v24 = vpop.f32.mrf.mxu2 }
 0x3cf   : > { %v2193_v45 = vpop.f32.mrf.mxu3  ;;  %v2153_v12 = vadd.f32 %v2152_v24, %v6353_v3 }
 0x3d1   : > { %v6412_v2 = vadd.f32 %v2193_v45, %v2153_v12  ;;  %v2514_v61 = vpop.f32.mrf.mxu0  ;;  %v7353_v12 = vld [vmem:[#allocation114_spill] sm:$0xff] }
 0x3d2   : > { %v2555_v33 = vpop.f32.mrf.mxu1  ;;  %v3315_v19 = vpop.eup %3314  ;;  %3316 = vlog2.f32 %v7353_v12 }
 0x3d6   : > { %v2432_v39 = vpop.f32.mrf.mxu2 }
 0x3d7   : > { %v2473_v50 = vpop.f32.mrf.mxu3  ;;  %v2433_v17 = vadd.f32 %v2432_v39, %v6293_v10  ;;  %v7354_v39 = vld [vmem:[#allocation113_spill] sm:$0xff] }
 0x3d9   : > { %v2517_v20 = vpop.f32.mrf.mxu0  ;;  %v2474_v4 = vadd.f32 %v2473_v50, %v2433_v17 }
 0x3da   : > { %v2558_v1 = vpop.f32.mrf.mxu1 }
 0x3db   : > { %v2515_v26 = vadd.f32 %v2514_v61, %v2474_v4 }
 0x3dd   : > { %v2556_v13 = vadd.f32 %v2555_v33, %v2515_v26  ;;  %v2744_v33 = vmul.f32 0.6931472, %v3315_v19 }
 0x3de   : > { %v2435_v9 = vpop.f32.mrf.mxu2 }
 0x3df   : > { %v2476_v38 = vpop.f32.mrf.mxu3  ;;  %v2436_v57 = vadd.f32 %v2435_v9, %v6310_v37 }
 0x3e1   : > { %v2520_v60 = vpop.f32.mrf.mxu0  ;;  %v2477_v59 = vadd.f32 %v2476_v38, %v2436_v57 }
 0x3e2   : > { %v2561_v18 = vpop.f32.mrf.mxu1 }
 0x3e3   : > { %v2518_v44 = vadd.f32 %v2517_v20, %v2477_v59  ;;  %v7355_v59 = vld [vmem:[#allocation203_spill] sm:$0xff] }
 0x3e4   : > { %3318 = vlog2.f32 %v7355_v59 }
 0x3e5   : > { %v2559_v37 = vadd.f32 %v2558_v1, %v2518_v44 }
 0x3e6   : > { %v2438_v8 = vpop.f32.mrf.mxu2 }
 0x3e7   : > { %v2479_v51 = vpop.f32.mrf.mxu3  ;;  %v2439_v31 = vadd.f32 %v2438_v8, %v6326_v42 }
 0x3e9   : > { %v6414_v16 = vpop.f32.mrf.mxu0  ;;  %v2480_v53 = vadd.f32 %v2479_v51, %v2439_v31  ;;  %v3317_v51 = vpop.eup %3316 }
 0x3ea   : > { %v6416_v32 = vpop.f32.mrf.mxu1 }
 0x3eb   : > { %v2521_v9 = vadd.f32 %v2520_v60, %v2480_v53  ;;  %v7356_v60 = vld [vmem:[#allocation202_spill] sm:$0xff]  ;;  %v7357_v53 = vld [vmem:[#allocation205_spill] sm:$0xff] }
 0x3ec   : > { %3320 = vlog2.f32 %v7357_v53 }
 0x3ed   : > { %v2562_v57 = vadd.f32 %v2561_v18, %v2521_v9  ;;  %v3319_v18 = vpop.eup %3318 }
 0x3ee   : > { %v2441_v29 = vpop.f32.mrf.mxu2 }
 0x3ef   : > { %v2482_v3 = vpop.f32.mrf.mxu3  ;;  %v2442_v20 = vadd.f32 %v2441_v29, %v6342_v11 }
 0x3f1   : > { %v6418_v58 = vpop.f32.mrf.mxu0  ;;  %v2483_v1 = vadd.f32 %v2482_v3, %v2442_v20 }
 0x3f2   : > { %v6420_v54 = vpop.f32.mrf.mxu1 }
 0x3f3   : > { %v2524_v11 = vadd.f32 %v6414_v16, %v2483_v1 }
 0x3f6   : > { %v2444_v28 = vpop.f32.mrf.mxu2 }
 0x3f7   : > { %v6422_v63 = vpop.f32.mrf.mxu3  ;;  %v2445_v29 = vadd.f32 %v2444_v28, %v6362_v55  ;;  %v7358_v55 = vld [vmem:[#allocation204_spill] sm:$0xff] }
 0x3f9   : > { %v6424_v62 = vpop.f32.mrf.mxu0  ;;  %v2486_v3 = vadd.f32 %v6422_v63, %v2445_v29 }
 0x3fa   : > { %v6426_v6 = vpop.f32.mrf.mxu1 }
 0x3fe   : > { %v6428_v0 = vpop.f32.mrf.mxu2 }
 0x3ff   : > { %v6430_v47 = vpop.f32.mrf.mxu3 }
 0x401   : > { %v6432_v43 = vpop.f32.mrf.mxu0 }
 0x402   : > { %v6434_v21 = vpop.f32.mrf.mxu1 }
 0x406   : > { %v6436_v14 = vpop.f32.mrf.mxu2 }
 0x407   : > { %v6438_v15 = vpop.f32.mrf.mxu3 }
 0x409   : > { %v6441_v56 = vpop.f32.mrf.mxu0 }
 0x40a   : > { %v6443_v52 = vpop.f32.mrf.mxu1 }
 0x40e   : > { %v6445_v5 = vpop.f32.mrf.mxu2 }
 0x40f   : > { %v6447_v40 = vpop.f32.mrf.mxu3  ;;  %v2454_v29 = vadd.f32 %v6445_v5, %v6404_v49 }
 0x411   : > { %v2678_v30 = vpop.f32.mrf.mxu0 }
 0x412   : > { %v2719_v46 = vpop.f32.mrf.mxu1 }
 0x416   : > { %v2596_v48 = vpop.f32.mrf.mxu2 }
 0x417   : > { %v2637_v23 = vpop.f32.mrf.mxu3  ;;  %v2597_v10 = vadd.f32 %v2596_v48, %v2556_v13  ;;  %v2746_v48 = vmul.f32 0.6931472, %v3317_v51 }
 0x419   : > { %v2638_v34 = vadd.f32 %v2637_v23, %v2597_v10  ;;  %v2681_v36 = vpop.f32.mrf.mxu0 }
 0x41a   : > { %v2722_v41 = vpop.f32.mrf.mxu1 }
 0x41b   : > { %v2679_v27 = vadd.f32 %v2678_v30, %v2638_v34 }
 0x41d   : > { %v2720_v35 = vadd.f32 %v2719_v46, %v2679_v27 }
 0x41e   : > { %v2599_v24 = vpop.f32.mrf.mxu2 }
 0x41f   : > { %v2640_v45 = vpop.f32.mrf.mxu3  ;;  %v2600_v61 = vadd.f32 %v2599_v24, %v2559_v37  ;;  %v2759_v50 = vmul.f32 %v7354_v39, %v2720_v35  ;;  %v2748_v35 = vmul.f32 0.6931472, %v3319_v18  ;;  %v2527_v37 = vadd.f32 %v6418_v58, %v2486_v3 }
 0x420   : > { %v2448_v24 = vadd.f32 %v6428_v0, %v6378_v22  ;;  %v7360_v22 = vld [vmem:[#allocation206_spill] sm:$0xff] }
 0x421   : > { %v2641_v42 = vadd.f32 %v2640_v45, %v2600_v61  ;;  %v2684_v38 = vpop.f32.mrf.mxu0  ;;  %v2767_v17 = vsub.f32 %v2744_v33, %v2759_v50  ;;  %v2568_v9 = vadd.f32 %v6420_v54, %v2527_v37 }
 0x422   : > { %v2725_v8 = vpop.f32.mrf.mxu1  ;;  %v2489_v33 = vadd.f32 %v6430_v47, %v2448_v24  ;;  %v7365_v24 = vld [vmem:[#allocation213_spill] sm:$0xff] }
 0x423   : > { %v2682_v4 = vadd.f32 %v2681_v36, %v2641_v42  ;;  %2783 = vrot.lane.b32.xlu0 %v2767_v17, %s3814_s25 }
 0x424   : > { %v2530_v17 = vadd.f32 %v6424_v62, %v2489_v33 }
 0x425   : > { %v2723_v26 = vadd.f32 %v2722_v41, %v2682_v4  ;;  %v2565_v41 = vadd.f32 %v6416_v32, %v2524_v11  ;;  %v3321_v32 = vpop.eup %3320  ;;  %v2451_v4 = vadd.f32 %v6436_v14, %v6392_v25 }
 0x426   : > { %v2602_v30 = vpop.f32.mrf.mxu2 }
 0x427   : > { %v2643_v46 = vpop.f32.mrf.mxu3  ;;  %v2603_v13 = vadd.f32 %v2602_v30, %v2562_v57  ;;  %v2760_v23 = vmul.f32 %v7356_v60, %v2723_v26  ;;  %v2492_v54 = vadd.f32 %v6438_v15, %v2451_v4  ;;  %v507_v4 = vld [vmem:[%s4010_s22 + $0x30] sm:$0xff] }
 0x429   : > { %v2644_v7 = vadd.f32 %v2643_v46, %v2603_v13  ;;  %v2687_v10 = vpop.f32.mrf.mxu0  ;;  %v2768_v44 = vsub.f32 %v2746_v48, %v2760_v23  ;;  %v2571_v46 = vadd.f32 %v6426_v6, %v2530_v17  ;;  %v7361_v48 = vld [vmem:[#allocation209_spill] sm:$0xff]  ;;  %v7362_v23 = vld [vmem:[#allocation208_spill] sm:$0xff]  ;;  %v2533_v11 = vadd.f32 %v6432_v43, %v2492_v54 }
 0x42a   : > { %v2728_v34 = vpop.f32.mrf.mxu1 }
 0x42b   : > { %v2685_v31 = vadd.f32 %v2684_v38, %v2644_v7  ;;  %2785 = vrot.lane.b32.xlu2 %v2768_v44, %s3814_s25  ;;  %v7359_v38 = vld [vmem:[#allocation207_spill] sm:$0xff]  ;;  %v2495_v44 = vadd.f32 %v6447_v40, %v2454_v29 }
 0x42c   : > { %3322 = vlog2.f32 %v7359_v38 }
 0x42d   : > { %v2726_v36 = vadd.f32 %v2725_v8, %v2685_v31  ;;  %v2750_v8 = vmul.f32 0.6931472, %v3321_v32  ;;  %3324 = vlog2.f32 %v7361_v48  ;;  %v2536_v5 = vadd.f32 %v6441_v56, %v2495_v44  ;;  %v2205_v44 = vpop.permute.xlu0 %2204 }
 0x42e   : > { %v2605_v27 = vpop.f32.mrf.mxu2 }
 0x42f   : > { %v2646_v19 = vpop.f32.mrf.mxu3  ;;  %v2606_v16 = vadd.f32 %v2605_v27, %v2565_v41  ;;  %v2761_v28 = vmul.f32 %v7358_v55, %v2726_v36  ;;  %v7363_v36 = vld [vmem:[#allocation211_spill] sm:$0xff]  ;;  %v7364_v27 = vld [vmem:[#allocation210_spill] sm:$0xff] }
 0x430   : > { %3326 = vlog2.f32 %v7363_v36 }
 0x431   : > { %v2647_v45 = vadd.f32 %v2646_v19, %v2606_v16  ;;  %v2769_v12 = vsub.f32 %v2748_v35, %v2761_v28  ;;  %v2690_v63 = vpop.f32.mrf.mxu0  ;;  %v2577_v28 = vadd.f32 %v6443_v52, %v2536_v5  ;;  %3328 = vlog2.f32 %v7365_v24 }
 0x432   : > { %v2731_v50 = vpop.f32.mrf.mxu1  ;;  %v3323_v26 = vpop.eup %3322 }
 0x433   : > { %v2688_v61 = vadd.f32 %v2687_v10, %v2647_v45  ;;  %2787 = vrot.lane.b32.xlu0 %v2769_v12, %s3814_s25  ;;  %v2752_v60 = vmul.f32 0.6931472, %v3323_v26  ;;  %v3325_v6 = vpop.eup %3324 }
 0x434   : > { %v2754_v43 = vmul.f32 0.6931472, %v3325_v6  ;;  %v2209_v6 = vpop.permute.xlu1 %2208 }
 0x435   : > { %v2729_v39 = vadd.f32 %v2728_v34, %v2688_v61  ;;  %v2574_v34 = vadd.f32 %v6434_v21, %v2533_v11  ;;  %v7366_v61 = vld [vmem:[#allocation212_spill] sm:$0xff]  ;;  %v7371_v11 = vld [vmem:[#allocation74_spill] sm:$0xff] }
 0x436   : > { %v2608_v20 = vpop.f32.mrf.mxu2  ;;  %v3327_v21 = vpop.eup %3326 }
 0x437   : > { %v2649_v42 = vpop.f32.mrf.mxu3  ;;  %v2609_v58 = vadd.f32 %v2608_v20, %v2568_v9  ;;  %v2762_v0 = vmul.f32 %v7360_v22, %v2729_v39  ;;  %v2756_v12 = vmul.f32 0.6931472, %v3327_v21  ;;  %v7369_v22 = vld [vmem:[#allocation42_spill] sm:$0xff] }
 0x439   : > { %v2650_v51 = vadd.f32 %v2649_v42, %v2609_v58  ;;  %v2770_v1 = vsub.f32 %v2750_v8, %v2762_v0  ;;  %v2693_v30 = vpop.f32.mrf.mxu0  ;;  %v7367_v42 = vld [vmem:[#allocation214_spill] sm:$0xff]  ;;  %v7368_v58 = vld [vmem:[#allocation39_spill] sm:$0xff]  ;;  %v1542_v0 = vmul.f32 %v7369_v22, %v7365_v24 }
 0x43a   : > { %v2734_v14 = vpop.f32.mrf.mxu1  ;;  %v1541_v8 = vmul.f32 %v7368_v58, %v7363_v36  ;;  %v2232_v36 = vsel %vm2228_vm9, %v2209_v6, 0.0 }
 0x43b   : > { %v2691_v47 = vadd.f32 %v2690_v63, %v2650_v51  ;;  %2789 = vrot.lane.b32.xlu1 %v2770_v1, %s3814_s25  ;;  %v508_v51 = vld [vmem:[%s4010_s22 + $0x38] sm:$0xff] }
 0x43c   : > { %v1549_v1 = vsub.f32 %v1541_v8, %v507_v4 }
 0x43d   : > { %v2732_v57 = vadd.f32 %v2731_v50, %v2691_v47  ;;  %v1550_v47 = vsub.f32 %v1542_v0, %v508_v51 }
 0x43e   : > { %v2611_v59 = vpop.f32.mrf.mxu2  ;;  %v1557_v26 = vand.u32 2147483647, %v1549_v1 }
 0x43f   : > { %v2652_v13 = vpop.f32.mrf.mxu3  ;;  %v2612_v62 = vadd.f32 %v2611_v59, %v2571_v46  ;;  %v2763_v25 = vmul.f32 %v7362_v23, %v2732_v57  ;;  %v1558_v54 = vand.u32 2147483647, %v1550_v47 }
 0x440   : > { %v1565_v57 = vmul.f32 %v1557_v26, %v1557_v26  ;;  %vm1589_vm7 = vcmp.gt.f32.partialorder %v1557_v26, 0.01 }
 0x441   : > { %v2653_v7 = vadd.f32 %v2652_v13, %v2612_v62  ;;  %v2771_v15 = vsub.f32 %v2752_v60, %v2763_v25  ;;  %v2696_v49 = vpop.f32.mrf.mxu0  ;;  %v3015_v13 = vadd.f32 -0.005, %v1557_v26  ;;  %v3016_v48 = vadd.f32 -0.005, %v1558_v54 }
 0x442   : > { %v2737_v35 = vpop.f32.mrf.mxu1  ;;  %v1573_v46 = vmul.f32 50.0, %v1565_v57  ;;  %vm1590_vm8 = vcmp.gt.f32.partialorder %v1558_v54, 0.01 }
 0x443   : > { %v2694_v10 = vadd.f32 %v2693_v30, %v2653_v7  ;;  %2791 = vrot.lane.b32.xlu2 %v2771_v15, %s3814_s25  ;;  %v1566_v30 = vmul.f32 %v1558_v54, %v1558_v54  ;;  %v2207_v15 = vpop.permute.xlu2 %2206 }
 0x444   : > { %v1597_v62 = vsel %vm1589_vm7, %v3015_v13, %v1573_v46 }
 0x445   : > { %v2735_v31 = vadd.f32 %v2734_v14, %v2694_v10  ;;  %v1574_v59 = vmul.f32 50.0, %v1566_v30  ;;  %v1608_v25 = vsel %vm1601_vm1, 0.0, %v1597_v62 }
 0x446   : > { %v2614_v18 = vpop.f32.mrf.mxu2  ;;  %v1615_v29 = vadd.f32 %v7371_v11, %v1608_v25 }
 0x447   : > { %v2655_v3 = vpop.f32.mrf.mxu3  ;;  %v2615_v41 = vadd.f32 %v2614_v18, %v2574_v34  ;;  %v2764_v19 = vmul.f32 %v7364_v27, %v2735_v31  ;;  %v1598_v60 = vsel %vm1590_vm8, %v3016_v48, %v1574_v59  ;;  %v2229_v34 = vsel %vm2228_vm9, %v2205_v44, 0.0  ;;  %v2211_v18 = vpop.permute.xlu1 %2210 }
 0x448   : > { %v1609_v14 = vsel %vm1601_vm1, 0.0, %v1598_v60  ;;  %v7372_v44 = vlaneseq }
 0x449   : > { %v2656_v53 = vadd.f32 %v2655_v3, %v2615_v41  ;;  %v2772_v16 = vsub.f32 %v2754_v43, %v2764_v19  ;;  %v2699_v39 = vpop.f32.mrf.mxu0  ;;  %v1616_v7 = vadd.f32 %v1615_v29, %v1609_v14  ;;  %v2230_v3 = vsel %vm2228_vm9, %v2207_v15, 0.0 }
 0x44a   : > { %v2740_v9 = vpop.f32.mrf.mxu1  ;;  %v2231_v41 = vadd.f32 %v2230_v3, %v2229_v34  ;;  %v2234_v43 = vsel %vm2228_vm9, %v2211_v18, 0.0 }
 0x44b   : > { %v2697_v55 = vadd.f32 %v2696_v49, %v2656_v53  ;;  %2793 = vrot.lane.b32.xlu0 %v2772_v16, %s3814_s25  ;;  %2218 = vrot.lane.b32.xlu2 %v6412_v2, %s3814_s25  ;;  %v3329_v2 = vpop.eup %3328  ;;  %v2213_v10 = vpop.permute.xlu2 %2212 }
 0x44c   : > { %v2758_v52 = vmul.f32 0.6931472, %v3329_v2  ;;  %v2233_v27 = vadd.f32 %v2232_v36, %v2231_v41  ;;  %v2215_v49 = vpop.permute.xlu0 %2214  ;;  %v2236_v16 = vsel %vm2228_vm9, %v2213_v10, 0.0 }
 0x44d   : > { %v2738_v40 = vadd.f32 %v2737_v35, %v2697_v55  ;;  %v2238_v35 = vsel %vm2228_vm9, %v2215_v49, 0.0 }
 0x44e   : > { %v2617_v37 = vpop.f32.mrf.mxu2  ;;  %v2235_v19 = vadd.f32 %v2234_v43, %v2233_v27 }
 0x44f   : > { %v2618_v45 = vadd.f32 %v2617_v37, %v2577_v28  ;;  %v2765_v56 = vmul.f32 %v7366_v61, %v2738_v40  ;;  %v2658_v63 = vpop.f32.mrf.mxu3  ;;  %v2217_v53 = vpop.permute.xlu1 %2216 }
 0x450   : > { %v2237_v55 = vadd.f32 %v2236_v16, %v2235_v19  ;;  %v2240_v21 = vsel %vm2228_vm9, %v2217_v53, 0.0 }
 0x451   : > { %v2659_v32 = vadd.f32 %v2658_v63, %v2618_v45  ;;  %v2773_v33 = vsub.f32 %v2756_v12, %v2765_v56 }
 0x452   : > { %v2239_v40 = vadd.f32 %v2238_v35, %v2237_v55 }
 0x453   : > { %v2700_v50 = vadd.f32 %v2699_v39, %v2659_v32  ;;  %2795 = vrot.lane.b32.xlu1 %v2773_v33, %s3814_s25 }
 0x454   : > { %v2241_v28 = vadd.f32 %v2240_v21, %v2239_v40 }
 0x455   : > { %v2741_v20 = vadd.f32 %v2740_v9, %v2700_v50 }
 0x457   : > { %v2766_v38 = vmul.f32 %v7367_v42, %v2741_v20 }
 0x459   : > { %v2774_v17 = vsub.f32 %v2758_v52, %v2766_v38 }
 0x45b   : > { %2797 = vrot.lane.b32.xlu0 %v2774_v17, %s3814_s25 }
 0x474   : > { %1617 = vadd.xlane.f32.xlu2 %v1616_v7 }
 0x485   : > { %v2786_v31 = vpop.permute.xlu2 %2785 }
 0x486   : > { %v2808_v32 = vsel %vm2228_vm9, %v2786_v31, 0.0  ;;  %v2832_v31 = vshrl.u32 %v7372_v44, 7 }
 0x488   : > { %vm2833_vm10 = vcmp.eq.s32.totalorder %v2832_v31, 0  ;;  %vm2836_vm11 = vcmp.eq.s32.totalorder %v2832_v31, 1  ;;  %vm2840_vm12 = vcmp.eq.s32.totalorder %v2832_v31, 2 }
 0x495   : > { %v2784_v12 = vpop.permute.xlu0 %2783 }
 0x496   : > { %v2807_v56 = vsel %vm2228_vm9, %v2784_v12, 0.0 }
 0x497   : > { %v2809_v39 = vadd.f32 %v2808_v32, %v2807_v56 }
 0x49d   : > { %v2792_v5 = vpop.permute.xlu2 %2791 }
 0x49e   : > { %v2814_v42 = vsel %vm2228_vm9, %v2792_v5, 0.0 }
 0x4a5   : > { %v2219_v37 = vpop.permute.xlu2 %2218  ;;  %v2788_v61 = vpop.permute.xlu0 %2787 }
 0x4a6   : > { %v2242_v24 = vsel %vm2228_vm9, %v2219_v37, 0.0  ;;  %v2810_v33 = vsel %vm2228_vm9, %v2788_v61, 0.0 }
 0x4a7   : > { %v2243_v45 = vadd.f32 %v2242_v24, %v2241_v28  ;;  %v2811_v2 = vadd.f32 %v2810_v33, %v2809_v39 }
 0x4a9   : > { %2244 = vadd.xlane.f32.xlu1 %v2243_v45 }
 0x4ad   : > { %v2790_v63 = vpop.permute.xlu1 %2789 }
 0x4ae   : > { %v2812_v50 = vsel %vm2228_vm9, %v2790_v63, 0.0 }
 0x4af   : > { %v2813_v9 = vadd.f32 %v2812_v50, %v2811_v2 }
 0x4b1   : > { %v2815_v58 = vadd.f32 %v2814_v42, %v2813_v9 }
 0x4bd   : > { %v2794_v20 = vpop.permute.xlu0 %2793 }
 0x4be   : > { %v2816_v38 = vsel %vm2228_vm9, %v2794_v20, 0.0 }
 0x4bf   : > { %v2817_v22 = vadd.f32 %v2816_v38, %v2815_v58 }
 0x4c5   : > { %v2796_v52 = vpop.permute.xlu1 %2795 }
 0x4c6   : > { %v2818_v8 = vsel %vm2228_vm9, %v2796_v52, 0.0 }
 0x4c7   : > { %v2819_v0 = vadd.f32 %v2818_v8, %v2817_v22 }
 0x4cd   : > { %v2798_v17 = vpop.permute.xlu0 %2797 }
 0x4ce   : > { %v2820_v4 = vsel %vm2228_vm9, %v2798_v17, 0.0 }
 0x4cf   : > { %v2821_v51 = vadd.f32 %v2820_v4, %v2819_v0 }
 0x4d1   : > { %2822 = vadd.xlane.f32.xlu0 %v2821_v51 }
 0x4e7   : > { %v1618_v1 = vpop.xlane.xlu2 %1617 }
 0x4e8   : > { %v1619_v47 = vrot.slane %v1618_v1, 4 }
 0x4ea   : > { %v1620_v26 = vadd.f32 %v1619_v47, %v1618_v1 }
 0x4ec   : > { %v1621_v54 = vrot.slane %v1620_v26, 2 }
 0x4ee   : > { %v1622_v57 = vadd.f32 %v1621_v54, %v1620_v26 }
 0x4f0   : > { %v1623_v30 = vrot.slane %v1622_v57, 1 }
 0x4f2   : > { %v1624_v46 = vadd.f32 %v1623_v30, %v1622_v57 }
 0x4f4   : > { %3062 = vpush %v1624_v46 }
 0x51c   : > { %v2245_v59 = vpop.xlane.xlu1 %2244 }
 0x51d   : > { %v2246_v13 = vrot.slane %v2245_v59, 4 }
 0x51f   : > { %v2247_v48 = vadd.f32 %v2246_v13, %v2245_v59 }
 0x521   : > { %v2248_v62 = vrot.slane %v2247_v48, 2 }
 0x523   : > { %v2249_v60 = vadd.f32 %v2248_v62, %v2247_v48 }
 0x525   : > { %v2250_v23 = vrot.slane %v2249_v60, 1  ;;  %s3063_s29 = spop %3062 }
 0x526   : > { %v2837_v18 = vstv %s3063_s29 }
 0x527   : > { %v2251_v25 = vadd.f32 %v2250_v23, %v2249_v60  ;;  %v2838_v36 = vsel %vm2836_vm11, %v2837_v18, 0.0 }
 0x529   : > { %3064 = vpush %v2251_v25 }
 0x544   : > { %v2823_v14 = vpop.xlane.xlu0 %2822 }
 0x545   : > { %v2824_v11 = vrot.slane %v2823_v14, 4 }
 0x547   : > { %v2825_v29 = vadd.f32 %v2824_v11, %v2823_v14 }
 0x549   : > { %v2826_v7 = vrot.slane %v2825_v29, 2 }
 0x54b   : > { %v2827_v15 = vadd.f32 %v2826_v7, %v2825_v29 }
 0x54d   : > { %v2828_v10 = vrot.slane %v2827_v15, 1 }
 0x54f   : > { %v2829_v6 = vadd.f32 %v2828_v10, %v2827_v15 }
 0x551   : > { %3066 = vpush %v2829_v6 }
 0x55a   : > { %s3065_s17 = spop %3064 }
 0x55b   : > { %v2834_v34 = vstv %s3065_s17 }
 0x55c   : > { %v2835_v3 = vsel %vm2833_vm10, %v2834_v34, 0.0 }
 0x55d   : > { %v2839_v41 = vadd.f32 %v2838_v36, %v2835_v3 }
 0x582   : > { %s3067_s10 = spop %3066 }
 0x583   : > { %v2841_v43 = vstv %s3067_s10 }
 0x584   : > { %v2842_v27 = vsel %vm2840_vm12, %v2841_v43, 0.0 }
 0x585   : > { %v2843_v19 = vadd.f32 %v2842_v27, %v2839_v41 }
 0x587   : > { %2844 = vst [vmem:[%s340_s14] sm:$0xff] %v2843_v19 }
 0x588   : > { %3760 = shalt.err (!%p3757_p7)
}
 0x589   : > { %3076 = dma.vmem_to_hbm [thread:$0]  (%p3886_p11), %s2859_s6, 128, %s2861_s21, %s2846_s19  }
 0x58a PF: > { %s7373_s28 = sld [smem:[#allocation15_spill]]  ;;  %p3092_p0 = pnand %p2999_p9, %p3890_p12 }
 0x58c   : > { %p3093_p8 = pneg %p3092_p0 }
 0x590   : > { %s2872_s30 = sand.u32 1, %s7373_s28  }
 0x591   : > { %s2873_s8 = scalar_lea.sflag [#allocation4], %s2872_s30 }
 0x592   : > { %3790 = dma.done.wait (%p3093_p8), %s2873_s8, 128  }
 0x593   : > { %3792 = vsyncadd (%p3093_p8), %s2873_s8, 4294967168  ;;  %s7375_s18 = sld [smem:[#allocation17_spill]]  ;;  %s7378_s15 = smov %s3799_s16 }
 0x594   : > { %s7376_s25 = sld [smem:[#allocation16_spill]] }
 0x595   : > { %s7377_s17 = sld [smem:[#allocation18_spill]] }
 0x599   : > { %p23_p10 = scmp.ge.s32.totalorder %s7375_s18, 4  }
 0x59a   : > { %s7379_s16 = smov %s7376_s25 }
 0x59b   :  { %25 = sbr.rel (!%p23_p10) target bundleno = 11 (0xb), region = 118 }
 0x5a0   :  { %2879 = vsyncpa [#allocation3], 1 }
 0x5a1   :  { %2881 = vsyncpa [#allocation3 + $0x1], 1 }
 0x5a2   :  { %2882 = vsyncpa [#allocation6], 1 }
 0x5a3   :  { %2884 = vsyncpa [#allocation6 + $0x1], 1 }
 0x5a4   :  { %2885 = vsyncpa [#allocation9], 1 }
 0x5a5   :  { %2887 = vsyncpa [#allocation9 + $0x1], 1 }
 0x5a6   :  { %2888 = vsyncpa [#allocation4], 1 }
 0x5a7   :  { %2890 = vsyncpa [#allocation4 + $0x1], 1 }

</bundles_post_ra>
